<compile_context>
chip_gen: v7x
topology: tpu7x:2x2x1
jax: 0.10.0
libtpu: 0.0.40
codegen_flags: <defaults>
</compile_context>

<pallas_src>
import functools

import jax
import jax.numpy as jnp
from jax import lax
from jax.experimental import pallas as pl
from jax.experimental.pallas import tpu as pltpu


LANE = 128            # lane width: each gate padded to its own lane group
SUBLANE = 8           # f32 sublane height: batch padded to a multiple of this
CHUNK_ROWS_TARGET = 512   # ~ (time*batch) rows of a chunk kept VMEM-resident


def _round_up(x, m):
    return (x + m - 1) // m * m


def _largest_divisor_leq(n, cap):
    cap = max(1, min(n, cap))
    for d in range(cap, 0, -1):
        if n % d == 0:
            return d
    return 1


# ---------------------------------------------------------------------------
# Pallas kernel: one (direction, time-chunk) grid step of an LSTM layer.
#
#   xf_ref : (Tc*Bp, Din)   bf16  time-major input rows of this chunk
#   wih_ref: (Din, 4*Hp)    bf16  W_ih^T of this direction (gate-padded)
#   whh_ref: (Hp, 4*Hp)     bf16  W_hh^T of this direction (gate-padded)
#   b_ref  : (1, 4*Hp)      f32   fused bias (b_ih + b_hh), gate-padded
#   out_ref: (Tc*Bp, Hp)    bf16  this direction's hidden states, this chunk
#   gx_ref : (Tc*Bp, 4*Hp)  f32   scratch: input projection of the chunk
#   h_ref  : (nd, Bp, Hp)   f32   per-direction recurrent state carry
#   c_ref  : (nd, Bp, Hp)   f32   per-direction cell state carry
#
# Gate order i, f, g, o matches PyTorch; c_t = f*c + i*g ; h_t = o*tanh(c_t).
# ---------------------------------------------------------------------------
def lstm_layer_kernel(xf_ref, wih_ref, whh_ref, b_ref, out_ref,
                      gx_ref, h_ref, c_ref, *, Tc, Bp, Hp, unroll):
    d_idx = pl.program_id(0)       # direction: 0 = forward, 1 = reverse
    chunk = pl.program_id(1)       # time chunk index (serial, carries state)

    # ---- Phase 1: batched input projection + bias for the whole chunk -----
    # One (Tc*Bp, Din) @ (Din, 4Hp) MXU matmul; far better occupancy than
    # per-timestep (Bp, Din) pushes.
    gx_ref[...] = (
        jnp.dot(xf_ref[...], wih_ref[...], preferred_element_type=jnp.float32)
        + b_ref[...])

    # hidden_state=None in the module => zeros at each direction's first chunk.
    @pl.when(chunk == 0)
    def _():
        h_ref[d_idx] = jnp.zeros((Bp, Hp), jnp.float32)
        c_ref[d_idx] = jnp.zeros((Bp, Hp), jnp.float32)

    whh = whh_ref[...]                                   # loop-invariant bf16

    # Single-tanh gate activations over the whole (Bp, 4Hp) vreg:
    #   sigmoid(x) = 0.5 * (1 + tanh(0.5*x))  on the i/f/o lane groups,
    #   tanh(x)                                on the g lane group.
    half = jnp.full((1, Hp), 0.5, jnp.float32)
    one = jnp.full((1, Hp), 1.0, jnp.float32)
    zero = jnp.zeros((1, Hp), jnp.float32)
    pre = jnp.concatenate([half, half, one, half], axis=1)     # scale pre-tanh
    post_a = jnp.concatenate([half, half, one, half], axis=1)  # scale post-tanh
    post_b = jnp.concatenate([half, half, zero, half], axis=1)  # offset

    # ---- Phase 2: serial recurrence over the chunk, h/c in vregs ----------
    def step(t, carry):
        h, c = carry
        # Forward walks local t = 0..Tc-1; reverse walks Tc-1..0 (its chunks
        # are also visited back-to-front via the index_map).
        td = t + d_idx * (Tc - 1 - 2 * t)
        row = pl.multiple_of(td * Bp, Bp)

        gates = gx_ref[pl.ds(row, Bp), :] + jnp.dot(
            h.astype(jnp.bfloat16), whh, preferred_element_type=jnp.float32)

        act = jnp.tanh(gates * pre) * post_a + post_b
        # Hp is a multiple of 128 -> these are full lane-group slices.
        i = act[:, 0 * Hp:1 * Hp]
        f = act[:, 1 * Hp:2 * Hp]
        g = act[:, 2 * Hp:3 * Hp]
        o = act[:, 3 * Hp:4 * Hp]

        c = f * c + i * g
        h = o * jnp.tanh(c)

        # Lane-dense (Hp mult of 128) and sublane-aligned (Bp mult of 8) store;
        # the output block stays VMEM-resident for the whole chunk and is
        # written back to HBM once by the pipeline.
        out_ref[pl.ds(row, Bp), :] = h.astype(out_ref.dtype)
        return (h, c)

    # NOTE: h is cast to bf16 each step for the MXU matmul; the recurrent
    # rounding compounds for very long sequences (validated at 5e-2 here).
    h0, c0 = h_ref[d_idx], c_ref[d_idx]
    h_fin, c_fin = lax.fori_loop(0, Tc, step, (h0, c0), unroll=unroll)
    h_ref[d_idx] = h_fin
    c_ref[d_idx] = c_fin


def _lstm_layer(xf, T, Bp, wih, whh, bias):
    """One LSTM layer (all directions, all time chunks) in one pallas_call.

    xf   : (T*Bp, Din)      bf16, time-major flattened (row = t*Bp + b)
    wih  : (Din, nd*4*Hp)   bf16
    whh  : (nd, Hp, 4*Hp)   bf16
    bias : (nd, 1, 4*Hp)    f32
    Returns (T*Bp, nd*Hp) bf16 in the same time-major, gate-padded layout
    (forward features in cols [0,Hp), reverse in [Hp,2Hp)).
    """
    Din = xf.shape[1]
    nd, Hp, _ = whh.shape

    # Chunk the sequence so VMEM stays bounded independent of T.
    Tc = _largest_divisor_leq(T, max(1, CHUNK_ROWS_TARGET // Bp))
    C = T // Tc
    unroll = _largest_divisor_leq(Tc, 8)

    # VMEM budget: double-buffered pipelined blocks + scratch, with margin.
    need = (2 * Tc * Bp * Din * 2          # xf chunk (bf16, double-buffered)
            + 2 * Tc * Bp * Hp * 2         # out chunk (bf16, double-buffered)
            + 2 * Din * 4 * Hp * 2         # wih block
            + 2 * Hp * 4 * Hp * 2          # whh block
            + 2 * 4 * Hp * 4               # bias block
            + Tc * Bp * 4 * Hp * 4         # gx scratch (f32)
            + 2 * nd * Bp * Hp * 4)        # h/c carries
    vmem_limit = int(max(32 << 20, min(2 * need + (16 << 20), 100 << 20)))

    def row_block(d, c):
        # Forward visits time-chunks 0..C-1; reverse visits C-1..0.
        return d * (C - 1 - 2 * c) + c

    kernel = functools.partial(lstm_layer_kernel,
                               Tc=Tc, Bp=Bp, Hp=Hp, unroll=unroll)

    return pl.pallas_call(
        kernel,
        out_shape=jax.ShapeDtypeStruct((T * Bp, nd * Hp), jnp.bfloat16),
        grid_spec=pltpu.PrefetchScalarGridSpec(
            num_scalar_prefetch=0,
            grid=(nd, C),
            in_specs=[
                pl.BlockSpec((Tc * Bp, Din), lambda d, c: (row_block(d, c), 0)),
                pl.BlockSpec((Din, 4 * Hp), lambda d, c: (0, d)),
                pl.BlockSpec((None, Hp, 4 * Hp), lambda d, c: (d, 0, 0)),
                pl.BlockSpec((None, 1, 4 * Hp), lambda d, c: (d, 0, 0)),
            ],
            out_specs=pl.BlockSpec((Tc * Bp, Hp),
                                   lambda d, c: (row_block(d, c), d)),
            scratch_shapes=[
                pltpu.VMEM((Tc * Bp, 4 * Hp), jnp.float32),   # gx projection
                pltpu.VMEM((nd, Bp, Hp), jnp.float32),        # h carry
                pltpu.VMEM((nd, Bp, Hp), jnp.float32),        # c carry
            ]),
        compiler_params=pltpu.CompilerParams(
            # Direction axis is fully independent -> shardable across the 2
            # TensorCores on v7x; chunk axis carries the recurrence -> serial.
            dimension_semantics=("parallel", "arbitrary"),
            vmem_limit_bytes=vmem_limit),
    )(xf, wih, whh, bias)


# ---------------------------------------------------------------------------
# One-time weight re-layout (hoisted out of the forward path).
# ---------------------------------------------------------------------------
def _pad_gate_rows(w, H, Hp):
    """(4H, X) -> (4Hp, X): each PyTorch gate block (i,f,g,o) is zero-padded
    to its own Hp-row group so gate slices become full 128-lane groups."""
    if Hp == H:
        return w
    X = w.shape[1]
    pad = jnp.zeros((Hp - H, X), w.dtype)
    return jnp.concatenate(
        [jnp.concatenate([w[k * H:(k + 1) * H], pad], axis=0) for k in range(4)],
        axis=0)


def _pad_dir_cols(w, H, Hp, nd):
    """(R, nd*H) -> (R, nd*Hp): zero-pad each direction's feature group."""
    if Hp == H:
        return w
    R = w.shape[0]
    pad = jnp.zeros((R, Hp - H), w.dtype)
    return jnp.concatenate(
        [jnp.concatenate([w[:, d * H:(d + 1) * H], pad], axis=1)
         for d in range(nd)],
        axis=1)


def prepare_lstm_params(params, hidden_size, num_layers, bidirectional):
    """Transpose / gate-pad / bias-fuse / bf16-cast the PyTorch-style weights
    once, so the jitted forward path only runs the pallas_calls."""
    nd = 2 if bidirectional else 1
    H = hidden_size
    Hp = _round_up(H, LANE)
    layers = []
    for layer in range(num_layers):
        sufs = ["", "_reverse"][:nd]
        wih_d, whh_d, b_d = [], [], []
        for s in sufs:
            w_ih = params[f"weight_ih_l{layer}{s}"]                 # (4H, Din)
            w_hh = params[f"weight_hh_l{layer}{s}"]                 # (4H, H)
            b = params[f"bias_ih_l{layer}{s}"] + params[f"bias_hh_l{layer}{s}"]

            w_ih = _pad_gate_rows(w_ih, H, Hp)                      # (4Hp, Din)
            if layer > 0:
                # Layer>0 consumes the previous layer's padded (nd*Hp)-wide
                # output; embed the (nd*H) input columns accordingly.
                w_ih = _pad_dir_cols(w_ih, H, Hp, nd)               # (4Hp, nd*Hp)
            w_hh = _pad_dir_cols(_pad_gate_rows(w_hh, H, Hp), H, Hp, 1)  # (4Hp, Hp)
            b = _pad_gate_rows(b.reshape(4 * H, 1), H, Hp).reshape(1, 4 * Hp)

            wih_d.append(w_ih.T.astype(jnp.bfloat16))               # (Din_l, 4Hp)
            whh_d.append(w_hh.T.astype(jnp.bfloat16))               # (Hp, 4Hp)
            b_d.append(b.astype(jnp.float32))
        layers.append({
            "wih": jnp.concatenate(wih_d, axis=1),                  # (Din_l, nd*4Hp)
            "whh": jnp.stack(whh_d),                                # (nd, Hp, 4Hp)
            "bias": jnp.stack(b_d),                                 # (nd, 1, 4Hp)
        })
    return layers


def lstm_forward(x_btd, prepared, *, hidden_size, num_layers, bidirectional):
    """Equivalent of Lstm.forward(x) with hidden_state=None.

    x_btd: (B, T, D) float32 (batch_first). Returns (B, T, nd*H) float32.
    """
    nd = 2 if bidirectional else 1
    H = hidden_size
    Hp = _round_up(H, LANE)
    B, T, D = x_btd.shape
    Bp = _round_up(B, SUBLANE)

    # Pad the batch to a sublane multiple (padded rows are independent
    # recurrences that are sliced off at the end), go to a time-major
    # flattened layout once, cast the matmul input to bf16 once.
    x = jnp.pad(x_btd, ((0, Bp - B), (0, 0), (0, 0)))
    xf = jnp.transpose(x, (1, 0, 2)).reshape(T * Bp, D).astype(jnp.bfloat16)

    for layer in range(num_layers):
        p = prepared[layer]
        xf = _lstm_layer(xf, T, Bp, p["wih"], p["whh"], p["bias"])

    # (T*Bp, nd*Hp) -> (B, T, nd*H): drop batch / lane padding once at the end.
    y = xf.reshape(T, Bp, nd * Hp)[:, :B, :]
    if Hp != H:
        y = jnp.concatenate([y[..., d * Hp:d * Hp + H] for d in range(nd)],
                            axis=-1)
    return jnp.transpose(y, (1, 0, 2)).astype(jnp.float32)


# ---------------------------------------------------------------------------
# Pure-JAX f32 reference (lax.scan) for correctness checking.
# ---------------------------------------------------------------------------
def _ref_single_direction(x_tbd, w_ih, w_hh, b_ih, b_hh):
    H = w_hh.shape[1]
    B = x_tbd.shape[1]
    b = b_ih + b_hh

    def step(carry, x_t):
        h, c = carry
        gates = x_t @ w_ih.T + h @ w_hh.T + b
        i, f, g, o = jnp.split(gates, 4, axis=-1)
        i = jax.nn.sigmoid(i)
        f = jax.nn.sigmoid(f)
        g = jnp.tanh(g)
        o = jax.nn.sigmoid(o)
        c = f * c + i * g
        h = o * jnp.tanh(c)
        return (h, c), h

    init = (jnp.zeros((B, H), jnp.float32), jnp.zeros((B, H), jnp.float32))
    _, hs = lax.scan(step, init, x_tbd)
    return hs


def lstm_reference(x_btd, params, num_layers, bidirectional):
    num_dirs = 2 if bidirectional else 1
    layer_in = jnp.transpose(x_btd, (1, 0, 2))
    for layer in range(num_layers):
        dir_outs = []
        for d in range(num_dirs):
            suffix = "_reverse" if d == 1 else ""
            w_ih = params[f"weight_ih_l{layer}{suffix}"]
            w_hh = params[f"weight_hh_l{layer}{suffix}"]
            b_ih = params[f"bias_ih_l{layer}{suffix}"]
            b_hh = params[f"bias_hh_l{layer}{suffix}"]
            inp = layer_in if d == 0 else layer_in[::-1]
            out = _ref_single_direction(inp, w_ih, w_hh, b_ih, b_hh)
            if d == 1:
                out = out[::-1]
            dir_outs.append(out)
        layer_in = jnp.concatenate(dir_outs, axis=-1)
    return jnp.transpose(layer_in, (1, 0, 2))


# ---------------------------------------------------------------------------
# Deterministic parameter init (PyTorch: U(-1/sqrt(H), 1/sqrt(H))).
# ---------------------------------------------------------------------------
def init_lstm_params(key, latent_dim, hidden_size, num_layers, bidirectional):
    num_dirs = 2 if bidirectional else 1
    bound = 1.0 / jnp.sqrt(hidden_size)
    params = {}
    for layer in range(num_layers):
        in_dim = latent_dim if layer == 0 else hidden_size * num_dirs
        for d in range(num_dirs):
            suffix = "_reverse" if d == 1 else ""
            key, k1, k2, k3, k4 = jax.random.split(key, 5)
            params[f"weight_ih_l{layer}{suffix}"] = jax.random.uniform(
                k1, (4 * hidden_size, in_dim), jnp.float32, -bound, bound)
            params[f"weight_hh_l{layer}{suffix}"] = jax.random.uniform(
                k2, (4 * hidden_size, hidden_size), jnp.float32, -bound, bound)
            params[f"bias_ih_l{layer}{suffix}"] = jax.random.uniform(
                k3, (4 * hidden_size,), jnp.float32, -bound, bound)
            params[f"bias_hh_l{layer}{suffix}"] = jax.random.uniform(
                k4, (4 * hidden_size,), jnp.float32, -bound, bound)
    return params


if __name__ == "__main__":
    # Module hyperparameters (constructor args of Lstm).
    LATENT_DIM = 32
    HIDDEN_SIZE = 32
    LSTM_LAYERS = 2
    BIDIRECTIONAL = True

    # Small deterministic input: batch=2, seq=8, feature=latent_dim.
    B, T = 2, 8
    key = jax.random.PRNGKey(0)
    key, kx = jax.random.split(key)
    x = jax.random.normal(kx, (B, T, LATENT_DIM), jnp.float32)

    params = init_lstm_params(key, LATENT_DIM, HIDDEN_SIZE, LSTM_LAYERS,
                              BIDIRECTIONAL)
    # One-time weight re-layout, hoisted out of the forward path.
    prepared = prepare_lstm_params(params, HIDDEN_SIZE, LSTM_LAYERS,
                                   BIDIRECTIONAL)

    fwd = jax.jit(functools.partial(
        lstm_forward, hidden_size=HIDDEN_SIZE, num_layers=LSTM_LAYERS,
        bidirectional=BIDIRECTIONAL))
    out = jax.block_until_ready(fwd(x, prepared))

    ref = jax.block_until_ready(
        lstm_reference(x, params, LSTM_LAYERS, BIDIRECTIONAL))

    nd = 2 if BIDIRECTIONAL else 1
    assert out.shape == (B, T, HIDDEN_SIZE * nd), out.shape
    # Tolerance loosened vs. the f32 reference because the kernel uses bf16
    # matmul operands and bf16 inter-layer activations (f32 accumulation and
    # f32 gate math inside the kernel).
    max_err = float(jnp.max(jnp.abs(out - ref)))
    assert max_err < 5e-2, max_err

    print("KERNEL_OK")
</pallas_src>

<mosaic_0001>
module attributes {stable_mosaic.version = 11 : i64} {
  func.func @lstm_layer_kernel(%arg0: i32, %arg1: i32, %arg2: memref<64x32xbf16, #tpu.memory_space<vmem>>, %arg3: memref<32x512xbf16, #tpu.memory_space<vmem>>, %arg4: memref<1x128x512xbf16, #tpu.memory_space<vmem>>, %arg5: memref<1x1x512xf32, #tpu.memory_space<vmem>>, %arg6: memref<64x128xbf16, #tpu.memory_space<vmem>>, %arg7: memref<64x512xf32, #tpu.memory_space<vmem>>, %arg8: memref<2x8x128xf32, #tpu.memory_space<vmem>>, %arg9: memref<2x8x128xf32, #tpu.memory_space<vmem>>) attributes {dimension_semantics = [#tpu.dimension_semantics<parallel>, #tpu.dimension_semantics<arbitrary>], iteration_bounds = array<i64: 2, 1>, scalar_prefetch = 0 : i64, scratch_operands = 3 : i64, tpu.core_type = #tpu.core_type<tc>, window_params = [{transform_indices = @transform_0, window_bounds = array<i64: 64, 32>}, {transform_indices = @transform_1, window_bounds = array<i64: 32, 512>}, {transform_indices = @transform_2, window_bounds = array<i64: 1, 128, 512>}, {transform_indices = @transform_3, window_bounds = array<i64: 1, 1, 512>}, {transform_indices = @transform_4, window_bounds = array<i64: 64, 128>}]} {
    %c0 = arith.constant 0 : index
    %c0_0 = arith.constant 0 : index
    %0 = vector.load %arg2[%c0, %c0_0] : memref<64x32xbf16, #tpu.memory_space<vmem>>, vector<64x32xbf16>
    %c0_1 = arith.constant 0 : index
    %c0_2 = arith.constant 0 : index
    %1 = vector.load %arg3[%c0_1, %c0_2] : memref<32x512xbf16, #tpu.memory_space<vmem>>, vector<32x512xbf16>
    %cst = arith.constant dense<0.000000e+00> : vector<64x512xf32>
    %2 = tpu.matmul %0, %1, %cst {dimension_numbers = #tpu.dot_dimension_numbers<[1], [0], [0], [1], [0, 0, 1, 1], [], []>} : vector<64x32xbf16>, vector<32x512xbf16>, vector<64x512xf32> -> vector<64x512xf32>
    %c0_3 = arith.constant 0 : index
    %c0_4 = arith.constant 0 : index
    %c0_5 = arith.constant 0 : index
    %3 = vector.load %arg5[%c0_3, %c0_4, %c0_5] : memref<1x1x512xf32, #tpu.memory_space<vmem>>, vector<1x1x512xf32>
    %4 = vector.shape_cast %3 : vector<1x1x512xf32> to vector<1x512xf32>
    %5 = vector.broadcast %4 : vector<1x512xf32> to vector<64x512xf32>
    %6 = arith.addf %2, %5 : vector<64x512xf32>
    %c0_6 = arith.constant 0 : index
    %c0_7 = arith.constant 0 : index
    %7 = vector.load %arg7[%c0_6, %c0_7] : memref<64x512xf32, #tpu.memory_space<vmem>>, vector<64x512xf32>
    tpu.vector_store %arg7[%c0_6, %c0_7], %6 {strides = array<i32>} : memref<64x512xf32, #tpu.memory_space<vmem>>, vector<64x512xf32>,
    %c0_i32 = arith.constant 0 : i32
    %8 = arith.cmpi eq, %arg1, %c0_i32 : i32
    %9 = arith.extui %8 : i1 to i32
    %c0_i32_8 = arith.constant 0 : i32
    %10 = arith.cmpi ne, %9, %c0_i32_8 : i32
    scf.if %10 {
      %cst_72 = arith.constant 0.000000e+00 : f32
      %273 = vector.broadcast %cst_72 : f32 to vector<8x128xf32>
      %274 = arith.index_cast %arg0 : i32 to index
      %c0_73 = arith.constant 0 : index
      %c0_74 = arith.constant 0 : index
      %275 = vector.load %arg8[%274, %c0_73, %c0_74] : memref<2x8x128xf32, #tpu.memory_space<vmem>>, vector<1x8x128xf32>
      %276 = vector.shape_cast %275 : vector<1x8x128xf32> to vector<8x128xf32>
      %277 = vector.shape_cast %273 : vector<8x128xf32> to vector<1x8x128xf32>
      tpu.vector_store %arg8[%274, %c0_73, %c0_74], %277 {strides = array<i32>} : memref<2x8x128xf32, #tpu.memory_space<vmem>>, vector<1x8x128xf32>,
      %cst_75 = arith.constant 0.000000e+00 : f32
      %278 = vector.broadcast %cst_75 : f32 to vector<8x128xf32>
      %279 = arith.index_cast %arg0 : i32 to index
      %c0_76 = arith.constant 0 : index
      %c0_77 = arith.constant 0 : index
      %280 = vector.load %arg9[%279, %c0_76, %c0_77] : memref<2x8x128xf32, #tpu.memory_space<vmem>>, vector<1x8x128xf32>
      %281 = vector.shape_cast %280 : vector<1x8x128xf32> to vector<8x128xf32>
      %282 = vector.shape_cast %278 : vector<8x128xf32> to vector<1x8x128xf32>
      tpu.vector_store %arg9[%279, %c0_76, %c0_77], %282 {strides = array<i32>} : memref<2x8x128xf32, #tpu.memory_space<vmem>>, vector<1x8x128xf32>,
    } else {
    }
    %c0_9 = arith.constant 0 : index
    %c0_10 = arith.constant 0 : index
    %c0_11 = arith.constant 0 : index
    %11 = vector.load %arg4[%c0_9, %c0_10, %c0_11] : memref<1x128x512xbf16, #tpu.memory_space<vmem>>, vector<1x128x512xbf16>
    %12 = vector.shape_cast %11 : vector<1x128x512xbf16> to vector<128x512xbf16>
    %cst_12 = arith.constant 5.000000e-01 : f32
    %13 = vector.broadcast %cst_12 : f32 to vector<1x128xf32>
    %cst_13 = arith.constant 1.000000e+00 : f32
    %14 = vector.broadcast %cst_13 : f32 to vector<1x128xf32>
    %cst_14 = arith.constant 0.000000e+00 : f32
    %15 = vector.broadcast %cst_14 : f32 to vector<1x128xf32>
    %16 = tpu.concatenate %13, %13, %14, %13 in 1 : vector<1x128xf32>, vector<1x128xf32>, vector<1x128xf32>, vector<1x128xf32> -> vector<1x512xf32>
    %17 = tpu.concatenate %13, %13, %14, %13 in 1 : vector<1x128xf32>, vector<1x128xf32>, vector<1x128xf32>, vector<1x128xf32> -> vector<1x512xf32>
    %18 = tpu.concatenate %13, %13, %15, %13 in 1 : vector<1x128xf32>, vector<1x128xf32>, vector<1x128xf32>, vector<1x128xf32> -> vector<1x512xf32>
    %19 = arith.index_cast %arg0 : i32 to index
    %c0_15 = arith.constant 0 : index
    %c0_16 = arith.constant 0 : index
    %20 = vector.load %arg8[%19, %c0_15, %c0_16] : memref<2x8x128xf32, #tpu.memory_space<vmem>>, vector<1x8x128xf32>
    %21 = vector.shape_cast %20 : vector<1x8x128xf32> to vector<8x128xf32>
    %22 = arith.index_cast %arg0 : i32 to index
    %c0_17 = arith.constant 0 : index
    %c0_18 = arith.constant 0 : index
    %23 = vector.load %arg9[%22, %c0_17, %c0_18] : memref<2x8x128xf32, #tpu.memory_space<vmem>>, vector<1x8x128xf32>
    %24 = vector.shape_cast %23 : vector<1x8x128xf32> to vector<8x128xf32>
    %c0_i32_19 = arith.constant 0 : i32
    %c2_i32 = arith.constant 2 : i32
    %25 = arith.muli %c2_i32, %c0_i32_19 : i32
    %c7_i32 = arith.constant 7 : i32
    %26 = arith.subi %c7_i32, %25 : i32
    %27 = arith.muli %arg0, %26 : i32
    %28 = arith.addi %c0_i32_19, %27 : i32
    %c8_i32 = arith.constant 8 : i32
    %29 = arith.muli %28, %c8_i32 : i32
    %30 = tpu.assume_multiple %29, 8 : i32
    %31 = arith.index_cast %30 : i32 to index
    %c0_20 = arith.constant 0 : index
    %32 = vector.load %arg7[%31, %c0_20] : memref<64x512xf32, #tpu.memory_space<vmem>>, vector<8x512xf32>
    %33 = arith.truncf %21 : vector<8x128xf32> to vector<8x128xbf16>
    %cst_21 = arith.constant dense<0.000000e+00> : vector<8x512xf32>
    %34 = tpu.matmul %33, %12, %cst_21 {dimension_numbers = #tpu.dot_dimension_numbers<[1], [0], [0], [1], [0, 0, 1, 1], [], []>} : vector<8x128xbf16>, vector<128x512xbf16>, vector<8x512xf32> -> vector<8x512xf32>
    %35 = arith.addf %32, %34 : vector<8x512xf32>
    %36 = vector.broadcast %16 : vector<1x512xf32> to vector<8x512xf32>
    %37 = arith.mulf %35, %36 : vector<8x512xf32>
    %38 = math.tanh %37 : vector<8x512xf32>
    %39 = vector.broadcast %17 : vector<1x512xf32> to vector<8x512xf32>
    %40 = arith.mulf %38, %39 : vector<8x512xf32>
    %41 = vector.broadcast %18 : vector<1x512xf32> to vector<8x512xf32>
    %42 = arith.addf %40, %41 : vector<8x512xf32>
    %43 = vector.extract_strided_slice %42 {offsets = [0, 0], sizes = [8, 128], strides = [1, 1]} : vector<8x512xf32> to vector<8x128xf32>
    %44 = vector.extract_strided_slice %42 {offsets = [0, 128], sizes = [8, 128], strides = [1, 1]} : vector<8x512xf32> to vector<8x128xf32>
    %45 = vector.extract_strided_slice %42 {offsets = [0, 256], sizes = [8, 128], strides = [1, 1]} : vector<8x512xf32> to vector<8x128xf32>
    %46 = vector.extract_strided_slice %42 {offsets = [0, 384], sizes = [8, 128], strides = [1, 1]} : vector<8x512xf32> to vector<8x128xf32>
    %47 = arith.mulf %44, %24 : vector<8x128xf32>
    %48 = arith.mulf %43, %45 : vector<8x128xf32>
    %49 = arith.addf %47, %48 : vector<8x128xf32>
    %50 = math.tanh %49 : vector<8x128xf32>
    %51 = arith.mulf %46, %50 : vector<8x128xf32>
    %52 = arith.truncf %51 : vector<8x128xf32> to vector<8x128xbf16>
    %53 = arith.index_cast %30 : i32 to index
    %c0_22 = arith.constant 0 : index
    %54 = vector.load %arg6[%53, %c0_22] : memref<64x128xbf16, #tpu.memory_space<vmem>>, vector<8x128xbf16>
    tpu.vector_store %arg6[%53, %c0_22], %52 {strides = array<i32>} : memref<64x128xbf16, #tpu.memory_space<vmem>>, vector<8x128xbf16>,
    %c1_i32 = arith.constant 1 : i32
    %c2_i32_23 = arith.constant 2 : i32
    %55 = arith.muli %c2_i32_23, %c1_i32 : i32
    %c7_i32_24 = arith.constant 7 : i32
    %56 = arith.subi %c7_i32_24, %55 : i32
    %57 = arith.muli %arg0, %56 : i32
    %58 = arith.addi %c1_i32, %57 : i32
    %c8_i32_25 = arith.constant 8 : i32
    %59 = arith.muli %58, %c8_i32_25 : i32
    %60 = tpu.assume_multiple %59, 8 : i32
    %61 = arith.index_cast %60 : i32 to index
    %c0_26 = arith.constant 0 : index
    %62 = vector.load %arg7[%61, %c0_26] : memref<64x512xf32, #tpu.memory_space<vmem>>, vector<8x512xf32>
    %63 = arith.truncf %51 : vector<8x128xf32> to vector<8x128xbf16>
    %cst_27 = arith.constant dense<0.000000e+00> : vector<8x512xf32>
    %64 = tpu.matmul %63, %12, %cst_27 {dimension_numbers = #tpu.dot_dimension_numbers<[1], [0], [0], [1], [0, 0, 1, 1], [], []>} : vector<8x128xbf16>, vector<128x512xbf16>, vector<8x512xf32> -> vector<8x512xf32>
    %65 = arith.addf %62, %64 : vector<8x512xf32>
    %66 = vector.broadcast %16 : vector<1x512xf32> to vector<8x512xf32>
    %67 = arith.mulf %65, %66 : vector<8x512xf32>
    %68 = math.tanh %67 : vector<8x512xf32>
    %69 = vector.broadcast %17 : vector<1x512xf32> to vector<8x512xf32>
    %70 = arith.mulf %68, %69 : vector<8x512xf32>
    %71 = vector.broadcast %18 : vector<1x512xf32> to vector<8x512xf32>
    %72 = arith.addf %70, %71 : vector<8x512xf32>
    %73 = vector.extract_strided_slice %72 {offsets = [0, 0], sizes = [8, 128], strides = [1, 1]} : vector<8x512xf32> to vector<8x128xf32>
    %74 = vector.extract_strided_slice %72 {offsets = [0, 128], sizes = [8, 128], strides = [1, 1]} : vector<8x512xf32> to vector<8x128xf32>
    %75 = vector.extract_strided_slice %72 {offsets = [0, 256], sizes = [8, 128], strides = [1, 1]} : vector<8x512xf32> to vector<8x128xf32>
    %76 = vector.extract_strided_slice %72 {offsets = [0, 384], sizes = [8, 128], strides = [1, 1]} : vector<8x512xf32> to vector<8x128xf32>
    %77 = arith.mulf %74, %49 : vector<8x128xf32>
    %78 = arith.mulf %73, %75 : vector<8x128xf32>
    %79 = arith.addf %77, %78 : vector<8x128xf32>
    %80 = math.tanh %79 : vector<8x128xf32>
    %81 = arith.mulf %76, %80 : vector<8x128xf32>
    %82 = arith.truncf %81 : vector<8x128xf32> to vector<8x128xbf16>
    %83 = arith.index_cast %60 : i32 to index
    %c0_28 = arith.constant 0 : index
    %84 = vector.load %arg6[%83, %c0_28] : memref<64x128xbf16, #tpu.memory_space<vmem>>, vector<8x128xbf16>
    tpu.vector_store %arg6[%83, %c0_28], %82 {strides = array<i32>} : memref<64x128xbf16, #tpu.memory_space<vmem>>, vector<8x128xbf16>,
    %c2_i32_29 = arith.constant 2 : i32
    %c2_i32_30 = arith.constant 2 : i32
    %85 = arith.muli %c2_i32_30, %c2_i32_29 : i32
    %c7_i32_31 = arith.constant 7 : i32
    %86 = arith.subi %c7_i32_31, %85 : i32
    %87 = arith.muli %arg0, %86 : i32
    %88 = arith.addi %c2_i32_29, %87 : i32
    %c8_i32_32 = arith.constant 8 : i32
    %89 = arith.muli %88, %c8_i32_32 : i32
    %90 = tpu.assume_multiple %89, 8 : i32
    %91 = arith.index_cast %90 : i32 to index
    %c0_33 = arith.constant 0 : index
    %92 = vector.load %arg7[%91, %c0_33] : memref<64x512xf32, #tpu.memory_space<vmem>>, vector<8x512xf32>
    %93 = arith.truncf %81 : vector<8x128xf32> to vector<8x128xbf16>
    %cst_34 = arith.constant dense<0.000000e+00> : vector<8x512xf32>
    %94 = tpu.matmul %93, %12, %cst_34 {dimension_numbers = #tpu.dot_dimension_numbers<[1], [0], [0], [1], [0, 0, 1, 1], [], []>} : vector<8x128xbf16>, vector<128x512xbf16>, vector<8x512xf32> -> vector<8x512xf32>
    %95 = arith.addf %92, %94 : vector<8x512xf32>
    %96 = vector.broadcast %16 : vector<1x512xf32> to vector<8x512xf32>
    %97 = arith.mulf %95, %96 : vector<8x512xf32>
    %98 = math.tanh %97 : vector<8x512xf32>
    %99 = vector.broadcast %17 : vector<1x512xf32> to vector<8x512xf32>
    %100 = arith.mulf %98, %99 : vector<8x512xf32>
    %101 = vector.broadcast %18 : vector<1x512xf32> to vector<8x512xf32>
    %102 = arith.addf %100, %101 : vector<8x512xf32>
    %103 = vector.extract_strided_slice %102 {offsets = [0, 0], sizes = [8, 128], strides = [1, 1]} : vector<8x512xf32> to vector<8x128xf32>
    %104 = vector.extract_strided_slice %102 {offsets = [0, 128], sizes = [8, 128], strides = [1, 1]} : vector<8x512xf32> to vector<8x128xf32>
    %105 = vector.extract_strided_slice %102 {offsets = [0, 256], sizes = [8, 128], strides = [1, 1]} : vector<8x512xf32> to vector<8x128xf32>
    %106 = vector.extract_strided_slice %102 {offsets = [0, 384], sizes = [8, 128], strides = [1, 1]} : vector<8x512xf32> to vector<8x128xf32>
    %107 = arith.mulf %104, %79 : vector<8x128xf32>
    %108 = arith.mulf %103, %105 : vector<8x128xf32>
    %109 = arith.addf %107, %108 : vector<8x128xf32>
    %110 = math.tanh %109 : vector<8x128xf32>
    %111 = arith.mulf %106, %110 : vector<8x128xf32>
    %112 = arith.truncf %111 : vector<8x128xf32> to vector<8x128xbf16>
    %113 = arith.index_cast %90 : i32 to index
    %c0_35 = arith.constant 0 : index
    %114 = vector.load %arg6[%113, %c0_35] : memref<64x128xbf16, #tpu.memory_space<vmem>>, vector<8x128xbf16>
    tpu.vector_store %arg6[%113, %c0_35], %112 {strides = array<i32>} : memref<64x128xbf16, #tpu.memory_space<vmem>>, vector<8x128xbf16>,
    %c3_i32 = arith.constant 3 : i32
    %c2_i32_36 = arith.constant 2 : i32
    %115 = arith.muli %c2_i32_36, %c3_i32 : i32
    %c7_i32_37 = arith.constant 7 : i32
    %116 = arith.subi %c7_i32_37, %115 : i32
    %117 = arith.muli %arg0, %116 : i32
    %118 = arith.addi %c3_i32, %117 : i32
    %c8_i32_38 = arith.constant 8 : i32
    %119 = arith.muli %118, %c8_i32_38 : i32
    %120 = tpu.assume_multiple %119, 8 : i32
    %121 = arith.index_cast %120 : i32 to index
    %c0_39 = arith.constant 0 : index
    %122 = vector.load %arg7[%121, %c0_39] : memref<64x512xf32, #tpu.memory_space<vmem>>, vector<8x512xf32>
    %123 = arith.truncf %111 : vector<8x128xf32> to vector<8x128xbf16>
    %cst_40 = arith.constant dense<0.000000e+00> : vector<8x512xf32>
    %124 = tpu.matmul %123, %12, %cst_40 {dimension_numbers = #tpu.dot_dimension_numbers<[1], [0], [0], [1], [0, 0, 1, 1], [], []>} : vector<8x128xbf16>, vector<128x512xbf16>, vector<8x512xf32> -> vector<8x512xf32>
    %125 = arith.addf %122, %124 : vector<8x512xf32>
    %126 = vector.broadcast %16 : vector<1x512xf32> to vector<8x512xf32>
    %127 = arith.mulf %125, %126 : vector<8x512xf32>
    %128 = math.tanh %127 : vector<8x512xf32>
    %129 = vector.broadcast %17 : vector<1x512xf32> to vector<8x512xf32>
    %130 = arith.mulf %128, %129 : vector<8x512xf32>
    %131 = vector.broadcast %18 : vector<1x512xf32> to vector<8x512xf32>
    %132 = arith.addf %130, %131 : vector<8x512xf32>
    %133 = vector.extract_strided_slice %132 {offsets = [0, 0], sizes = [8, 128], strides = [1, 1]} : vector<8x512xf32> to vector<8x128xf32>
    %134 = vector.extract_strided_slice %132 {offsets = [0, 128], sizes = [8, 128], strides = [1, 1]} : vector<8x512xf32> to vector<8x128xf32>
    %135 = vector.extract_strided_slice %132 {offsets = [0, 256], sizes = [8, 128], strides = [1, 1]} : vector<8x512xf32> to vector<8x128xf32>
    %136 = vector.extract_strided_slice %132 {offsets = [0, 384], sizes = [8, 128], strides = [1, 1]} : vector<8x512xf32> to vector<8x128xf32>
    %137 = arith.mulf %134, %109 : vector<8x128xf32>
    %138 = arith.mulf %133, %135 : vector<8x128xf32>
    %139 = arith.addf %137, %138 : vector<8x128xf32>
    %140 = math.tanh %139 : vector<8x128xf32>
    %141 = arith.mulf %136, %140 : vector<8x128xf32>
    %142 = arith.truncf %141 : vector<8x128xf32> to vector<8x128xbf16>
    %143 = arith.index_cast %120 : i32 to index
    %c0_41 = arith.constant 0 : index
    %144 = vector.load %arg6[%143, %c0_41] : memref<64x128xbf16, #tpu.memory_space<vmem>>, vector<8x128xbf16>
    tpu.vector_store %arg6[%143, %c0_41], %142 {strides = array<i32>} : memref<64x128xbf16, #tpu.memory_space<vmem>>, vector<8x128xbf16>,
    %c4_i32 = arith.constant 4 : i32
    %c2_i32_42 = arith.constant 2 : i32
    %145 = arith.muli %c2_i32_42, %c4_i32 : i32
    %c7_i32_43 = arith.constant 7 : i32
    %146 = arith.subi %c7_i32_43, %145 : i32
    %147 = arith.muli %arg0, %146 : i32
    %148 = arith.addi %c4_i32, %147 : i32
    %c8_i32_44 = arith.constant 8 : i32
    %149 = arith.muli %148, %c8_i32_44 : i32
    %150 = tpu.assume_multiple %149, 8 : i32
    %151 = arith.index_cast %150 : i32 to index
    %c0_45 = arith.constant 0 : index
    %152 = vector.load %arg7[%151, %c0_45] : memref<64x512xf32, #tpu.memory_space<vmem>>, vector<8x512xf32>
    %153 = arith.truncf %141 : vector<8x128xf32> to vector<8x128xbf16>
    %cst_46 = arith.constant dense<0.000000e+00> : vector<8x512xf32>
    %154 = tpu.matmul %153, %12, %cst_46 {dimension_numbers = #tpu.dot_dimension_numbers<[1], [0], [0], [1], [0, 0, 1, 1], [], []>} : vector<8x128xbf16>, vector<128x512xbf16>, vector<8x512xf32> -> vector<8x512xf32>
    %155 = arith.addf %152, %154 : vector<8x512xf32>
    %156 = vector.broadcast %16 : vector<1x512xf32> to vector<8x512xf32>
    %157 = arith.mulf %155, %156 : vector<8x512xf32>
    %158 = math.tanh %157 : vector<8x512xf32>
    %159 = vector.broadcast %17 : vector<1x512xf32> to vector<8x512xf32>
    %160 = arith.mulf %158, %159 : vector<8x512xf32>
    %161 = vector.broadcast %18 : vector<1x512xf32> to vector<8x512xf32>
    %162 = arith.addf %160, %161 : vector<8x512xf32>
    %163 = vector.extract_strided_slice %162 {offsets = [0, 0], sizes = [8, 128], strides = [1, 1]} : vector<8x512xf32> to vector<8x128xf32>
    %164 = vector.extract_strided_slice %162 {offsets = [0, 128], sizes = [8, 128], strides = [1, 1]} : vector<8x512xf32> to vector<8x128xf32>
    %165 = vector.extract_strided_slice %162 {offsets = [0, 256], sizes = [8, 128], strides = [1, 1]} : vector<8x512xf32> to vector<8x128xf32>
    %166 = vector.extract_strided_slice %162 {offsets = [0, 384], sizes = [8, 128], strides = [1, 1]} : vector<8x512xf32> to vector<8x128xf32>
    %167 = arith.mulf %164, %139 : vector<8x128xf32>
    %168 = arith.mulf %163, %165 : vector<8x128xf32>
    %169 = arith.addf %167, %168 : vector<8x128xf32>
    %170 = math.tanh %169 : vector<8x128xf32>
    %171 = arith.mulf %166, %170 : vector<8x128xf32>
    %172 = arith.truncf %171 : vector<8x128xf32> to vector<8x128xbf16>
    %173 = arith.index_cast %150 : i32 to index
    %c0_47 = arith.constant 0 : index
    %174 = vector.load %arg6[%173, %c0_47] : memref<64x128xbf16, #tpu.memory_space<vmem>>, vector<8x128xbf16>
    tpu.vector_store %arg6[%173, %c0_47], %172 {strides = array<i32>} : memref<64x128xbf16, #tpu.memory_space<vmem>>, vector<8x128xbf16>,
    %c5_i32 = arith.constant 5 : i32
    %c2_i32_48 = arith.constant 2 : i32
    %175 = arith.muli %c2_i32_48, %c5_i32 : i32
    %c7_i32_49 = arith.constant 7 : i32
    %176 = arith.subi %c7_i32_49, %175 : i32
    %177 = arith.muli %arg0, %176 : i32
    %178 = arith.addi %c5_i32, %177 : i32
    %c8_i32_50 = arith.constant 8 : i32
    %179 = arith.muli %178, %c8_i32_50 : i32
    %180 = tpu.assume_multiple %179, 8 : i32
    %181 = arith.index_cast %180 : i32 to index
    %c0_51 = arith.constant 0 : index
    %182 = vector.load %arg7[%181, %c0_51] : memref<64x512xf32, #tpu.memory_space<vmem>>, vector<8x512xf32>
    %183 = arith.truncf %171 : vector<8x128xf32> to vector<8x128xbf16>
    %cst_52 = arith.constant dense<0.000000e+00> : vector<8x512xf32>
    %184 = tpu.matmul %183, %12, %cst_52 {dimension_numbers = #tpu.dot_dimension_numbers<[1], [0], [0], [1], [0, 0, 1, 1], [], []>} : vector<8x128xbf16>, vector<128x512xbf16>, vector<8x512xf32> -> vector<8x512xf32>
    %185 = arith.addf %182, %184 : vector<8x512xf32>
    %186 = vector.broadcast %16 : vector<1x512xf32> to vector<8x512xf32>
    %187 = arith.mulf %185, %186 : vector<8x512xf32>
    %188 = math.tanh %187 : vector<8x512xf32>
    %189 = vector.broadcast %17 : vector<1x512xf32> to vector<8x512xf32>
    %190 = arith.mulf %188, %189 : vector<8x512xf32>
    %191 = vector.broadcast %18 : vector<1x512xf32> to vector<8x512xf32>
    %192 = arith.addf %190, %191 : vector<8x512xf32>
    %193 = vector.extract_strided_slice %192 {offsets = [0, 0], sizes = [8, 128], strides = [1, 1]} : vector<8x512xf32> to vector<8x128xf32>
    %194 = vector.extract_strided_slice %192 {offsets = [0, 128], sizes = [8, 128], strides = [1, 1]} : vector<8x512xf32> to vector<8x128xf32>
    %195 = vector.extract_strided_slice %192 {offsets = [0, 256], sizes = [8, 128], strides = [1, 1]} : vector<8x512xf32> to vector<8x128xf32>
    %196 = vector.extract_strided_slice %192 {offsets = [0, 384], sizes = [8, 128], strides = [1, 1]} : vector<8x512xf32> to vector<8x128xf32>
    %197 = arith.mulf %194, %169 : vector<8x128xf32>
    %198 = arith.mulf %193, %195 : vector<8x128xf32>
    %199 = arith.addf %197, %198 : vector<8x128xf32>
    %200 = math.tanh %199 : vector<8x128xf32>
    %201 = arith.mulf %196, %200 : vector<8x128xf32>
    %202 = arith.truncf %201 : vector<8x128xf32> to vector<8x128xbf16>
    %203 = arith.index_cast %180 : i32 to index
    %c0_53 = arith.constant 0 : index
    %204 = vector.load %arg6[%203, %c0_53] : memref<64x128xbf16, #tpu.memory_space<vmem>>, vector<8x128xbf16>
    tpu.vector_store %arg6[%203, %c0_53], %202 {strides = array<i32>} : memref<64x128xbf16, #tpu.memory_space<vmem>>, vector<8x128xbf16>,
    %c6_i32 = arith.constant 6 : i32
    %c2_i32_54 = arith.constant 2 : i32
    %205 = arith.muli %c2_i32_54, %c6_i32 : i32
    %c7_i32_55 = arith.constant 7 : i32
    %206 = arith.subi %c7_i32_55, %205 : i32
    %207 = arith.muli %arg0, %206 : i32
    %208 = arith.addi %c6_i32, %207 : i32
    %c8_i32_56 = arith.constant 8 : i32
    %209 = arith.muli %208, %c8_i32_56 : i32
    %210 = tpu.assume_multiple %209, 8 : i32
    %211 = arith.index_cast %210 : i32 to index
    %c0_57 = arith.constant 0 : index
    %212 = vector.load %arg7[%211, %c0_57] : memref<64x512xf32, #tpu.memory_space<vmem>>, vector<8x512xf32>
    %213 = arith.truncf %201 : vector<8x128xf32> to vector<8x128xbf16>
    %cst_58 = arith.constant dense<0.000000e+00> : vector<8x512xf32>
    %214 = tpu.matmul %213, %12, %cst_58 {dimension_numbers = #tpu.dot_dimension_numbers<[1], [0], [0], [1], [0, 0, 1, 1], [], []>} : vector<8x128xbf16>, vector<128x512xbf16>, vector<8x512xf32> -> vector<8x512xf32>
    %215 = arith.addf %212, %214 : vector<8x512xf32>
    %216 = vector.broadcast %16 : vector<1x512xf32> to vector<8x512xf32>
    %217 = arith.mulf %215, %216 : vector<8x512xf32>
    %218 = math.tanh %217 : vector<8x512xf32>
    %219 = vector.broadcast %17 : vector<1x512xf32> to vector<8x512xf32>
    %220 = arith.mulf %218, %219 : vector<8x512xf32>
    %221 = vector.broadcast %18 : vector<1x512xf32> to vector<8x512xf32>
    %222 = arith.addf %220, %221 : vector<8x512xf32>
    %223 = vector.extract_strided_slice %222 {offsets = [0, 0], sizes = [8, 128], strides = [1, 1]} : vector<8x512xf32> to vector<8x128xf32>
    %224 = vector.extract_strided_slice %222 {offsets = [0, 128], sizes = [8, 128], strides = [1, 1]} : vector<8x512xf32> to vector<8x128xf32>
    %225 = vector.extract_strided_slice %222 {offsets = [0, 256], sizes = [8, 128], strides = [1, 1]} : vector<8x512xf32> to vector<8x128xf32>
    %226 = vector.extract_strided_slice %222 {offsets = [0, 384], sizes = [8, 128], strides = [1, 1]} : vector<8x512xf32> to vector<8x128xf32>
    %227 = arith.mulf %224, %199 : vector<8x128xf32>
    %228 = arith.mulf %223, %225 : vector<8x128xf32>
    %229 = arith.addf %227, %228 : vector<8x128xf32>
    %230 = math.tanh %229 : vector<8x128xf32>
    %231 = arith.mulf %226, %230 : vector<8x128xf32>
    %232 = arith.truncf %231 : vector<8x128xf32> to vector<8x128xbf16>
    %233 = arith.index_cast %210 : i32 to index
    %c0_59 = arith.constant 0 : index
    %234 = vector.load %arg6[%233, %c0_59] : memref<64x128xbf16, #tpu.memory_space<vmem>>, vector<8x128xbf16>
    tpu.vector_store %arg6[%233, %c0_59], %232 {strides = array<i32>} : memref<64x128xbf16, #tpu.memory_space<vmem>>, vector<8x128xbf16>,
    %c7_i32_60 = arith.constant 7 : i32
    %c2_i32_61 = arith.constant 2 : i32
    %235 = arith.muli %c2_i32_61, %c7_i32_60 : i32
    %c7_i32_62 = arith.constant 7 : i32
    %236 = arith.subi %c7_i32_62, %235 : i32
    %237 = arith.muli %arg0, %236 : i32
    %238 = arith.addi %c7_i32_60, %237 : i32
    %c8_i32_63 = arith.constant 8 : i32
    %239 = arith.muli %238, %c8_i32_63 : i32
    %240 = tpu.assume_multiple %239, 8 : i32
    %241 = arith.index_cast %240 : i32 to index
    %c0_64 = arith.constant 0 : index
    %242 = vector.load %arg7[%241, %c0_64] : memref<64x512xf32, #tpu.memory_space<vmem>>, vector<8x512xf32>
    %243 = arith.truncf %231 : vector<8x128xf32> to vector<8x128xbf16>
    %cst_65 = arith.constant dense<0.000000e+00> : vector<8x512xf32>
    %244 = tpu.matmul %243, %12, %cst_65 {dimension_numbers = #tpu.dot_dimension_numbers<[1], [0], [0], [1], [0, 0, 1, 1], [], []>} : vector<8x128xbf16>, vector<128x512xbf16>, vector<8x512xf32> -> vector<8x512xf32>
    %245 = arith.addf %242, %244 : vector<8x512xf32>
    %246 = vector.broadcast %16 : vector<1x512xf32> to vector<8x512xf32>
    %247 = arith.mulf %245, %246 : vector<8x512xf32>
    %248 = math.tanh %247 : vector<8x512xf32>
    %249 = vector.broadcast %17 : vector<1x512xf32> to vector<8x512xf32>
    %250 = arith.mulf %248, %249 : vector<8x512xf32>
    %251 = vector.broadcast %18 : vector<1x512xf32> to vector<8x512xf32>
    %252 = arith.addf %250, %251 : vector<8x512xf32>
    %253 = vector.extract_strided_slice %252 {offsets = [0, 0], sizes = [8, 128], strides = [1, 1]} : vector<8x512xf32> to vector<8x128xf32>
    %254 = vector.extract_strided_slice %252 {offsets = [0, 128], sizes = [8, 128], strides = [1, 1]} : vector<8x512xf32> to vector<8x128xf32>
    %255 = vector.extract_strided_slice %252 {offsets = [0, 256], sizes = [8, 128], strides = [1, 1]} : vector<8x512xf32> to vector<8x128xf32>
    %256 = vector.extract_strided_slice %252 {offsets = [0, 384], sizes = [8, 128], strides = [1, 1]} : vector<8x512xf32> to vector<8x128xf32>
    %257 = arith.mulf %254, %229 : vector<8x128xf32>
    %258 = arith.mulf %253, %255 : vector<8x128xf32>
    %259 = arith.addf %257, %258 : vector<8x128xf32>
    %260 = math.tanh %259 : vector<8x128xf32>
    %261 = arith.mulf %256, %260 : vector<8x128xf32>
    %262 = arith.truncf %261 : vector<8x128xf32> to vector<8x128xbf16>
    %263 = arith.index_cast %240 : i32 to index
    %c0_66 = arith.constant 0 : index
    %264 = vector.load %arg6[%263, %c0_66] : memref<64x128xbf16, #tpu.memory_space<vmem>>, vector<8x128xbf16>
    tpu.vector_store %arg6[%263, %c0_66], %262 {strides = array<i32>} : memref<64x128xbf16, #tpu.memory_space<vmem>>, vector<8x128xbf16>,
    %c8_i32_67 = arith.constant 8 : i32
    %265 = arith.index_cast %arg0 : i32 to index
    %c0_68 = arith.constant 0 : index
    %c0_69 = arith.constant 0 : index
    %266 = vector.load %arg8[%265, %c0_68, %c0_69] : memref<2x8x128xf32, #tpu.memory_space<vmem>>, vector<1x8x128xf32>
    %267 = vector.shape_cast %266 : vector<1x8x128xf32> to vector<8x128xf32>
    %268 = vector.shape_cast %261 : vector<8x128xf32> to vector<1x8x128xf32>
    tpu.vector_store %arg8[%265, %c0_68, %c0_69], %268 {strides = array<i32>} : memref<2x8x128xf32, #tpu.memory_space<vmem>>, vector<1x8x128xf32>,
    %269 = arith.index_cast %arg0 : i32 to index
    %c0_70 = arith.constant 0 : index
    %c0_71 = arith.constant 0 : index
    %270 = vector.load %arg9[%269, %c0_70, %c0_71] : memref<2x8x128xf32, #tpu.memory_space<vmem>>, vector<1x8x128xf32>
    %271 = vector.shape_cast %270 : vector<1x8x128xf32> to vector<8x128xf32>
    %272 = vector.shape_cast %259 : vector<8x128xf32> to vector<1x8x128xf32>
    tpu.vector_store %arg9[%269, %c0_70, %c0_71], %272 {strides = array<i32>} : memref<2x8x128xf32, #tpu.memory_space<vmem>>, vector<1x8x128xf32>,
    return
  }
  func.func @transform_0(%arg0: i32, %arg1: i32) -> (i32, i32) {
    %c2_i32 = arith.constant 2 : i32
    %0 = arith.muli %c2_i32, %arg1 : i32
    %c0_i32 = arith.constant 0 : i32
    %1 = arith.subi %c0_i32, %0 : i32
    %2 = arith.muli %arg0, %1 : i32
    %3 = arith.addi %2, %arg1 : i32
    %c0_i32_0 = arith.constant 0 : i32
    %c0_i32_1 = arith.constant 0 : i32
    return %3, %c0_i32_0 : i32, i32
  }
  func.func @transform_1(%arg0: i32, %arg1: i32) -> (i32, i32) {
    %c0_i32 = arith.constant 0 : i32
    %c0_i32_0 = arith.constant 0 : i32
    return %c0_i32, %arg0 : i32, i32
  }
  func.func @transform_2(%arg0: i32, %arg1: i32) -> (i32, i32, i32) {
    %c0_i32 = arith.constant 0 : i32
    %c0_i32_0 = arith.constant 0 : i32
    %c0_i32_1 = arith.constant 0 : i32
    return %arg0, %c0_i32, %c0_i32_0 : i32, i32, i32
  }
  func.func @transform_3(%arg0: i32, %arg1: i32) -> (i32, i32, i32) {
    %c0_i32 = arith.constant 0 : i32
    %c0_i32_0 = arith.constant 0 : i32
    %c0_i32_1 = arith.constant 0 : i32
    return %arg0, %c0_i32, %c0_i32_0 : i32, i32, i32
  }
  func.func @transform_4(%arg0: i32, %arg1: i32) -> (i32, i32) {
    %c2_i32 = arith.constant 2 : i32
    %0 = arith.muli %c2_i32, %arg1 : i32
    %c0_i32 = arith.constant 0 : i32
    %1 = arith.subi %c0_i32, %0 : i32
    %2 = arith.muli %arg0, %1 : i32
    %3 = arith.addi %2, %arg1 : i32
    %c0_i32_0 = arith.constant 0 : i32
    return %3, %arg0 : i32, i32
  }
}

module attributes {stable_mosaic.version = 11 : i64} {
  func.func @lstm_layer_kernel(%arg0: i32, %arg1: i32, %arg2: memref<64x256xbf16, #tpu.memory_space<vmem>>, %arg3: memref<256x512xbf16, #tpu.memory_space<vmem>>, %arg4: memref<1x128x512xbf16, #tpu.memory_space<vmem>>, %arg5: memref<1x1x512xf32, #tpu.memory_space<vmem>>, %arg6: memref<64x128xbf16, #tpu.memory_space<vmem>>, %arg7: memref<64x512xf32, #tpu.memory_space<vmem>>, %arg8: memref<2x8x128xf32, #tpu.memory_space<vmem>>, %arg9: memref<2x8x128xf32, #tpu.memory_space<vmem>>) attributes {dimension_semantics = [#tpu.dimension_semantics<parallel>, #tpu.dimension_semantics<arbitrary>], iteration_bounds = array<i64: 2, 1>, scalar_prefetch = 0 : i64, scratch_operands = 3 : i64, tpu.core_type = #tpu.core_type<tc>, window_params = [{transform_indices = @transform_0, window_bounds = array<i64: 64, 256>}, {transform_indices = @transform_1, window_bounds = array<i64: 256, 512>}, {transform_indices = @transform_2, window_bounds = array<i64: 1, 128, 512>}, {transform_indices = @transform_3, window_bounds = array<i64: 1, 1, 512>}, {transform_indices = @transform_4, window_bounds = array<i64: 64, 128>}]} {
    %c0 = arith.constant 0 : index
    %c0_0 = arith.constant 0 : index
    %0 = vector.load %arg2[%c0, %c0_0] : memref<64x256xbf16, #tpu.memory_space<vmem>>, vector<64x256xbf16>
    %c0_1 = arith.constant 0 : index
    %c0_2 = arith.constant 0 : index
    %1 = vector.load %arg3[%c0_1, %c0_2] : memref<256x512xbf16, #tpu.memory_space<vmem>>, vector<256x512xbf16>
    %cst = arith.constant dense<0.000000e+00> : vector<64x512xf32>
    %2 = tpu.matmul %0, %1, %cst {dimension_numbers = #tpu.dot_dimension_numbers<[1], [0], [0], [1], [0, 0, 1, 1], [], []>} : vector<64x256xbf16>, vector<256x512xbf16>, vector<64x512xf32> -> vector<64x512xf32>
    %c0_3 = arith.constant 0 : index
    %c0_4 = arith.constant 0 : index
    %c0_5 = arith.constant 0 : index
    %3 = vector.load %arg5[%c0_3, %c0_4, %c0_5] : memref<1x1x512xf32, #tpu.memory_space<vmem>>, vector<1x1x512xf32>
    %4 = vector.shape_cast %3 : vector<1x1x512xf32> to vector<1x512xf32>
    %5 = vector.broadcast %4 : vector<1x512xf32> to vector<64x512xf32>
    %6 = arith.addf %2, %5 : vector<64x512xf32>
    %c0_6 = arith.constant 0 : index
    %c0_7 = arith.constant 0 : index
    %7 = vector.load %arg7[%c0_6, %c0_7] : memref<64x512xf32, #tpu.memory_space<vmem>>, vector<64x512xf32>
    tpu.vector_store %arg7[%c0_6, %c0_7], %6 {strides = array<i32>} : memref<64x512xf32, #tpu.memory_space<vmem>>, vector<64x512xf32>,
    %c0_i32 = arith.constant 0 : i32
    %8 = arith.cmpi eq, %arg1, %c0_i32 : i32
    %9 = arith.extui %8 : i1 to i32
    %c0_i32_8 = arith.constant 0 : i32
    %10 = arith.cmpi ne, %9, %c0_i32_8 : i32
    scf.if %10 {
      %cst_72 = arith.constant 0.000000e+00 : f32
      %273 = vector.broadcast %cst_72 : f32 to vector<8x128xf32>
      %274 = arith.index_cast %arg0 : i32 to index
      %c0_73 = arith.constant 0 : index
      %c0_74 = arith.constant 0 : index
      %275 = vector.load %arg8[%274, %c0_73, %c0_74] : memref<2x8x128xf32, #tpu.memory_space<vmem>>, vector<1x8x128xf32>
      %276 = vector.shape_cast %275 : vector<1x8x128xf32> to vector<8x128xf32>
      %277 = vector.shape_cast %273 : vector<8x128xf32> to vector<1x8x128xf32>
      tpu.vector_store %arg8[%274, %c0_73, %c0_74], %277 {strides = array<i32>} : memref<2x8x128xf32, #tpu.memory_space<vmem>>, vector<1x8x128xf32>,
      %cst_75 = arith.constant 0.000000e+00 : f32
      %278 = vector.broadcast %cst_75 : f32 to vector<8x128xf32>
      %279 = arith.index_cast %arg0 : i32 to index
      %c0_76 = arith.constant 0 : index
      %c0_77 = arith.constant 0 : index
      %280 = vector.load %arg9[%279, %c0_76, %c0_77] : memref<2x8x128xf32, #tpu.memory_space<vmem>>, vector<1x8x128xf32>
      %281 = vector.shape_cast %280 : vector<1x8x128xf32> to vector<8x128xf32>
      %282 = vector.shape_cast %278 : vector<8x128xf32> to vector<1x8x128xf32>
      tpu.vector_store %arg9[%279, %c0_76, %c0_77], %282 {strides = array<i32>} : memref<2x8x128xf32, #tpu.memory_space<vmem>>, vector<1x8x128xf32>,
    } else {
    }
    %c0_9 = arith.constant 0 : index
    %c0_10 = arith.constant 0 : index
    %c0_11 = arith.constant 0 : index
    %11 = vector.load %arg4[%c0_9, %c0_10, %c0_11] : memref<1x128x512xbf16, #tpu.memory_space<vmem>>, vector<1x128x512xbf16>
    %12 = vector.shape_cast %11 : vector<1x128x512xbf16> to vector<128x512xbf16>
    %cst_12 = arith.constant 5.000000e-01 : f32
    %13 = vector.broadcast %cst_12 : f32 to vector<1x128xf32>
    %cst_13 = arith.constant 1.000000e+00 : f32
    %14 = vector.broadcast %cst_13 : f32 to vector<1x128xf32>
    %cst_14 = arith.constant 0.000000e+00 : f32
    %15 = vector.broadcast %cst_14 : f32 to vector<1x128xf32>
    %16 = tpu.concatenate %13, %13, %14, %13 in 1 : vector<1x128xf32>, vector<1x128xf32>, vector<1x128xf32>, vector<1x128xf32> -> vector<1x512xf32>
    %17 = tpu.concatenate %13, %13, %14, %13 in 1 : vector<1x128xf32>, vector<1x128xf32>, vector<1x128xf32>, vector<1x128xf32> -> vector<1x512xf32>
    %18 = tpu.concatenate %13, %13, %15, %13 in 1 : vector<1x128xf32>, vector<1x128xf32>, vector<1x128xf32>, vector<1x128xf32> -> vector<1x512xf32>
    %19 = arith.index_cast %arg0 : i32 to index
    %c0_15 = arith.constant 0 : index
    %c0_16 = arith.constant 0 : index
    %20 = vector.load %arg8[%19, %c0_15, %c0_16] : memref<2x8x128xf32, #tpu.memory_space<vmem>>, vector<1x8x128xf32>
    %21 = vector.shape_cast %20 : vector<1x8x128xf32> to vector<8x128xf32>
    %22 = arith.index_cast %arg0 : i32 to index
    %c0_17 = arith.constant 0 : index
    %c0_18 = arith.constant 0 : index
    %23 = vector.load %arg9[%22, %c0_17, %c0_18] : memref<2x8x128xf32, #tpu.memory_space<vmem>>, vector<1x8x128xf32>
    %24 = vector.shape_cast %23 : vector<1x8x128xf32> to vector<8x128xf32>
    %c0_i32_19 = arith.constant 0 : i32
    %c2_i32 = arith.constant 2 : i32
    %25 = arith.muli %c2_i32, %c0_i32_19 : i32
    %c7_i32 = arith.constant 7 : i32
    %26 = arith.subi %c7_i32, %25 : i32
    %27 = arith.muli %arg0, %26 : i32
    %28 = arith.addi %c0_i32_19, %27 : i32
    %c8_i32 = arith.constant 8 : i32
    %29 = arith.muli %28, %c8_i32 : i32
    %30 = tpu.assume_multiple %29, 8 : i32
    %31 = arith.index_cast %30 : i32 to index
    %c0_20 = arith.constant 0 : index
    %32 = vector.load %arg7[%31, %c0_20] : memref<64x512xf32, #tpu.memory_space<vmem>>, vector<8x512xf32>
    %33 = arith.truncf %21 : vector<8x128xf32> to vector<8x128xbf16>
    %cst_21 = arith.constant dense<0.000000e+00> : vector<8x512xf32>
    %34 = tpu.matmul %33, %12, %cst_21 {dimension_numbers = #tpu.dot_dimension_numbers<[1], [0], [0], [1], [0, 0, 1, 1], [], []>} : vector<8x128xbf16>, vector<128x512xbf16>, vector<8x512xf32> -> vector<8x512xf32>
    %35 = arith.addf %32, %34 : vector<8x512xf32>
    %36 = vector.broadcast %16 : vector<1x512xf32> to vector<8x512xf32>
    %37 = arith.mulf %35, %36 : vector<8x512xf32>
    %38 = math.tanh %37 : vector<8x512xf32>
    %39 = vector.broadcast %17 : vector<1x512xf32> to vector<8x512xf32>
    %40 = arith.mulf %38, %39 : vector<8x512xf32>
    %41 = vector.broadcast %18 : vector<1x512xf32> to vector<8x512xf32>
    %42 = arith.addf %40, %41 : vector<8x512xf32>
    %43 = vector.extract_strided_slice %42 {offsets = [0, 0], sizes = [8, 128], strides = [1, 1]} : vector<8x512xf32> to vector<8x128xf32>
    %44 = vector.extract_strided_slice %42 {offsets = [0, 128], sizes = [8, 128], strides = [1, 1]} : vector<8x512xf32> to vector<8x128xf32>
    %45 = vector.extract_strided_slice %42 {offsets = [0, 256], sizes = [8, 128], strides = [1, 1]} : vector<8x512xf32> to vector<8x128xf32>
    %46 = vector.extract_strided_slice %42 {offsets = [0, 384], sizes = [8, 128], strides = [1, 1]} : vector<8x512xf32> to vector<8x128xf32>
    %47 = arith.mulf %44, %24 : vector<8x128xf32>
    %48 = arith.mulf %43, %45 : vector<8x128xf32>
    %49 = arith.addf %47, %48 : vector<8x128xf32>
    %50 = math.tanh %49 : vector<8x128xf32>
    %51 = arith.mulf %46, %50 : vector<8x128xf32>
    %52 = arith.truncf %51 : vector<8x128xf32> to vector<8x128xbf16>
    %53 = arith.index_cast %30 : i32 to index
    %c0_22 = arith.constant 0 : index
    %54 = vector.load %arg6[%53, %c0_22] : memref<64x128xbf16, #tpu.memory_space<vmem>>, vector<8x128xbf16>
    tpu.vector_store %arg6[%53, %c0_22], %52 {strides = array<i32>} : memref<64x128xbf16, #tpu.memory_space<vmem>>, vector<8x128xbf16>,
    %c1_i32 = arith.constant 1 : i32
    %c2_i32_23 = arith.constant 2 : i32
    %55 = arith.muli %c2_i32_23, %c1_i32 : i32
    %c7_i32_24 = arith.constant 7 : i32
    %56 = arith.subi %c7_i32_24, %55 : i32
    %57 = arith.muli %arg0, %56 : i32
    %58 = arith.addi %c1_i32, %57 : i32
    %c8_i32_25 = arith.constant 8 : i32
    %59 = arith.muli %58, %c8_i32_25 : i32
    %60 = tpu.assume_multiple %59, 8 : i32
    %61 = arith.index_cast %60 : i32 to index
    %c0_26 = arith.constant 0 : index
    %62 = vector.load %arg7[%61, %c0_26] : memref<64x512xf32, #tpu.memory_space<vmem>>, vector<8x512xf32>
    %63 = arith.truncf %51 : vector<8x128xf32> to vector<8x128xbf16>
    %cst_27 = arith.constant dense<0.000000e+00> : vector<8x512xf32>
    %64 = tpu.matmul %63, %12, %cst_27 {dimension_numbers = #tpu.dot_dimension_numbers<[1], [0], [0], [1], [0, 0, 1, 1], [], []>} : vector<8x128xbf16>, vector<128x512xbf16>, vector<8x512xf32> -> vector<8x512xf32>
    %65 = arith.addf %62, %64 : vector<8x512xf32>
    %66 = vector.broadcast %16 : vector<1x512xf32> to vector<8x512xf32>
    %67 = arith.mulf %65, %66 : vector<8x512xf32>
    %68 = math.tanh %67 : vector<8x512xf32>
    %69 = vector.broadcast %17 : vector<1x512xf32> to vector<8x512xf32>
    %70 = arith.mulf %68, %69 : vector<8x512xf32>
    %71 = vector.broadcast %18 : vector<1x512xf32> to vector<8x512xf32>
    %72 = arith.addf %70, %71 : vector<8x512xf32>
    %73 = vector.extract_strided_slice %72 {offsets = [0, 0], sizes = [8, 128], strides = [1, 1]} : vector<8x512xf32> to vector<8x128xf32>
    %74 = vector.extract_strided_slice %72 {offsets = [0, 128], sizes = [8, 128], strides = [1, 1]} : vector<8x512xf32> to vector<8x128xf32>
    %75 = vector.extract_strided_slice %72 {offsets = [0, 256], sizes = [8, 128], strides = [1, 1]} : vector<8x512xf32> to vector<8x128xf32>
    %76 = vector.extract_strided_slice %72 {offsets = [0, 384], sizes = [8, 128], strides = [1, 1]} : vector<8x512xf32> to vector<8x128xf32>
    %77 = arith.mulf %74, %49 : vector<8x128xf32>
    %78 = arith.mulf %73, %75 : vector<8x128xf32>
    %79 = arith.addf %77, %78 : vector<8x128xf32>
    %80 = math.tanh %79 : vector<8x128xf32>
    %81 = arith.mulf %76, %80 : vector<8x128xf32>
    %82 = arith.truncf %81 : vector<8x128xf32> to vector<8x128xbf16>
    %83 = arith.index_cast %60 : i32 to index
    %c0_28 = arith.constant 0 : index
    %84 = vector.load %arg6[%83, %c0_28] : memref<64x128xbf16, #tpu.memory_space<vmem>>, vector<8x128xbf16>
    tpu.vector_store %arg6[%83, %c0_28], %82 {strides = array<i32>} : memref<64x128xbf16, #tpu.memory_space<vmem>>, vector<8x128xbf16>,
    %c2_i32_29 = arith.constant 2 : i32
    %c2_i32_30 = arith.constant 2 : i32
    %85 = arith.muli %c2_i32_30, %c2_i32_29 : i32
    %c7_i32_31 = arith.constant 7 : i32
    %86 = arith.subi %c7_i32_31, %85 : i32
    %87 = arith.muli %arg0, %86 : i32
    %88 = arith.addi %c2_i32_29, %87 : i32
    %c8_i32_32 = arith.constant 8 : i32
    %89 = arith.muli %88, %c8_i32_32 : i32
    %90 = tpu.assume_multiple %89, 8 : i32
    %91 = arith.index_cast %90 : i32 to index
    %c0_33 = arith.constant 0 : index
    %92 = vector.load %arg7[%91, %c0_33] : memref<64x512xf32, #tpu.memory_space<vmem>>, vector<8x512xf32>
    %93 = arith.truncf %81 : vector<8x128xf32> to vector<8x128xbf16>
    %cst_34 = arith.constant dense<0.000000e+00> : vector<8x512xf32>
    %94 = tpu.matmul %93, %12, %cst_34 {dimension_numbers = #tpu.dot_dimension_numbers<[1], [0], [0], [1], [0, 0, 1, 1], [], []>} : vector<8x128xbf16>, vector<128x512xbf16>, vector<8x512xf32> -> vector<8x512xf32>
    %95 = arith.addf %92, %94 : vector<8x512xf32>
    %96 = vector.broadcast %16 : vector<1x512xf32> to vector<8x512xf32>
    %97 = arith.mulf %95, %96 : vector<8x512xf32>
    %98 = math.tanh %97 : vector<8x512xf32>
    %99 = vector.broadcast %17 : vector<1x512xf32> to vector<8x512xf32>
    %100 = arith.mulf %98, %99 : vector<8x512xf32>
    %101 = vector.broadcast %18 : vector<1x512xf32> to vector<8x512xf32>
    %102 = arith.addf %100, %101 : vector<8x512xf32>
    %103 = vector.extract_strided_slice %102 {offsets = [0, 0], sizes = [8, 128], strides = [1, 1]} : vector<8x512xf32> to vector<8x128xf32>
    %104 = vector.extract_strided_slice %102 {offsets = [0, 128], sizes = [8, 128], strides = [1, 1]} : vector<8x512xf32> to vector<8x128xf32>
    %105 = vector.extract_strided_slice %102 {offsets = [0, 256], sizes = [8, 128], strides = [1, 1]} : vector<8x512xf32> to vector<8x128xf32>
    %106 = vector.extract_strided_slice %102 {offsets = [0, 384], sizes = [8, 128], strides = [1, 1]} : vector<8x512xf32> to vector<8x128xf32>
    %107 = arith.mulf %104, %79 : vector<8x128xf32>
    %108 = arith.mulf %103, %105 : vector<8x128xf32>
    %109 = arith.addf %107, %108 : vector<8x128xf32>
    %110 = math.tanh %109 : vector<8x128xf32>
    %111 = arith.mulf %106, %110 : vector<8x128xf32>
    %112 = arith.truncf %111 : vector<8x128xf32> to vector<8x128xbf16>
    %113 = arith.index_cast %90 : i32 to index
    %c0_35 = arith.constant 0 : index
    %114 = vector.load %arg6[%113, %c0_35] : memref<64x128xbf16, #tpu.memory_space<vmem>>, vector<8x128xbf16>
    tpu.vector_store %arg6[%113, %c0_35], %112 {strides = array<i32>} : memref<64x128xbf16, #tpu.memory_space<vmem>>, vector<8x128xbf16>,
    %c3_i32 = arith.constant 3 : i32
    %c2_i32_36 = arith.constant 2 : i32
    %115 = arith.muli %c2_i32_36, %c3_i32 : i32
    %c7_i32_37 = arith.constant 7 : i32
    %116 = arith.subi %c7_i32_37, %115 : i32
    %117 = arith.muli %arg0, %116 : i32
    %118 = arith.addi %c3_i32, %117 : i32
    %c8_i32_38 = arith.constant 8 : i32
    %119 = arith.muli %118, %c8_i32_38 : i32
    %120 = tpu.assume_multiple %119, 8 : i32
    %121 = arith.index_cast %120 : i32 to index
    %c0_39 = arith.constant 0 : index
    %122 = vector.load %arg7[%121, %c0_39] : memref<64x512xf32, #tpu.memory_space<vmem>>, vector<8x512xf32>
    %123 = arith.truncf %111 : vector<8x128xf32> to vector<8x128xbf16>
    %cst_40 = arith.constant dense<0.000000e+00> : vector<8x512xf32>
    %124 = tpu.matmul %123, %12, %cst_40 {dimension_numbers = #tpu.dot_dimension_numbers<[1], [0], [0], [1], [0, 0, 1, 1], [], []>} : vector<8x128xbf16>, vector<128x512xbf16>, vector<8x512xf32> -> vector<8x512xf32>
    %125 = arith.addf %122, %124 : vector<8x512xf32>
    %126 = vector.broadcast %16 : vector<1x512xf32> to vector<8x512xf32>
    %127 = arith.mulf %125, %126 : vector<8x512xf32>
    %128 = math.tanh %127 : vector<8x512xf32>
    %129 = vector.broadcast %17 : vector<1x512xf32> to vector<8x512xf32>
    %130 = arith.mulf %128, %129 : vector<8x512xf32>
    %131 = vector.broadcast %18 : vector<1x512xf32> to vector<8x512xf32>
    %132 = arith.addf %130, %131 : vector<8x512xf32>
    %133 = vector.extract_strided_slice %132 {offsets = [0, 0], sizes = [8, 128], strides = [1, 1]} : vector<8x512xf32> to vector<8x128xf32>
    %134 = vector.extract_strided_slice %132 {offsets = [0, 128], sizes = [8, 128], strides = [1, 1]} : vector<8x512xf32> to vector<8x128xf32>
    %135 = vector.extract_strided_slice %132 {offsets = [0, 256], sizes = [8, 128], strides = [1, 1]} : vector<8x512xf32> to vector<8x128xf32>
    %136 = vector.extract_strided_slice %132 {offsets = [0, 384], sizes = [8, 128], strides = [1, 1]} : vector<8x512xf32> to vector<8x128xf32>
    %137 = arith.mulf %134, %109 : vector<8x128xf32>
    %138 = arith.mulf %133, %135 : vector<8x128xf32>
    %139 = arith.addf %137, %138 : vector<8x128xf32>
    %140 = math.tanh %139 : vector<8x128xf32>
    %141 = arith.mulf %136, %140 : vector<8x128xf32>
    %142 = arith.truncf %141 : vector<8x128xf32> to vector<8x128xbf16>
    %143 = arith.index_cast %120 : i32 to index
    %c0_41 = arith.constant 0 : index
    %144 = vector.load %arg6[%143, %c0_41] : memref<64x128xbf16, #tpu.memory_space<vmem>>, vector<8x128xbf16>
    tpu.vector_store %arg6[%143, %c0_41], %142 {strides = array<i32>} : memref<64x128xbf16, #tpu.memory_space<vmem>>, vector<8x128xbf16>,
    %c4_i32 = arith.constant 4 : i32
    %c2_i32_42 = arith.constant 2 : i32
    %145 = arith.muli %c2_i32_42, %c4_i32 : i32
    %c7_i32_43 = arith.constant 7 : i32
    %146 = arith.subi %c7_i32_43, %145 : i32
    %147 = arith.muli %arg0, %146 : i32
    %148 = arith.addi %c4_i32, %147 : i32
    %c8_i32_44 = arith.constant 8 : i32
    %149 = arith.muli %148, %c8_i32_44 : i32
    %150 = tpu.assume_multiple %149, 8 : i32
    %151 = arith.index_cast %150 : i32 to index
    %c0_45 = arith.constant 0 : index
    %152 = vector.load %arg7[%151, %c0_45] : memref<64x512xf32, #tpu.memory_space<vmem>>, vector<8x512xf32>
    %153 = arith.truncf %141 : vector<8x128xf32> to vector<8x128xbf16>
    %cst_46 = arith.constant dense<0.000000e+00> : vector<8x512xf32>
    %154 = tpu.matmul %153, %12, %cst_46 {dimension_numbers = #tpu.dot_dimension_numbers<[1], [0], [0], [1], [0, 0, 1, 1], [], []>} : vector<8x128xbf16>, vector<128x512xbf16>, vector<8x512xf32> -> vector<8x512xf32>
    %155 = arith.addf %152, %154 : vector<8x512xf32>
    %156 = vector.broadcast %16 : vector<1x512xf32> to vector<8x512xf32>
    %157 = arith.mulf %155, %156 : vector<8x512xf32>
    %158 = math.tanh %157 : vector<8x512xf32>
    %159 = vector.broadcast %17 : vector<1x512xf32> to vector<8x512xf32>
    %160 = arith.mulf %158, %159 : vector<8x512xf32>
    %161 = vector.broadcast %18 : vector<1x512xf32> to vector<8x512xf32>
    %162 = arith.addf %160, %161 : vector<8x512xf32>
    %163 = vector.extract_strided_slice %162 {offsets = [0, 0], sizes = [8, 128], strides = [1, 1]} : vector<8x512xf32> to vector<8x128xf32>
    %164 = vector.extract_strided_slice %162 {offsets = [0, 128], sizes = [8, 128], strides = [1, 1]} : vector<8x512xf32> to vector<8x128xf32>
    %165 = vector.extract_strided_slice %162 {offsets = [0, 256], sizes = [8, 128], strides = [1, 1]} : vector<8x512xf32> to vector<8x128xf32>
    %166 = vector.extract_strided_slice %162 {offsets = [0, 384], sizes = [8, 128], strides = [1, 1]} : vector<8x512xf32> to vector<8x128xf32>
    %167 = arith.mulf %164, %139 : vector<8x128xf32>
    %168 = arith.mulf %163, %165 : vector<8x128xf32>
    %169 = arith.addf %167, %168 : vector<8x128xf32>
    %170 = math.tanh %169 : vector<8x128xf32>
    %171 = arith.mulf %166, %170 : vector<8x128xf32>
    %172 = arith.truncf %171 : vector<8x128xf32> to vector<8x128xbf16>
    %173 = arith.index_cast %150 : i32 to index
    %c0_47 = arith.constant 0 : index
    %174 = vector.load %arg6[%173, %c0_47] : memref<64x128xbf16, #tpu.memory_space<vmem>>, vector<8x128xbf16>
    tpu.vector_store %arg6[%173, %c0_47], %172 {strides = array<i32>} : memref<64x128xbf16, #tpu.memory_space<vmem>>, vector<8x128xbf16>,
    %c5_i32 = arith.constant 5 : i32
    %c2_i32_48 = arith.constant 2 : i32
    %175 = arith.muli %c2_i32_48, %c5_i32 : i32
    %c7_i32_49 = arith.constant 7 : i32
    %176 = arith.subi %c7_i32_49, %175 : i32
    %177 = arith.muli %arg0, %176 : i32
    %178 = arith.addi %c5_i32, %177 : i32
    %c8_i32_50 = arith.constant 8 : i32
    %179 = arith.muli %178, %c8_i32_50 : i32
    %180 = tpu.assume_multiple %179, 8 : i32
    %181 = arith.index_cast %180 : i32 to index
    %c0_51 = arith.constant 0 : index
    %182 = vector.load %arg7[%181, %c0_51] : memref<64x512xf32, #tpu.memory_space<vmem>>, vector<8x512xf32>
    %183 = arith.truncf %171 : vector<8x128xf32> to vector<8x128xbf16>
    %cst_52 = arith.constant dense<0.000000e+00> : vector<8x512xf32>
    %184 = tpu.matmul %183, %12, %cst_52 {dimension_numbers = #tpu.dot_dimension_numbers<[1], [0], [0], [1], [0, 0, 1, 1], [], []>} : vector<8x128xbf16>, vector<128x512xbf16>, vector<8x512xf32> -> vector<8x512xf32>
    %185 = arith.addf %182, %184 : vector<8x512xf32>
    %186 = vector.broadcast %16 : vector<1x512xf32> to vector<8x512xf32>
    %187 = arith.mulf %185, %186 : vector<8x512xf32>
    %188 = math.tanh %187 : vector<8x512xf32>
    %189 = vector.broadcast %17 : vector<1x512xf32> to vector<8x512xf32>
    %190 = arith.mulf %188, %189 : vector<8x512xf32>
    %191 = vector.broadcast %18 : vector<1x512xf32> to vector<8x512xf32>
    %192 = arith.addf %190, %191 : vector<8x512xf32>
    %193 = vector.extract_strided_slice %192 {offsets = [0, 0], sizes = [8, 128], strides = [1, 1]} : vector<8x512xf32> to vector<8x128xf32>
    %194 = vector.extract_strided_slice %192 {offsets = [0, 128], sizes = [8, 128], strides = [1, 1]} : vector<8x512xf32> to vector<8x128xf32>
    %195 = vector.extract_strided_slice %192 {offsets = [0, 256], sizes = [8, 128], strides = [1, 1]} : vector<8x512xf32> to vector<8x128xf32>
    %196 = vector.extract_strided_slice %192 {offsets = [0, 384], sizes = [8, 128], strides = [1, 1]} : vector<8x512xf32> to vector<8x128xf32>
    %197 = arith.mulf %194, %169 : vector<8x128xf32>
    %198 = arith.mulf %193, %195 : vector<8x128xf32>
    %199 = arith.addf %197, %198 : vector<8x128xf32>
    %200 = math.tanh %199 : vector<8x128xf32>
    %201 = arith.mulf %196, %200 : vector<8x128xf32>
    %202 = arith.truncf %201 : vector<8x128xf32> to vector<8x128xbf16>
    %203 = arith.index_cast %180 : i32 to index
    %c0_53 = arith.constant 0 : index
    %204 = vector.load %arg6[%203, %c0_53] : memref<64x128xbf16, #tpu.memory_space<vmem>>, vector<8x128xbf16>
    tpu.vector_store %arg6[%203, %c0_53], %202 {strides = array<i32>} : memref<64x128xbf16, #tpu.memory_space<vmem>>, vector<8x128xbf16>,
    %c6_i32 = arith.constant 6 : i32
    %c2_i32_54 = arith.constant 2 : i32
    %205 = arith.muli %c2_i32_54, %c6_i32 : i32
    %c7_i32_55 = arith.constant 7 : i32
    %206 = arith.subi %c7_i32_55, %205 : i32
    %207 = arith.muli %arg0, %206 : i32
    %208 = arith.addi %c6_i32, %207 : i32
    %c8_i32_56 = arith.constant 8 : i32
    %209 = arith.muli %208, %c8_i32_56 : i32
    %210 = tpu.assume_multiple %209, 8 : i32
    %211 = arith.index_cast %210 : i32 to index
    %c0_57 = arith.constant 0 : index
    %212 = vector.load %arg7[%211, %c0_57] : memref<64x512xf32, #tpu.memory_space<vmem>>, vector<8x512xf32>
    %213 = arith.truncf %201 : vector<8x128xf32> to vector<8x128xbf16>
    %cst_58 = arith.constant dense<0.000000e+00> : vector<8x512xf32>
    %214 = tpu.matmul %213, %12, %cst_58 {dimension_numbers = #tpu.dot_dimension_numbers<[1], [0], [0], [1], [0, 0, 1, 1], [], []>} : vector<8x128xbf16>, vector<128x512xbf16>, vector<8x512xf32> -> vector<8x512xf32>
    %215 = arith.addf %212, %214 : vector<8x512xf32>
    %216 = vector.broadcast %16 : vector<1x512xf32> to vector<8x512xf32>
    %217 = arith.mulf %215, %216 : vector<8x512xf32>
    %218 = math.tanh %217 : vector<8x512xf32>
    %219 = vector.broadcast %17 : vector<1x512xf32> to vector<8x512xf32>
    %220 = arith.mulf %218, %219 : vector<8x512xf32>
    %221 = vector.broadcast %18 : vector<1x512xf32> to vector<8x512xf32>
    %222 = arith.addf %220, %221 : vector<8x512xf32>
    %223 = vector.extract_strided_slice %222 {offsets = [0, 0], sizes = [8, 128], strides = [1, 1]} : vector<8x512xf32> to vector<8x128xf32>
    %224 = vector.extract_strided_slice %222 {offsets = [0, 128], sizes = [8, 128], strides = [1, 1]} : vector<8x512xf32> to vector<8x128xf32>
    %225 = vector.extract_strided_slice %222 {offsets = [0, 256], sizes = [8, 128], strides = [1, 1]} : vector<8x512xf32> to vector<8x128xf32>
    %226 = vector.extract_strided_slice %222 {offsets = [0, 384], sizes = [8, 128], strides = [1, 1]} : vector<8x512xf32> to vector<8x128xf32>
    %227 = arith.mulf %224, %199 : vector<8x128xf32>
    %228 = arith.mulf %223, %225 : vector<8x128xf32>
    %229 = arith.addf %227, %228 : vector<8x128xf32>
    %230 = math.tanh %229 : vector<8x128xf32>
    %231 = arith.mulf %226, %230 : vector<8x128xf32>
    %232 = arith.truncf %231 : vector<8x128xf32> to vector<8x128xbf16>
    %233 = arith.index_cast %210 : i32 to index
    %c0_59 = arith.constant 0 : index
    %234 = vector.load %arg6[%233, %c0_59] : memref<64x128xbf16, #tpu.memory_space<vmem>>, vector<8x128xbf16>
    tpu.vector_store %arg6[%233, %c0_59], %232 {strides = array<i32>} : memref<64x128xbf16, #tpu.memory_space<vmem>>, vector<8x128xbf16>,
    %c7_i32_60 = arith.constant 7 : i32
    %c2_i32_61 = arith.constant 2 : i32
    %235 = arith.muli %c2_i32_61, %c7_i32_60 : i32
    %c7_i32_62 = arith.constant 7 : i32
    %236 = arith.subi %c7_i32_62, %235 : i32
    %237 = arith.muli %arg0, %236 : i32
    %238 = arith.addi %c7_i32_60, %237 : i32
    %c8_i32_63 = arith.constant 8 : i32
    %239 = arith.muli %238, %c8_i32_63 : i32
    %240 = tpu.assume_multiple %239, 8 : i32
    %241 = arith.index_cast %240 : i32 to index
    %c0_64 = arith.constant 0 : index
    %242 = vector.load %arg7[%241, %c0_64] : memref<64x512xf32, #tpu.memory_space<vmem>>, vector<8x512xf32>
    %243 = arith.truncf %231 : vector<8x128xf32> to vector<8x128xbf16>
    %cst_65 = arith.constant dense<0.000000e+00> : vector<8x512xf32>
    %244 = tpu.matmul %243, %12, %cst_65 {dimension_numbers = #tpu.dot_dimension_numbers<[1], [0], [0], [1], [0, 0, 1, 1], [], []>} : vector<8x128xbf16>, vector<128x512xbf16>, vector<8x512xf32> -> vector<8x512xf32>
    %245 = arith.addf %242, %244 : vector<8x512xf32>
    %246 = vector.broadcast %16 : vector<1x512xf32> to vector<8x512xf32>
    %247 = arith.mulf %245, %246 : vector<8x512xf32>
    %248 = math.tanh %247 : vector<8x512xf32>
    %249 = vector.broadcast %17 : vector<1x512xf32> to vector<8x512xf32>
    %250 = arith.mulf %248, %249 : vector<8x512xf32>
    %251 = vector.broadcast %18 : vector<1x512xf32> to vector<8x512xf32>
    %252 = arith.addf %250, %251 : vector<8x512xf32>
    %253 = vector.extract_strided_slice %252 {offsets = [0, 0], sizes = [8, 128], strides = [1, 1]} : vector<8x512xf32> to vector<8x128xf32>
    %254 = vector.extract_strided_slice %252 {offsets = [0, 128], sizes = [8, 128], strides = [1, 1]} : vector<8x512xf32> to vector<8x128xf32>
    %255 = vector.extract_strided_slice %252 {offsets = [0, 256], sizes = [8, 128], strides = [1, 1]} : vector<8x512xf32> to vector<8x128xf32>
    %256 = vector.extract_strided_slice %252 {offsets = [0, 384], sizes = [8, 128], strides = [1, 1]} : vector<8x512xf32> to vector<8x128xf32>
    %257 = arith.mulf %254, %229 : vector<8x128xf32>
    %258 = arith.mulf %253, %255 : vector<8x128xf32>
    %259 = arith.addf %257, %258 : vector<8x128xf32>
    %260 = math.tanh %259 : vector<8x128xf32>
    %261 = arith.mulf %256, %260 : vector<8x128xf32>
    %262 = arith.truncf %261 : vector<8x128xf32> to vector<8x128xbf16>
    %263 = arith.index_cast %240 : i32 to index
    %c0_66 = arith.constant 0 : index
    %264 = vector.load %arg6[%263, %c0_66] : memref<64x128xbf16, #tpu.memory_space<vmem>>, vector<8x128xbf16>
    tpu.vector_store %arg6[%263, %c0_66], %262 {strides = array<i32>} : memref<64x128xbf16, #tpu.memory_space<vmem>>, vector<8x128xbf16>,
    %c8_i32_67 = arith.constant 8 : i32
    %265 = arith.index_cast %arg0 : i32 to index
    %c0_68 = arith.constant 0 : index
    %c0_69 = arith.constant 0 : index
    %266 = vector.load %arg8[%265, %c0_68, %c0_69] : memref<2x8x128xf32, #tpu.memory_space<vmem>>, vector<1x8x128xf32>
    %267 = vector.shape_cast %266 : vector<1x8x128xf32> to vector<8x128xf32>
    %268 = vector.shape_cast %261 : vector<8x128xf32> to vector<1x8x128xf32>
    tpu.vector_store %arg8[%265, %c0_68, %c0_69], %268 {strides = array<i32>} : memref<2x8x128xf32, #tpu.memory_space<vmem>>, vector<1x8x128xf32>,
    %269 = arith.index_cast %arg0 : i32 to index
    %c0_70 = arith.constant 0 : index
    %c0_71 = arith.constant 0 : index
    %270 = vector.load %arg9[%269, %c0_70, %c0_71] : memref<2x8x128xf32, #tpu.memory_space<vmem>>, vector<1x8x128xf32>
    %271 = vector.shape_cast %270 : vector<1x8x128xf32> to vector<8x128xf32>
    %272 = vector.shape_cast %259 : vector<8x128xf32> to vector<1x8x128xf32>
    tpu.vector_store %arg9[%269, %c0_70, %c0_71], %272 {strides = array<i32>} : memref<2x8x128xf32, #tpu.memory_space<vmem>>, vector<1x8x128xf32>,
    return
  }
  func.func @transform_0(%arg0: i32, %arg1: i32) -> (i32, i32) {
    %c2_i32 = arith.constant 2 : i32
    %0 = arith.muli %c2_i32, %arg1 : i32
    %c0_i32 = arith.constant 0 : i32
    %1 = arith.subi %c0_i32, %0 : i32
    %2 = arith.muli %arg0, %1 : i32
    %3 = arith.addi %2, %arg1 : i32
    %c0_i32_0 = arith.constant 0 : i32
    %c0_i32_1 = arith.constant 0 : i32
    return %3, %c0_i32_0 : i32, i32
  }
  func.func @transform_1(%arg0: i32, %arg1: i32) -> (i32, i32) {
    %c0_i32 = arith.constant 0 : i32
    %c0_i32_0 = arith.constant 0 : i32
    return %c0_i32, %arg0 : i32, i32
  }
  func.func @transform_2(%arg0: i32, %arg1: i32) -> (i32, i32, i32) {
    %c0_i32 = arith.constant 0 : i32
    %c0_i32_0 = arith.constant 0 : i32
    %c0_i32_1 = arith.constant 0 : i32
    return %arg0, %c0_i32, %c0_i32_0 : i32, i32, i32
  }
  func.func @transform_3(%arg0: i32, %arg1: i32) -> (i32, i32, i32) {
    %c0_i32 = arith.constant 0 : i32
    %c0_i32_0 = arith.constant 0 : i32
    %c0_i32_1 = arith.constant 0 : i32
    return %arg0, %c0_i32, %c0_i32_0 : i32, i32, i32
  }
  func.func @transform_4(%arg0: i32, %arg1: i32) -> (i32, i32) {
    %c2_i32 = arith.constant 2 : i32
    %0 = arith.muli %c2_i32, %arg1 : i32
    %c0_i32 = arith.constant 0 : i32
    %1 = arith.subi %c0_i32, %0 : i32
    %2 = arith.muli %arg0, %1 : i32
    %3 = arith.addi %2, %arg1 : i32
    %c0_i32_0 = arith.constant 0 : i32
    return %3, %arg0 : i32, i32
  }
}

</mosaic_0001>

<bundles_post_ra>
// kernel: lstm_forward.2
= control target key start
LH: loop header
LB: loop body
LE: loop exit
PB: predicated region body
PF: predicated region fallthrough
CT: control target
= control target key end

     0   :  { %s3518_s0 = inlined_call_operand.vmem [shape: bf16[64,32], index: 0, kind: input, shape index: {}]   ;;  %s3519_s1 = inlined_call_operand.hbm [shape: bf16[32,1024], index: 1, kind: input, shape index: {}]   ;;  %s3520_s2 = inlined_call_operand.hbm [shape: bf16[2,128,512], index: 2, kind: input, shape index: {}]   ;;  %s3521_s3 = inlined_call_operand.hbm [shape: f32[2,1,512], index: 3, kind: input, shape index: {}]   ;;  %s3522_s4 = inlined_call_operand.vmem [shape: bf16[64,256], index: 4, kind: output, shape index: {}]  }
   0x1   :  { %3528 = sst [smem:[#allocation14_spill]] %s3519_s1 }
   0x2   :  { %3529 = sst [smem:[#allocation15_spill]] %s3520_s2 }
   0x3   :  { %9 = vsyncpa [#allocation6], 0 }
   0x4   :  { %11 = vsyncpa [#allocation6 + $0x1], 0 }
   0x5   :  { %12 = vsyncpa [#allocation8], 0 }
   0x6   :  { %14 = vsyncpa [#allocation8 + $0x1], 0  ;;  %s2665_s15 = smov 0   ;;  %s2667_s16 = smov 0  }
   0x7   :  { %s2669_s17 = smov 0   ;;  %s2671_s18 = smov 0  }
   0x8   :  { %s2673_s19 = smov 0   ;;  %s2675_s20 = smov 0  }
   0x9 LB: > { %s2694_s21 = sadd.s32 4294967295, %s2630_s20   ;;  %s32_s22 = sadd.s32 1, %s2626_s19  ;;  %s2630_s20 = sphi %s2675_s20, %s20_s20   ;;  %s2626_s19 = sphi %s2673_s19, %s3550_s19   ;;  %s2622_s18 = sphi %s2671_s18, %s3549_s18   ;;  %s2618_s17 = sphi %s2669_s17, %s3548_s17   ;;  %s2614_s16 = sphi %s2667_s16, %s3547_s16   ;;  %s2610_s15 = sphi %s2665_s15, %s3546_s15  }
   0xa   : > { %p34_p0 = scmp.ge.s32.totalorder %s32_s22, 2  ;;  %s73_s23 = sadd.s32 1, %s2618_s17 }
   0xb   : > { %p80_p1 = scmp.ne.s32.totalorder %s2618_s17, %s2614_s16  ;;  %p81_p2 = scmp.eq.s32.totalorder %s2630_s20, 0 }
   0xc   : > { %s3552_s22 = smov (%p34_p0, %s32_s22), 0  ;;  %p86_p4 = scmp.ne.s32.totalorder %s2614_s16, %s2610_s15 }
   0xd   : > { %3530 = sst [smem:[#allocation13_spill]] %s3552_s22  ;;  %p82_p3 = por %p81_p2, %p80_p1 }
   0xe   : > { %s70_s24 = ssub.s32 %s2626_s19, %s3552_s22  ;;  %p87_p5 = scmp.eq.s32.totalorder %s2694_s21, 0 }
   0xf   : > { %p71_p6 = scmp.eq.s32.totalorder %s70_s24, 0  ;;  %p172_p7 = scmp.eq.s32.totalorder %s2694_s21, 1 }
  0x10   : > { %p2708_p8 = por %p87_p5, %p86_p4  ;;  %p2256_p10 = scmp.lt.s32.totalorder %s2630_s20, 2 }
  0x11   : > { %s2713_s26 = scalar_select %p71_p6, %s2618_s17, %s73_s23  }
  0x12   : > { %s3531_s25 = scalar_select %p2708_p8, 1, 0 }
  0x13   : > { %p2715_p9 = por %p172_p7, %p80_p1  ;;  %s2721_s28 = sand.u32 1, %s2618_s17  }
  0x14   : > { %p2723_p11 = pnand %p2256_p10, %p82_p3  ;;  %s236_s30 = sand.u32 1, %s2630_s20  }
  0x15   : > { %s3532_s27 = scalar_select %p2715_p9, 1, 0 }
  0x16   : > { %s3533_s29 = scalar_select %p2723_p11, 1, 0 }
  0x17   : > { %s2112_s5 = sshll.u32 %s2721_s28, 8  ;;  %s2213_s6 = sshll.u32 %s2626_s19, 12 }
  0x18   : > { %s3534_s2 = sld [smem:[#allocation15_spill]]  ;;  %s240_s10 = scalar_lea.vmem [#allocation7], %s2112_s5 }
  0x19   : > { %s247_s11 = sshll.u32 %s240_s10, 4  ;;  %s2738_s12 = scalar_lea.sflag [#allocation8], %s236_s30  ;;  %s2735_s11 = int_to_ptr.vmem [resolvable:$true] %s247_s11 }
  0x1a   : > { %p2744_p0 = pneg %p2723_p11 }
  0x1e   : > { %s2733_s9 = scalar_lea.hbm %s3534_s2, %s2213_s6  ;;  %s2491_s24 = scalar_lea.hbm %s3534_s2, 8192 }
  0x1f   : > { %s2486_s13 = scalar_lea.hbm %s2733_s9, 4096  ;;  %p2492_p3 = scmp.lt.u32.totalorder %s2733_s9, %s3534_s2 }
  0x20   : > { %p2487_p13 = scmp.ne.s32.totalorder %s2733_s9, %s2486_s13  ;;  %p2493_p4 = scmp.lt.u32.totalorder %s2491_s24, %s2486_s13 }
  0x21   : > { %p2495_p6 = scmp.lt.u32.totalorder %s2486_s13, %s2733_s9 }
  0x22   : > { %p2489_p1 = pnand %p2744_p0, %p2487_p13  ;;  %p2494_p5 = por %p2493_p4, %p2492_p3 }
  0x24   : > { %p2490_p2 = pneg %p2489_p1  ;;  %p2496_p7 = por %p2495_p6, %p2494_p5 }
  0x26   : > { %p2497_p10 = pnand %p2496_p7, %p2490_p2 }
  0x28   : > { %2500 = shalt.err (!%p2497_p10)
}
  0x29   : > { %s2501_s30 = scalar_lea.vmem %s2735_s11, 4096  ;;  %s2632_s7 = smov [#allocation7]  }
  0x2a   : > { %p2502_p13 = scmp.ne.s32.totalorder %s2735_s11, %s2501_s30  ;;  %s2506_s8 = sshll.u32 %s2632_s7, 4  ;;  %s2507_s8 = int_to_ptr.vmem [resolvable:$false] %s2506_s8 }
  0x2b   : > { %s2508_s10 = scalar_lea.vmem %s2507_s8, 8192  ;;  %p2509_p9 = scmp.lt.s32.totalorder %s2735_s11, %s2507_s8 }
  0x2c   : > { %p2504_p1 = pnand %p2502_p13, %p2744_p0  ;;  %p2510_p8 = scmp.lt.s32.totalorder %s2508_s10, %s2501_s30 }
  0x2e   : > { %p2505_p12 = pneg %p2504_p1  ;;  %p2511_p3 = por %p2510_p8, %p2509_p9 }
  0x30   : > { %p2512_p4 = pnand %p2511_p3, %p2505_p12 }
  0x32   : > { %2515 = shalt.err (!%p2512_p4)
}
  0x33   : > { %s3524_s13 = smov 256   ;;  %s3525_s15 = smov 16  }
  0x34   : > { %2252 = dma.hbm_to_vmem [thread:$0]  (!%p2723_p11), %s2733_s9, 4096, %s2735_s11, %s2738_s12, %s3524_s13, %s3524_s13, %s3525_s15  }
  0x35   : > { %p274_p8 = scmp.lt.s32.totalorder %s2630_s20, 3  ;;  %p3536_p9 = scmp.ge.s32.totalorder %s2630_s20, 1 }
  0x36   : > { %s2109_s24 = sshll.u32 %s2721_s28, 6  ;;  %s2212_s5 = sshll.u32 %s2626_s19, 8 }
  0x37   : > { %p2774_p12 = pnand %p3536_p9, %p274_p8  ;;  %s3538_s1 = sld [smem:[#allocation14_spill]] }
  0x38   : > { %s219_s8 = scalar_lea.vmem [#allocation5], %s2109_s24  ;;  %s216_s9 = scalar_lea.sflag [#allocation6], %s2721_s28 }
  0x39   : > { %s3537_s23 = scalar_select %p2774_p12, 1, 0 }
  0x3a   : > { %s226_s10 = sshll.u32 %s219_s8, 4  ;;  %s2785_s10 = int_to_ptr.vmem [resolvable:$true] %s226_s10 }
  0x3d   : > { %s2783_s7 = scalar_lea.hbm %s3538_s1, %s2212_s5  ;;  %s2521_s6 = scalar_lea.hbm %s3538_s1, 2048 }
  0x3e   : > { %s2516_s11 = scalar_lea.hbm %s2783_s7, 1024  ;;  %p2522_p7 = scmp.lt.u32.totalorder %s2783_s7, %s3538_s1 }
  0x3f   : > { %p2517_p2 = scmp.ne.s32.totalorder %s2783_s7, %s2516_s11  ;;  %p2523_p10 = scmp.lt.u32.totalorder %s2521_s6, %s2516_s11 }
  0x40   : > { %p2525_p1 = scmp.lt.u32.totalorder %s2516_s11, %s2783_s7 }
  0x41   : > { %p2519_p5 = pnand %p2517_p2, %p2744_p0  ;;  %p2524_p13 = por %p2523_p10, %p2522_p7 }
  0x43   : > { %p2520_p6 = pneg %p2519_p5  ;;  %p2526_p3 = por %p2525_p1, %p2524_p13 }
  0x45   : > { %p2527_p4 = pnand %p2526_p3, %p2520_p6 }
  0x47   : > { %2530 = shalt.err (!%p2527_p4)
}
  0x48   : > { %s2531_s24 = scalar_lea.vmem %s2785_s10, 1024  ;;  %s2635_s13 = smov [#allocation5]  }
  0x49   : > { %p2532_p8 = scmp.ne.s32.totalorder %s2785_s10, %s2531_s24  ;;  %s2536_s15 = sshll.u32 %s2635_s13, 4  ;;  %s2537_s15 = int_to_ptr.vmem [resolvable:$false] %s2536_s15 }
  0x4a   : > { %s2538_s8 = scalar_lea.vmem %s2537_s15, 2048  ;;  %p2539_p5 = scmp.lt.s32.totalorder %s2785_s10, %s2537_s15 }
  0x4b   : > { %p2534_p9 = pnand %p2532_p8, %p2744_p0  ;;  %p2540_p12 = scmp.lt.s32.totalorder %s2538_s8, %s2531_s24 }
  0x4d   : > { %p2535_p2 = pneg %p2534_p9  ;;  %p2541_p7 = por %p2540_p12, %p2539_p5 }
  0x4f   : > { %p2542_p10 = pnand %p2541_p7, %p2535_p2 }
  0x51   : > { %2545 = shalt.err (!%p2542_p10)
}
  0x52   : > { %s2636_s11 = smov 512   ;;  %s3539_s6 = smov 16  }
  0x53   : > { %s3540_s5 = smov 256   ;;  %s2115_s30 = sshll.u32 %s2721_s28, 2 }
  0x54   : > { %2249 = dma.hbm_to_vmem [thread:$0]  (!%p2723_p11), %s2783_s7, 1024, %s2785_s10, %s216_s9, %s2636_s11, %s3540_s5, %s3539_s6  }
  0x55   : > { %s2214_s13 = sshll.u32 %s2626_s19, 6  ;;  %s261_s1 = scalar_lea.vmem [#allocation9], %s2115_s30 }
  0x56   : > { %s2818_s8 = scalar_lea.hbm %s3521_s3, %s2214_s13  ;;  %s269_s2 = sshll.u32 %s261_s1, 4  ;;  %s270_s2 = int_to_ptr.vmem [resolvable:$true] %s269_s2 }
  0x57   : > { %s2546_s22 = scalar_lea.hbm %s2818_s8, 64  ;;  %s2551_s10 = scalar_lea.hbm %s3521_s3, 128 }
  0x58   : > { %p2547_p12 = scmp.ne.s32.totalorder %s2818_s8, %s2546_s22  ;;  %p2552_p1 = scmp.lt.u32.totalorder %s2818_s8, %s3521_s3 }
  0x59   : > { %p2553_p3 = scmp.lt.u32.totalorder %s2551_s10, %s2546_s22  ;;  %p2555_p8 = scmp.lt.u32.totalorder %s2546_s22, %s2818_s8 }
  0x5a   : > { %p2549_p6 = pnand %p2547_p12, %p2744_p0 }
  0x5b   : > { %p2554_p4 = por %p2553_p3, %p2552_p1 }
  0x5c   : > { %p2550_p13 = pneg %p2549_p6 }
  0x5d   : > { %p2556_p9 = por %p2555_p8, %p2554_p4 }
  0x5f   : > { %p2557_p2 = pnand %p2556_p9, %p2550_p13 }
  0x61   : > { %2560 = shalt.err (!%p2557_p2)
}
  0x62   : > { %s2561_s1 = scalar_lea.vmem %s270_s2, 64  ;;  %s2637_s6 = smov [#allocation9]  }
  0x63   : > { %p2562_p5 = scmp.ne.s32.totalorder %s270_s2, %s2561_s1  ;;  %s2566_s5 = sshll.u32 %s2637_s6, 4  ;;  %s2567_s5 = int_to_ptr.vmem [resolvable:$false] %s2566_s5 }
  0x64   : > { %s2568_s30 = scalar_lea.vmem %s2567_s5, 128  ;;  %p2569_p12 = scmp.lt.s32.totalorder %s270_s2, %s2567_s5 }
  0x65   : > { %p2564_p7 = pnand %p2562_p5, %p2744_p0  ;;  %p2570_p6 = scmp.lt.s32.totalorder %s2568_s30, %s2561_s1 }
  0x67   : > { %p2565_p10 = pneg %p2564_p7  ;;  %p2571_p11 = por %p2570_p6, %p2569_p12 }
  0x69   : > { %p2572_p1 = pnand %p2571_p11, %p2565_p10 }
  0x6b   : > { %2575 = shalt.err (!%p2572_p1)
}
  0x6c   : > { %p3541_p3 = scmp.ne.s32.totalorder %s3533_s29, 0  ;;  %p3542_p13 = scmp.ne.s32.totalorder %s3537_s23, 0 }
  0x6d   : > { %s2841_s22 = sand.u32 (!%p3542_p13), 1, %s2614_s16   ;;  %p3543_p0 = scmp.ne.s32.totalorder (!%p3542_p13), %s3531_s25, 0 }
  0x6e   : > { %2255 = dma.hbm_to_vmem [thread:$0]  (!%p3541_p3), %s2818_s8, 64, %s270_s2, %s2738_s12  }
  0x6f   : > { %278 = sbr.rel (%p3542_p13) target bundleno = 2190 (0x88e), region = 36  ;;  %s2119_s14 = sshll.u32 (!%p3542_p13), %s2841_s22, 6 }
  0x70   : > { %s281_s13 = scalar_lea.sflag (!%p3542_p13), [#allocation6], %s2841_s22  ;;  %s284_s15 = scalar_lea.vmem (!%p3542_p13), [#allocation5], %s2119_s14 }
  0x76   : > { %2601 = dma.done.wait (%p3543_p0), %s281_s13, 1024  }
  0x77   : > { %2603 = vsyncadd (%p3543_p0), %s281_s13, 4294966272  ;;  %s289_s2 = sand.u32 1, %s2694_s21   ;;  %s2120_s29 = sshll.u32 %s2841_s22, 8 }
  0x78   : > { %s290_s12 = scalar_lea.sflag [#allocation8], %s289_s2  ;;  %s2851_s23 = scalar_lea.vmem [#allocation7], %s2120_s29 }
  0x79   : > { %2605 = dma.done.wait (%p3543_p0), %s290_s12, 4160  }
  0x7a   : > { %2607 = vsyncadd (%p3543_p0), %s290_s12, 4294963136  ;;  %v2638_v0 = vmov 0   ;;  %v2310_v1 = vld [vmem:[%s284_s15 + $0x4] ss:$16 sps:$4 sm:$0xff]   ;;  %v2312_v2 = vld [vmem:[%s284_s15 + $0xc] ss:$16 sps:$4 sm:$0xff]   ;;  %v384_v46 = vlaneseq }
  0x7b   : > { %509 = vmatprep.mubr.bf16.mxu0 %v2638_v0  ;;  %582 = vmatprep.mubr.bf16.mxu1 %v2638_v0  ;;  %v2314_v3 = vld [vmem:[%s284_s15] ss:$16 sps:$4 sm:$0xff]   ;;  %v2315_v4 = vld [vmem:[%s284_s15 + $0x8] ss:$16 sps:$4 sm:$0xff]   ;;  %v2316_v5 = vld [vmem:[%s284_s15 + $0x24] ss:$16 sps:$4 sm:$0xff]  }
  0x7c   : > { %477 = vmatprep.subr.bf16.mxu0 %v2310_v1  ;;  %550 = vmatprep.subr.bf16.mxu1 %v2312_v2  ;;  %v2318_v6 = vld [vmem:[%s284_s15 + $0x2c] ss:$16 sps:$4 sm:$0xff]   ;;  %v2320_v7 = vld [vmem:[%s284_s15 + $0x20] ss:$16 sps:$4 sm:$0xff]   ;;  %v2321_v8 = vld [vmem:[%s284_s15 + $0x28] ss:$16 sps:$4 sm:$0xff]  }
  0x7d   : > { %478 = vmatpush1.bf16.msra.mxu0 %v2314_v3  ;;  %551 = vmatpush1.bf16.msra.mxu1 %v2315_v4  ;;  %v2322_v9 = vld [vmem:[%s3518_s0] sm:$0xff]   ;;  %vm464_vm0 = vcmask 261120   ;;  %v2869_v12 = vld [vmem:[%s2851_s23 + $0xc] ss:$16 sps:$4 sm:$0xff]   ;;  %v2876_v14 = vld [vmem:[%s2851_s23 + $0x8] ss:$16 sps:$4 sm:$0xff]  }
  0x7e   : > { %479 = vmatprep.subr.bf16.mxu0 %v2316_v5  ;;  %552 = vmatprep.subr.bf16.mxu1 %v2318_v6  ;;  %v2863_v10 = vld [vmem:[%s2851_s23 + $0x4] ss:$16 sps:$4 sm:$0xff]   ;;  %v2866_v11 = vld [vmem:[%s2851_s23] ss:$16 sps:$4 sm:$0xff]   ;;  %v2887_v16 = vld [vmem:[%s2851_s23 + $0x2c] ss:$16 sps:$4 sm:$0xff]  }
  0x7f   : > { %v2873_v13 = vld [vmem:[%s2851_s23 + $0x24] ss:$16 sps:$4 sm:$0xff]   ;;  %v2882_v15 = vld [vmem:[%s2851_s23 + $0x20] ss:$16 sps:$4 sm:$0xff]   ;;  %v2895_v18 = vld [vmem:[%s2851_s23 + $0x28] ss:$16 sps:$4 sm:$0xff]  }
  0x80   : > { %v2892_v17 = vld [vmem:[%s2851_s23 + $0x44] ss:$16 sps:$4 sm:$0xff]   ;;  %v2900_v19 = vld [vmem:[%s2851_s23 + $0x4c] ss:$16 sps:$4 sm:$0xff]   ;;  %v2908_v21 = vld [vmem:[%s2851_s23 + $0x40] ss:$16 sps:$4 sm:$0xff]  }
  0x81   : > { %480 = vmatpush1.bf16.msra.mxu0 %v2320_v7  ;;  %553 = vmatpush1.bf16.msra.mxu1 %v2321_v8  ;;  %v2332_v20 = vld [vmem:[%s3518_s0 + $0x8] sm:$0xff]   ;;  %v2916_v23 = vld [vmem:[%s2851_s23 + $0x64] ss:$16 sps:$4 sm:$0xff]   ;;  %v2924_v25 = vld [vmem:[%s2851_s23 + $0x60] ss:$16 sps:$4 sm:$0xff]   ;;  %v2639_v45 = vmov 0.0|0.0  }
  0x82   : > { %872 = vmatprep.subr.bf16.mxu0 %v2863_v10  ;;  %913 = vmatprep.subr.bf16.mxu1 %v2869_v12  ;;  %v2911_v22 = vld [vmem:[%s2851_s23 + $0x48] ss:$16 sps:$4 sm:$0xff]   ;;  %v2919_v24 = vld [vmem:[%s2851_s23 + $0x6c] ss:$16 sps:$4 sm:$0xff]   ;;  %v2927_v26 = vld [vmem:[%s2851_s23 + $0x84] ss:$16 sps:$4 sm:$0xff]  }
  0x83   : > { %v2932_v27 = vld [vmem:[%s2851_s23 + $0x68] ss:$16 sps:$4 sm:$0xff]   ;;  %v2937_v28 = vld [vmem:[%s2851_s23 + $0x8c] ss:$16 sps:$4 sm:$0xff]   ;;  %v2345_v29 = vld [vmem:[%s3518_s0 + $0x10] sm:$0xff]   ;;  %s2121_s11 = sshll.u32 %s2841_s22, 2 }
  0x84   : > { %2135 = vmatmul.mubr.msk.bf16.vlgmr.msra.gmra.mrb[0].mxu0 %vm464_vm0, %v2322_v9  ;;  %2139 = vmatmul.mubr.msk.bf16.vlgmr.msra.gmra.mrb[0].mxu1 %vm464_vm0, %v2322_v9  ;;  %v2945_v30 = vld [vmem:[%s2851_s23 + $0x80] ss:$16 sps:$4 sm:$0xff]   ;;  %v2950_v31 = vld [vmem:[%s2851_s23 + $0x88] ss:$16 sps:$4 sm:$0xff]   ;;  %v2955_v32 = vld [vmem:[%s2851_s23 + $0xa4] ss:$16 sps:$4 sm:$0xff]  }
  0x85   : > { %873 = vmatpush1.bf16.msra.mxu0 %v2866_v11  ;;  %914 = vmatpush1.bf16.msra.mxu1 %v2876_v14  ;;  %v2958_v33 = vld [vmem:[%s2851_s23 + $0xac] ss:$16 sps:$4 sm:$0xff]   ;;  %v2963_v34 = vld [vmem:[%s2851_s23 + $0xa0] ss:$16 sps:$4 sm:$0xff]   ;;  %v2968_v35 = vld [vmem:[%s2851_s23 + $0xc4] ss:$16 sps:$4 sm:$0xff]  }
  0x86   : > { %874 = vmatprep.subr.bf16.mxu0 %v2873_v13  ;;  %519 = vmatprep.mubr.bf16.mxu0 %v2638_v0  ;;  %v2971_v36 = vld [vmem:[%s2851_s23 + $0xa8] ss:$16 sps:$4 sm:$0xff]   ;;  %v2976_v37 = vld [vmem:[%s2851_s23 + $0xcc] ss:$16 sps:$4 sm:$0xff]   ;;  %v2986_v39 = vld [vmem:[%s2851_s23 + $0xc0] ss:$16 sps:$4 sm:$0xff]  }
  0x87   : > { %592 = vmatprep.mubr.bf16.mxu1 %v2638_v0  ;;  %915 = vmatprep.subr.bf16.mxu1 %v2887_v16  ;;  %v2358_v38 = vld [vmem:[%s3518_s0 + $0x18] sm:$0xff]   ;;  %v2994_v41 = vld [vmem:[%s2851_s23 + $0xe4] ss:$16 sps:$4 sm:$0xff]   ;;  %v3004_v43 = vld [vmem:[%s2851_s23 + $0xe0] ss:$16 sps:$4 sm:$0xff]   ;;  %v385_v47 = vshrl.u32 %v384_v46, 7 }
  0x88   : > { %v2989_v40 = vld [vmem:[%s2851_s23 + $0xc8] ss:$16 sps:$4 sm:$0xff]   ;;  %v2997_v42 = vld [vmem:[%s2851_s23 + $0xec] ss:$16 sps:$4 sm:$0xff]   ;;  %s302_s1 = scalar_lea.vmem [#allocation9], %s2121_s11  ;;  %s701_s6 = smul.u32 56, %s2622_s18 }
  0x89   : > { %875 = vmatpush1.bf16.msra.mxu0 %v2882_v15  ;;  %916 = vmatpush1.bf16.msra.mxu1 %v2895_v18  ;;  %v3007_v44 = vld [vmem:[%s2851_s23 + $0xe8] ss:$16 sps:$4 sm:$0xff]   ;;  %v386_v48 = vsub.s32 0, %v385_v47  ;;  %v394_v49 = vsub.s32 2, %v385_v47  ;;  %v382_v50 = vld [vmem:[%s302_s1] sm:$0xf] }
  0x8a   : > { %876 = vmatprep.subr.bf16.mxu0 %v2892_v17  ;;  %917 = vmatprep.subr.bf16.mxu1 %v2900_v19  ;;  %v390_v51 = vsub.s32 1, %v385_v47  ;;  %v398_v52 = vsub.s32 3, %v385_v47  ;;  %s3093_s5 = sshra.s32 %s701_s6, 3  ;;  %s2122_s13 = sshll.u32 %s2841_s22, 5 }
  0x8b   : > { %v3052_v53 = vrot.slane %v382_v50, %v386_v48  ;;  %v3054_v54 = vrot.slane %v382_v50, %v394_v49  ;;  %s2215_s30 = sshll.u32 %s3093_s5, 5  ;;  %s2179_s15 = sshll.u32 %s3093_s5, 2 }
  0x8c   : > { %2136 = vmatmul.mubr.msk.bf16.gmra.mrb[4].mxu0 %vm464_vm0, %v2332_v20  ;;  %2140 = vmatmul.mubr.msk.bf16.gmra.mrb[4].mxu1 %vm464_vm0, %v2332_v20  ;;  %v3056_v55 = vrot.slane %v382_v50, %v390_v51  ;;  %v3058_v56 = vrot.slane %v382_v50, %v398_v52  ;;  %s706_s14 = scalar_lea.vmem [#allocation2], %s2215_s30  ;;  %s3101_s2 = scalar_lea.vmem [#allocation10], %s2122_s13 }
  0x8d   : > { %877 = vmatpush1.bf16.msra.mxu0 %v2908_v21  ;;  %918 = vmatpush1.bf16.msra.mxu1 %v2911_v22  ;;  %s990_s29 = scalar_lea.vmem %s3101_s2, %s2179_s15 [#allocation10]  ;;  %s2235_s22 = smul.u32 40, %s2622_s18 }
  0x8e   : > { %878 = vmatprep.subr.bf16.mxu0 %v2916_v23  ;;  %529 = vmatprep.mubr.bf16.mxu0 %v2638_v0  ;;  %s2236_s28 = smul.u32 24, %s2622_s18  ;;  %s2143_s30 = sshll.u32 %s2622_s18, 3 }
  0x8f   : > { %602 = vmatprep.mubr.bf16.mxu1 %v2638_v0  ;;  %919 = vmatprep.subr.bf16.mxu1 %v2919_v24  ;;  %s3139_s12 = sadd.s32 8, %s2235_s22  ;;  %p3544_p11 = scmp.ne.s32.totalorder %s3532_s27, 0 }
  0x90   : > { %s995_s21 = sshra.s32 %s3139_s12, 3  ;;  %s3186_s10 = sadd.s32 16, %s2236_s28 }
  0x91   : > { %879 = vmatpush1.bf16.msra.mxu0 %v2924_v25  ;;  %920 = vmatpush1.bf16.msra.mxu1 %v2932_v27  ;;  %s2218_s25 = sshll.u32 %s995_s21, 5  ;;  %s2183_s8 = sshll.u32 %s995_s21, 2 }
  0x92   : > { %880 = vmatprep.subr.bf16.mxu0 %v2927_v26  ;;  %921 = vmatprep.subr.bf16.mxu1 %v2937_v28  ;;  %s999_s24 = scalar_lea.vmem [#allocation2], %s2218_s25  ;;  %s1113_s7 = scalar_lea.vmem %s3101_s2, %s2183_s8 [#allocation10] }
  0x93   : > { %s1118_s9 = sshra.s32 %s3186_s10, 3  ;;  %s1360_s21 = ssub.s32 4, %s2622_s18 }
  0x94   : > { %2137 = vmatmul.mubr.msk.bf16.gmra.mrb[8].mxu0 %vm464_vm0, %v2345_v29  ;;  %2141 = vmatmul.mubr.msk.bf16.gmra.mrb[8].mxu1 %vm464_vm0, %v2345_v29  ;;  %s2221_s11 = sshll.u32 %s1118_s9, 5  ;;  %s2187_s6 = sshll.u32 %s1118_s9, 2 }
  0x95   : > { %881 = vmatpush1.bf16.msra.mxu0 %v2945_v30  ;;  %922 = vmatpush1.bf16.msra.mxu1 %v2950_v31  ;;  %s1122_s1 = scalar_lea.vmem [#allocation2], %s2221_s11  ;;  %s1236_s5 = scalar_lea.vmem %s3101_s2, %s2187_s6 [#allocation10] }
  0x96   : > { %882 = vmatprep.subr.bf16.mxu0 %v2955_v32  ;;  %539 = vmatprep.mubr.bf16.mxu0 %v2638_v0  ;;  %s3346_s25 = sshll.u32 %s1360_s21, 3  ;;  %s2237_s9 = smul.u32 4294967272, %s2622_s18 }
  0x97   : > { %612 = vmatprep.mubr.bf16.mxu1 %v2638_v0  ;;  %923 = vmatprep.subr.bf16.mxu1 %v2958_v33 }
  0x98   : > { %s3423_s11 = sadd.s32 40, %s2237_s9 }
  0x99   : > { %883 = vmatpush1.bf16.msra.mxu0 %v2963_v34  ;;  %924 = vmatpush1.bf16.msra.mxu1 %v2971_v36 }
  0x9a   : > { %884 = vmatprep.subr.bf16.mxu0 %v2968_v35  ;;  %925 = vmatprep.subr.bf16.mxu1 %v2976_v37 }
  0x9c   : > { %2138 = vmatmul.mubr.msk.bf16.gmra.mrb[12].mxu0 %vm464_vm0, %v2358_v38  ;;  %2142 = vmatmul.mubr.msk.bf16.gmra.mrb[12].mxu1 %vm464_vm0, %v2358_v38 }
  0x9d   : > { %885 = vmatpush1.bf16.msra.mxu0 %v2986_v39  ;;  %926 = vmatpush1.bf16.msra.mxu1 %v2989_v40 }
  0x9e   : > { %886 = vmatprep.subr.bf16.mxu0 %v2994_v41  ;;  %904 = vmatprep.mubr.bf16.mxu0 %v2638_v0 }
  0x9f   : > { %927 = vmatprep.subr.bf16.mxu1 %v2997_v42  ;;  %945 = vmatprep.mubr.bf16.mxu1 %v2638_v0 }
  0xa1   : > { %887 = vmatpush1.bf16.msra.mxu0 %v3004_v43  ;;  %928 = vmatpush1.bf16.msra.mxu1 %v3007_v44 }
  0xa2   : > { %1004 = vmatprep.subr.bf16.mxu0 %v2863_v10  ;;  %1045 = vmatprep.subr.bf16.mxu1 %v2869_v12 }
  0xa4   : > { %905 = vmatmul.mubr.bf16.vlgmr.msra.gmra.mrb[16].mxu0 %v2639_v45  ;;  %946 = vmatmul.mubr.bf16.vlgmr.msra.gmra.mrb[16].mxu1 %v2639_v45 }
  0xa5   : > { %1005 = vmatpush1.bf16.msra.mxu0 %v2866_v11  ;;  %1046 = vmatpush1.bf16.msra.mxu1 %v2876_v14 }
  0xa6   : > { %1006 = vmatprep.subr.bf16.mxu0 %v2873_v13  ;;  %1047 = vmatprep.subr.bf16.mxu1 %v2887_v16 }
  0xa7   : > { %1036 = vmatprep.mubr.bf16.mxu0 %v2638_v0  ;;  %1077 = vmatprep.mubr.bf16.mxu1 %v2638_v0 }
  0xa9   : > { %1007 = vmatpush1.bf16.msra.mxu0 %v2882_v15  ;;  %1048 = vmatpush1.bf16.msra.mxu1 %v2895_v18 }
  0xaa   : > { %1008 = vmatprep.subr.bf16.mxu0 %v2892_v17  ;;  %1049 = vmatprep.subr.bf16.mxu1 %v2900_v19 }
  0xad   : > { %1009 = vmatpush1.bf16.msra.mxu0 %v2908_v21  ;;  %1050 = vmatpush1.bf16.msra.mxu1 %v2911_v22 }
  0xae   : > { %1010 = vmatprep.subr.bf16.mxu0 %v2916_v23  ;;  %1051 = vmatprep.subr.bf16.mxu1 %v2919_v24 }
  0xb1   : > { %1011 = vmatpush1.bf16.msra.mxu0 %v2924_v25  ;;  %1052 = vmatpush1.bf16.msra.mxu1 %v2932_v27 }
  0xb2   : > { %1012 = vmatprep.subr.bf16.mxu0 %v2927_v26  ;;  %1053 = vmatprep.subr.bf16.mxu1 %v2937_v28 }
  0xb5   : > { %1013 = vmatpush1.bf16.msra.mxu0 %v2945_v30  ;;  %1054 = vmatpush1.bf16.msra.mxu1 %v2950_v31 }
  0xb6   : > { %1014 = vmatprep.subr.bf16.mxu0 %v2955_v32  ;;  %1055 = vmatprep.subr.bf16.mxu1 %v2958_v33 }
  0xb9   : > { %1015 = vmatpush1.bf16.msra.mxu0 %v2963_v34  ;;  %1056 = vmatpush1.bf16.msra.mxu1 %v2971_v36 }
  0xba   : > { %1016 = vmatprep.subr.bf16.mxu0 %v2968_v35  ;;  %1057 = vmatprep.subr.bf16.mxu1 %v2976_v37 }
  0xbd   : > { %1017 = vmatpush1.bf16.msra.mxu0 %v2986_v39  ;;  %1058 = vmatpush1.bf16.msra.mxu1 %v2989_v40 }
  0xbe   : > { %1018 = vmatprep.subr.bf16.mxu0 %v2994_v41  ;;  %1059 = vmatprep.subr.bf16.mxu1 %v2997_v42 }
  0xc1   : > { %1019 = vmatpush1.bf16.msra.mxu0 %v3004_v43  ;;  %1060 = vmatpush1.bf16.msra.mxu1 %v3007_v44 }
  0xc2   : > { %1127 = vmatprep.subr.bf16.mxu0 %v2863_v10  ;;  %1168 = vmatprep.subr.bf16.mxu1 %v2869_v12 }
 0x157   : > { %v511_v57 = vpop.f32.mrb[0].mxu0  ;;  %v584_v58 = vpop.f32.mrb[0].mxu1 }
 0x158   : > { %v512_v59 = vadd.f32 %v511_v57, %v3052_v53  ;;  %v585_v60 = vadd.f32 %v584_v58, %v3054_v54  ;;  %v513_v61 = vpop.f32.mrb[1].mxu0  ;;  %v586_v62 = vpop.f32.mrb[1].mxu1 }
 0x159   : > { %v514_v63 = vadd.f32 %v513_v61, %v3056_v55  ;;  %v587_v1 = vadd.f32 %v586_v62, %v3058_v56  ;;  %v515_v2 = vpop.f32.mrb[2].mxu0  ;;  %v588_v3 = vpop.f32.mrb[2].mxu1 }
 0x15a   : > { %623 = vst [vmem:[#allocation2] sm:$0xff] %v512_v59  ;;  %625 = vst [vmem:[#allocation2 + $0x10] sm:$0xff] %v585_v60  ;;  %v516_v4 = vadd.f32 %v515_v2, %v3052_v53  ;;  %v589_v5 = vadd.f32 %v588_v3, %v3054_v54  ;;  %v517_v6 = vpop.f32.mrb[3].mxu0  ;;  %v590_v7 = vpop.f32.mrb[3].mxu1 }
 0x15b   : > { %624 = vst [vmem:[#allocation2 + $0x8] sm:$0xff] %v514_v63  ;;  %626 = vst [vmem:[#allocation2 + $0x18] sm:$0xff] %v587_v1  ;;  %v518_v8 = vadd.f32 %v517_v6, %v3056_v55  ;;  %v591_v9 = vadd.f32 %v590_v7, %v3058_v56 }
 0x15c   : > { %627 = vst [vmem:[#allocation2 + $0x20] sm:$0xff] %v516_v4  ;;  %629 = vst [vmem:[#allocation2 + $0x30] sm:$0xff] %v589_v5 }
 0x15d   : > { %628 = vst [vmem:[#allocation2 + $0x28] sm:$0xff] %v518_v8  ;;  %630 = vst [vmem:[#allocation2 + $0x38] sm:$0xff] %v591_v9 }
 0x15f   : > { %v521_v20 = vpop.f32.mrb[4].mxu0  ;;  %v594_v29 = vpop.f32.mrb[4].mxu1 }
 0x160   : > { %v522_v38 = vadd.f32 %v521_v20, %v3052_v53  ;;  %v595_v45 = vadd.f32 %v594_v29, %v3054_v54  ;;  %v523_v46 = vpop.f32.mrb[5].mxu0  ;;  %v596_v47 = vpop.f32.mrb[5].mxu1 }
 0x161   : > { %v524_v48 = vadd.f32 %v523_v46, %v3056_v55  ;;  %v597_v49 = vadd.f32 %v596_v47, %v3058_v56  ;;  %v525_v50 = vpop.f32.mrb[6].mxu0  ;;  %v598_v51 = vpop.f32.mrb[6].mxu1 }
 0x162   : > { %631 = vst [vmem:[#allocation2 + $0x40] sm:$0xff] %v522_v38  ;;  %633 = vst [vmem:[#allocation2 + $0x50] sm:$0xff] %v595_v45  ;;  %v526_v52 = vadd.f32 %v525_v50, %v3052_v53  ;;  %v599_v57 = vadd.f32 %v598_v51, %v3054_v54  ;;  %v527_v58 = vpop.f32.mrb[7].mxu0  ;;  %v600_v59 = vpop.f32.mrb[7].mxu1 }
 0x163   : > { %632 = vst [vmem:[#allocation2 + $0x48] sm:$0xff] %v524_v48  ;;  %634 = vst [vmem:[#allocation2 + $0x58] sm:$0xff] %v597_v49  ;;  %v528_v60 = vadd.f32 %v527_v58, %v3056_v55  ;;  %v601_v61 = vadd.f32 %v600_v59, %v3058_v56 }
 0x164   : > { %635 = vst [vmem:[#allocation2 + $0x60] sm:$0xff] %v526_v52  ;;  %637 = vst [vmem:[#allocation2 + $0x70] sm:$0xff] %v599_v57 }
 0x165   : > { %636 = vst [vmem:[#allocation2 + $0x68] sm:$0xff] %v528_v60  ;;  %638 = vst [vmem:[#allocation2 + $0x78] sm:$0xff] %v601_v61 }
 0x167   : > { %v531_v62 = vpop.f32.mrb[8].mxu0  ;;  %v604_v63 = vpop.f32.mrb[8].mxu1 }
 0x168   : > { %v532_v1 = vadd.f32 %v531_v62, %v3052_v53  ;;  %v605_v2 = vadd.f32 %v604_v63, %v3054_v54  ;;  %v533_v3 = vpop.f32.mrb[9].mxu0  ;;  %v606_v4 = vpop.f32.mrb[9].mxu1 }
 0x169   : > { %v534_v5 = vadd.f32 %v533_v3, %v3056_v55  ;;  %v607_v6 = vadd.f32 %v606_v4, %v3058_v56  ;;  %v535_v7 = vpop.f32.mrb[10].mxu0  ;;  %v608_v8 = vpop.f32.mrb[10].mxu1 }
 0x16a   : > { %639 = vst [vmem:[#allocation2 + $0x80] sm:$0xff] %v532_v1  ;;  %641 = vst [vmem:[#allocation2 + $0x90] sm:$0xff] %v605_v2  ;;  %v536_v9 = vadd.f32 %v535_v7, %v3052_v53  ;;  %v609_v20 = vadd.f32 %v608_v8, %v3054_v54  ;;  %v537_v29 = vpop.f32.mrb[11].mxu0  ;;  %v610_v38 = vpop.f32.mrb[11].mxu1 }
 0x16b   : > { %640 = vst [vmem:[#allocation2 + $0x88] sm:$0xff] %v534_v5  ;;  %642 = vst [vmem:[#allocation2 + $0x98] sm:$0xff] %v607_v6  ;;  %v538_v45 = vadd.f32 %v537_v29, %v3056_v55  ;;  %v611_v46 = vadd.f32 %v610_v38, %v3058_v56 }
 0x16c   : > { %643 = vst [vmem:[#allocation2 + $0xa0] sm:$0xff] %v536_v9  ;;  %645 = vst [vmem:[#allocation2 + $0xb0] sm:$0xff] %v609_v20 }
 0x16d   : > { %644 = vst [vmem:[#allocation2 + $0xa8] sm:$0xff] %v538_v45  ;;  %646 = vst [vmem:[#allocation2 + $0xb8] sm:$0xff] %v611_v46 }
 0x16f   : > { %v541_v47 = vpop.f32.mrb[12].mxu0  ;;  %v614_v48 = vpop.f32.mrb[12].mxu1 }
 0x170   : > { %v542_v49 = vadd.f32 %v541_v47, %v3052_v53  ;;  %v615_v50 = vadd.f32 %v614_v48, %v3054_v54  ;;  %v543_v51 = vpop.f32.mrb[13].mxu0  ;;  %v616_v52 = vpop.f32.mrb[13].mxu1 }
 0x171   : > { %v544_v57 = vadd.f32 %v543_v51, %v3056_v55  ;;  %v617_v58 = vadd.f32 %v616_v52, %v3058_v56  ;;  %v545_v59 = vpop.f32.mrb[14].mxu0  ;;  %v618_v60 = vpop.f32.mrb[14].mxu1 }
 0x172   : > { %647 = vst [vmem:[#allocation2 + $0xc0] sm:$0xff] %v542_v49  ;;  %649 = vst [vmem:[#allocation2 + $0xd0] sm:$0xff] %v615_v50  ;;  %v546_v61 = vadd.f32 %v545_v59, %v3052_v53  ;;  %v619_v62 = vadd.f32 %v618_v60, %v3054_v54  ;;  %v547_v63 = vpop.f32.mrb[15].mxu0  ;;  %v620_v1 = vpop.f32.mrb[15].mxu1 }
 0x173   : > { %648 = vst [vmem:[#allocation2 + $0xc8] sm:$0xff] %v544_v57  ;;  %650 = vst [vmem:[#allocation2 + $0xd8] sm:$0xff] %v617_v58  ;;  %v548_v2 = vadd.f32 %v547_v63, %v3056_v55  ;;  %v621_v3 = vadd.f32 %v620_v1, %v3058_v56 }
 0x174   : > { %651 = vst [vmem:[#allocation2 + $0xe0] sm:$0xff] %v546_v61  ;;  %653 = vst [vmem:[#allocation2 + $0xf0] sm:$0xff] %v619_v62 }
 0x175   : > { %652 = vst [vmem:[#allocation2 + $0xe8] sm:$0xff] %v548_v2  ;;  %654 = vst [vmem:[#allocation2 + $0xf8] sm:$0xff] %v621_v3 }
 0x177   : > { %v906_v4 = vpop.f32.mrb[16].mxu0  ;;  %v947_v53 = vpop.f32.mrb[16].mxu1 }
 0x178   : > { %v908_v5 = vpop.f32.mrb[17].mxu0  ;;  %v949_v54 = vpop.f32.mrb[17].mxu1 }
 0x179   : > { %v910_v6 = vpop.f32.mrb[18].mxu0  ;;  %v951_v7 = vpop.f32.mrb[18].mxu1 }
 0x17a   : > { %v911_v8 = vpop.f32.mrb[19].mxu0  ;;  %v952_v9 = vpop.f32.mrb[19].mxu1 }
 0x17c   : > { %v707_v55 = vld [vmem:[%s706_s14] sm:$0xff]  ;;  %v708_v20 = vld [vmem:[%s706_s14 + $0x8] sm:$0xff]  ;;  %v709_v38 = vld [vmem:[%s706_s14 + $0x10] sm:$0xff] }
 0x17d   : > { %v954_v56 = vadd.f32 %v906_v4, %v707_v55  ;;  %v955_v29 = vadd.f32 %v908_v5, %v708_v20  ;;  %v956_v47 = vadd.f32 %v947_v53, %v709_v38  ;;  %v710_v48 = vld [vmem:[%s706_s14 + $0x18] sm:$0xff]  ;;  %v1000_v6 = vld [vmem:[%s999_s24] sm:$0xff]  ;;  %v1001_v55 = vld [vmem:[%s999_s24 + $0x8] sm:$0xff]  ;;  %s3239_s14 = sadd.s32 24, %s2143_s30 }
 0x17e   : > { %v957_v49 = vadd.f32 %v949_v54, %v710_v48  ;;  %s1240_s13 = sshra.s32 %s3239_s14, 3  ;;  %s2238_s14 = smul.u32 4294967256, %s2622_s18 }
 0x17f   : > { %v964_v45 = vmul.f32 0.5, %v954_v56  ;;  %v965_v46 = vmul.f32 0.5, %v955_v29  ;;  %s2224_s15 = sshll.u32 %s1240_s13, 5  ;;  %s2191_s22 = sshll.u32 %s1240_s13, 2 }
 0x180   : > { %v967_v50 = vmul.f32 0.5, %v957_v49  ;;  %v1002_v49 = vld [vmem:[%s999_s24 + $0x10] sm:$0xff]  ;;  %s1358_s12 = scalar_lea.vmem %s3101_s2, %s2191_s22 [#allocation10]  ;;  %s3468_s13 = sadd.s32 48, %s2238_s14 }
 0x181   : > { %2374 = vtanh.f32 %v964_v45 }
 0x182   : > { %2376 = vtanh.f32 %v965_v46 }
 0x183   : > { %2378 = vtanh.f32 %v956_v47 }
 0x184   : > { %2380 = vtanh.f32 %v967_v50 }
 0x18b   : > { %v2375_v51 = vpop.eup %2374 }
 0x18c   : > { %v2377_v52 = vpop.eup %2376  ;;  %v972_v57 = vmul.f32 0.5, %v2375_v51 }
 0x18d   : > { %v973_v58 = vmul.f32 0.5, %v2377_v52  ;;  %v2379_v60 = vpop.eup %2378  ;;  %v1003_v52 = vld [vmem:[%s999_s24 + $0x18] sm:$0xff]  ;;  %s1362_s24 = sshra.s32 %s3346_s25, 3  ;;  %s2239_s25 = smul.u32 4294967240, %s2622_s18 }
 0x18e   : > { %v979_v59 = vadd.f32 0.5, %v972_v57  ;;  %v2381_v2 = vpop.eup %2380  ;;  %s2225_s8 = sshll.u32 %s1362_s24, 5  ;;  %s2195_s28 = sshll.u32 %s1362_s24, 2 }
 0x18f   : > { %v980_v61 = vadd.f32 0.5, %v973_v58  ;;  %v975_v3 = vmul.f32 0.5, %v2381_v2  ;;  %s1480_s10 = scalar_lea.vmem %s3101_s2, %s2195_s28 [#allocation10]  ;;  %s3478_s24 = sadd.s32 56, %s2239_s25 }
 0x190   : > { %v984_v62 = vmul.f32 %v2379_v60, %v979_v59 }
 0x191   : > { %v983_v63 = vmul.f32 0.0, %v980_v61  ;;  %v982_v4 = vadd.f32 0.5, %v975_v3 }
 0x193   : > { %v3096_v1 = vadd.f32 %v984_v62, %v983_v63 }
 0x195   : > { %2382 = vtanh.f32 %v3096_v1 }
 0x19f   : > { %v2383_v53 = vpop.eup %2382 }
 0x1a0   : > { %v987_v5 = vmul.f32 %v2383_v53, %v982_v4 }
 0x1a2   : > { %v988_v54 = vpack.c.bf16 %v987_v5, %v987_v5 }
 0x1a4   : > { %991 = vst [vmem:[%s990_s29] sm:$0xf] %v988_v54  ;;  %1037 = vmatmul.mubr.bf16.vlgmr.msra.gmra.mrb[20].mxu0 %v988_v54  ;;  %1078 = vmatmul.mubr.bf16.vlgmr.msra.gmra.mrb[20].mxu1 %v988_v54  ;;  %s1244_s29 = scalar_lea.vmem [#allocation2], %s2224_s15  ;;  %s1608_s15 = sshra.s32 %s3468_s13, 3 }
 0x1a5   : > { %1128 = vmatpush1.bf16.msra.mxu0 %v2866_v11  ;;  %1169 = vmatpush1.bf16.msra.mxu1 %v2876_v14 }
 0x1a6   : > { %1129 = vmatprep.subr.bf16.mxu0 %v2873_v13  ;;  %1170 = vmatprep.subr.bf16.mxu1 %v2887_v16 }
 0x1a7   : > { %1159 = vmatprep.mubr.bf16.mxu0 %v2638_v0  ;;  %1200 = vmatprep.mubr.bf16.mxu1 %v2638_v0 }
 0x1a9   : > { %1130 = vmatpush1.bf16.msra.mxu0 %v2882_v15  ;;  %1171 = vmatpush1.bf16.msra.mxu1 %v2895_v18 }
 0x1aa   : > { %1131 = vmatprep.subr.bf16.mxu0 %v2892_v17  ;;  %1172 = vmatprep.subr.bf16.mxu1 %v2900_v19 }
 0x1ad   : > { %1132 = vmatpush1.bf16.msra.mxu0 %v2908_v21  ;;  %1173 = vmatpush1.bf16.msra.mxu1 %v2911_v22 }
 0x1ae   : > { %1133 = vmatprep.subr.bf16.mxu0 %v2916_v23  ;;  %1174 = vmatprep.subr.bf16.mxu1 %v2919_v24 }
 0x1b1   : > { %1134 = vmatpush1.bf16.msra.mxu0 %v2924_v25  ;;  %1175 = vmatpush1.bf16.msra.mxu1 %v2932_v27 }
 0x1b2   : > { %1135 = vmatprep.subr.bf16.mxu0 %v2927_v26  ;;  %1176 = vmatprep.subr.bf16.mxu1 %v2937_v28 }
 0x1b5   : > { %1136 = vmatpush1.bf16.msra.mxu0 %v2945_v30  ;;  %1177 = vmatpush1.bf16.msra.mxu1 %v2950_v31 }
 0x1b6   : > { %1137 = vmatprep.subr.bf16.mxu0 %v2955_v32  ;;  %1178 = vmatprep.subr.bf16.mxu1 %v2958_v33 }
 0x1b9   : > { %1138 = vmatpush1.bf16.msra.mxu0 %v2963_v34  ;;  %1179 = vmatpush1.bf16.msra.mxu1 %v2971_v36 }
 0x1ba   : > { %1139 = vmatprep.subr.bf16.mxu0 %v2968_v35  ;;  %1180 = vmatprep.subr.bf16.mxu1 %v2976_v37 }
 0x1bd   : > { %1140 = vmatpush1.bf16.msra.mxu0 %v2986_v39  ;;  %1181 = vmatpush1.bf16.msra.mxu1 %v2989_v40 }
 0x1be   : > { %1141 = vmatprep.subr.bf16.mxu0 %v2994_v41  ;;  %1182 = vmatprep.subr.bf16.mxu1 %v2997_v42 }
 0x1c1   : > { %1142 = vmatpush1.bf16.msra.mxu0 %v3004_v43  ;;  %1183 = vmatpush1.bf16.msra.mxu1 %v3007_v44 }
 0x1c2   : > { %1249 = vmatprep.subr.bf16.mxu0 %v2863_v10  ;;  %1290 = vmatprep.subr.bf16.mxu1 %v2869_v12 }
 0x277   : > { %v1038_v7 = vpop.f32.mrb[20].mxu0  ;;  %v1079_v8 = vpop.f32.mrb[20].mxu1 }
 0x278   : > { %v1086_v9 = vadd.f32 %v1038_v7, %v1000_v6  ;;  %v1040_v20 = vpop.f32.mrb[21].mxu0  ;;  %v1081_v56 = vpop.f32.mrb[21].mxu1  ;;  %v1088_v51 = vadd.f32 %v1079_v8, %v1002_v49 }
 0x279   : > { %v1087_v29 = vadd.f32 %v1040_v20, %v1001_v55  ;;  %v1042_v38 = vpop.f32.mrb[22].mxu0  ;;  %v1083_v45 = vpop.f32.mrb[22].mxu1  ;;  %v1089_v57 = vadd.f32 %v1081_v56, %v1003_v52 }
 0x27a   : > { %v1090_v46 = vmul.f32 0.5, %v1086_v9  ;;  %v1043_v47 = vpop.f32.mrb[23].mxu0  ;;  %v1084_v48 = vpop.f32.mrb[23].mxu1  ;;  %v1124_v38 = vld [vmem:[%s1122_s1 + $0x8] sm:$0xff] }
 0x27b   : > { %v1091_v50 = vmul.f32 0.5, %v1087_v29  ;;  %v1093_v58 = vmul.f32 0.5, %v1089_v57 }
 0x27c   : > { %2384 = vtanh.f32 %v1090_v46 }
 0x27d   : > { %2386 = vtanh.f32 %v1091_v50 }
 0x27e   : > { %2388 = vtanh.f32 %v1088_v51  ;;  %v1125_v51 = vld [vmem:[%s1122_s1 + $0x10] sm:$0xff] }
 0x27f   : > { %2390 = vtanh.f32 %v1093_v58  ;;  %v1126_v58 = vld [vmem:[%s1122_s1 + $0x18] sm:$0xff] }
 0x286   : > { %v2385_v59 = vpop.eup %2384 }
 0x287   : > { %v2387_v60 = vpop.eup %2386  ;;  %v1098_v61 = vmul.f32 0.5, %v2385_v59 }
 0x288   : > { %v1099_v62 = vmul.f32 0.5, %v2387_v60  ;;  %v2389_v2 = vpop.eup %2388 }
 0x289   : > { %v1102_v63 = vadd.f32 0.5, %v1098_v61  ;;  %v2391_v54 = vpop.eup %2390 }
 0x28a   : > { %v1103_v3 = vadd.f32 0.5, %v1099_v62  ;;  %v1101_v6 = vmul.f32 0.5, %v2391_v54 }
 0x28b   : > { %v1107_v4 = vmul.f32 %v2389_v2, %v1102_v63 }
 0x28c   : > { %v1106_v53 = vmul.f32 %v1103_v3, %v3096_v1  ;;  %v1105_v7 = vadd.f32 0.5, %v1101_v6  ;;  %v1123_v1 = vld [vmem:[%s1122_s1] sm:$0xff]  ;;  %s1485_s1 = sshra.s32 %s3423_s11, 3  ;;  %s2209_s11 = sshll.u32 (%p3544_p11), %s2622_s18, 2 }
 0x28d   : > { %s2228_s6 = sshll.u32 %s1485_s1, 5 }
 0x28e   : > { %v3145_v5 = vadd.f32 %v1107_v4, %v1106_v53 }
 0x290   : > { %2392 = vtanh.f32 %v3145_v5 }
 0x29a   : > { %v2393_v8 = vpop.eup %2392 }
 0x29b   : > { %v1110_v9 = vmul.f32 %v2393_v8, %v1105_v7 }
 0x29d   : > { %v1111_v55 = vpack.c.bf16 %v1110_v9, %v1110_v9 }
 0x29f   : > { %1114 = vst [vmem:[%s1113_s7] sm:$0xf] %v1111_v55  ;;  %1160 = vmatmul.mubr.bf16.vlgmr.msra.gmra.mrb[24].mxu0 %v1111_v55  ;;  %1201 = vmatmul.mubr.bf16.vlgmr.msra.gmra.mrb[24].mxu1 %v1111_v55  ;;  %s1366_s7 = scalar_lea.vmem [#allocation2], %s2225_s8  ;;  %s1731_s8 = sshra.s32 %s3478_s24, 3 }
 0x2a0   : > { %1250 = vmatpush1.bf16.msra.mxu0 %v2866_v11  ;;  %1291 = vmatpush1.bf16.msra.mxu1 %v2876_v14 }
 0x2a1   : > { %1251 = vmatprep.subr.bf16.mxu0 %v2873_v13  ;;  %1292 = vmatprep.subr.bf16.mxu1 %v2887_v16 }
 0x2a2   : > { %1281 = vmatprep.mubr.bf16.mxu0 %v2638_v0  ;;  %1322 = vmatprep.mubr.bf16.mxu1 %v2638_v0 }
 0x2a4   : > { %1252 = vmatpush1.bf16.msra.mxu0 %v2882_v15  ;;  %1293 = vmatpush1.bf16.msra.mxu1 %v2895_v18 }
 0x2a5   : > { %1253 = vmatprep.subr.bf16.mxu0 %v2892_v17  ;;  %1294 = vmatprep.subr.bf16.mxu1 %v2900_v19 }
 0x2a8   : > { %1254 = vmatpush1.bf16.msra.mxu0 %v2908_v21  ;;  %1295 = vmatpush1.bf16.msra.mxu1 %v2911_v22 }
 0x2a9   : > { %1255 = vmatprep.subr.bf16.mxu0 %v2916_v23  ;;  %1296 = vmatprep.subr.bf16.mxu1 %v2919_v24 }
 0x2ac   : > { %1256 = vmatpush1.bf16.msra.mxu0 %v2924_v25  ;;  %1297 = vmatpush1.bf16.msra.mxu1 %v2932_v27 }
 0x2ad   : > { %1257 = vmatprep.subr.bf16.mxu0 %v2927_v26  ;;  %1298 = vmatprep.subr.bf16.mxu1 %v2937_v28 }
 0x2b0   : > { %1258 = vmatpush1.bf16.msra.mxu0 %v2945_v30  ;;  %1299 = vmatpush1.bf16.msra.mxu1 %v2950_v31 }
 0x2b1   : > { %1259 = vmatprep.subr.bf16.mxu0 %v2955_v32  ;;  %1300 = vmatprep.subr.bf16.mxu1 %v2958_v33 }
 0x2b4   : > { %1260 = vmatpush1.bf16.msra.mxu0 %v2963_v34  ;;  %1301 = vmatpush1.bf16.msra.mxu1 %v2971_v36 }
 0x2b5   : > { %1261 = vmatprep.subr.bf16.mxu0 %v2968_v35  ;;  %1302 = vmatprep.subr.bf16.mxu1 %v2976_v37 }
 0x2b8   : > { %1262 = vmatpush1.bf16.msra.mxu0 %v2986_v39  ;;  %1303 = vmatpush1.bf16.msra.mxu1 %v2989_v40 }
 0x2b9   : > { %1263 = vmatprep.subr.bf16.mxu0 %v2994_v41  ;;  %1304 = vmatprep.subr.bf16.mxu1 %v2997_v42 }
 0x2bc   : > { %1264 = vmatpush1.bf16.msra.mxu0 %v3004_v43  ;;  %1305 = vmatpush1.bf16.msra.mxu1 %v3007_v44 }
 0x2bd   : > { %1371 = vmatprep.subr.bf16.mxu0 %v2863_v10  ;;  %1412 = vmatprep.subr.bf16.mxu1 %v2869_v12 }
 0x372   : > { %v1161_v20 = vpop.f32.mrb[24].mxu0  ;;  %v1202_v56 = vpop.f32.mrb[24].mxu1 }
 0x373   : > { %v1209_v29 = vadd.f32 %v1161_v20, %v1123_v1  ;;  %v1163_v45 = vpop.f32.mrb[25].mxu0  ;;  %v1204_v46 = vpop.f32.mrb[25].mxu1  ;;  %v1211_v57 = vadd.f32 %v1202_v56, %v1125_v51 }
 0x374   : > { %v1210_v47 = vadd.f32 %v1163_v45, %v1124_v38  ;;  %v1165_v10 = vpop.f32.mrb[26].mxu0  ;;  %v1206_v48 = vpop.f32.mrb[26].mxu1  ;;  %v1212_v59 = vadd.f32 %v1204_v46, %v1126_v58 }
 0x375   : > { %v1213_v12 = vmul.f32 0.5, %v1209_v29  ;;  %v1166_v49 = vpop.f32.mrb[27].mxu0  ;;  %v1207_v50 = vpop.f32.mrb[27].mxu1 }
 0x376   : > { %v1214_v52 = vmul.f32 0.5, %v1210_v47  ;;  %v1216_v60 = vmul.f32 0.5, %v1212_v59 }
 0x377   : > { %2394 = vtanh.f32 %v1213_v12 }
 0x378   : > { %2396 = vtanh.f32 %v1214_v52 }
 0x379   : > { %2398 = vtanh.f32 %v1211_v57 }
 0x37a   : > { %2400 = vtanh.f32 %v1216_v60 }
 0x381   : > { %v2395_v61 = vpop.eup %2394 }
 0x382   : > { %v2397_v62 = vpop.eup %2396  ;;  %v1221_v63 = vmul.f32 0.5, %v2395_v61  ;;  %v3252_v61 = vld [vmem:[%s2851_s23] ss:$16 sps:$4 sm:$0xff]  }
 0x383   : > { %v1222_v2 = vmul.f32 0.5, %v2397_v62  ;;  %v2399_v4 = vpop.eup %2398  ;;  %v3256_v62 = vld [vmem:[%s2851_s23 + $0x8] ss:$16 sps:$4 sm:$0xff]  }
 0x384   : > { %v1225_v3 = vadd.f32 0.5, %v1221_v63  ;;  %v2401_v8 = vpop.eup %2400  ;;  %v3260_v63 = vld [vmem:[%s2851_s23 + $0x24] ss:$16 sps:$4 sm:$0xff]  }
 0x385   : > { %v1226_v53 = vadd.f32 0.5, %v1222_v2  ;;  %v1224_v9 = vmul.f32 0.5, %v2401_v8  ;;  %v3264_v2 = vld [vmem:[%s2851_s23 + $0x2c] ss:$16 sps:$4 sm:$0xff]   ;;  %v3294_v8 = vld [vmem:[%s2851_s23 + $0x64] ss:$16 sps:$4 sm:$0xff]  }
 0x386   : > { %v1230_v54 = vmul.f32 %v2399_v4, %v1225_v3  ;;  %v3270_v3 = vld [vmem:[%s2851_s23 + $0x20] ss:$16 sps:$4 sm:$0xff]   ;;  %v3274_v4 = vld [vmem:[%s2851_s23 + $0x28] ss:$16 sps:$4 sm:$0xff]  }
 0x387   : > { %v1229_v6 = vmul.f32 %v1226_v53, %v3145_v5  ;;  %v1228_v55 = vadd.f32 0.5, %v1224_v9  ;;  %v3278_v53 = vld [vmem:[%s2851_s23 + $0x44] ss:$16 sps:$4 sm:$0xff]   ;;  %v3298_v9 = vld [vmem:[%s2851_s23 + $0x6c] ss:$16 sps:$4 sm:$0xff]  }
 0x389   : > { %v3192_v7 = vadd.f32 %v1230_v54, %v1229_v6  ;;  %v3282_v54 = vld [vmem:[%s2851_s23 + $0x4c] ss:$16 sps:$4 sm:$0xff]   ;;  %v3286_v6 = vld [vmem:[%s2851_s23 + $0x40] ss:$16 sps:$4 sm:$0xff]  }
 0x38b   : > { %2402 = vtanh.f32 %v3192_v7 }
 0x395   : > { %v2403_v1 = vpop.eup %2402 }
 0x396   : > { %v1233_v20 = vmul.f32 %v2403_v1, %v1228_v55  ;;  %v3302_v55 = vld [vmem:[%s2851_s23 + $0x60] ss:$16 sps:$4 sm:$0xff]   ;;  %v3306_v1 = vld [vmem:[%s2851_s23 + $0x68] ss:$16 sps:$4 sm:$0xff]  }
 0x398   : > { %v1234_v56 = vpack.c.bf16 %v1233_v20, %v1233_v20  ;;  %v3310_v20 = vld [vmem:[%s2851_s23 + $0x84] ss:$16 sps:$4 sm:$0xff]  }
 0x39a   : > { %1237 = vst [vmem:[%s1236_s5] sm:$0xf] %v1234_v56  ;;  %1282 = vmatmul.mubr.bf16.vlgmr.msra.gmra.mrb[28].mxu0 %v1234_v56  ;;  %1323 = vmatmul.mubr.bf16.vlgmr.msra.gmra.mrb[28].mxu1 %v1234_v56  ;;  %v3314_v56 = vld [vmem:[%s2851_s23 + $0x8c] ss:$16 sps:$4 sm:$0xff]   ;;  %s1489_s5 = scalar_lea.vmem [#allocation2], %s2228_s6 }
 0x39b   : > { %1372 = vmatpush1.bf16.msra.mxu0 %v2866_v11  ;;  %1413 = vmatpush1.bf16.msra.mxu1 %v2876_v14  ;;  %v3231_v11 = vld [vmem:[%s2851_s23 + $0x4] ss:$16 sps:$4 sm:$0xff]  }
 0x39c   : > { %1373 = vmatprep.subr.bf16.mxu0 %v2873_v13  ;;  %1414 = vmatprep.subr.bf16.mxu1 %v2887_v16  ;;  %v3235_v13 = vld [vmem:[%s2851_s23 + $0xc] ss:$16 sps:$4 sm:$0xff]   ;;  %v1245_v14 = vld [vmem:[%s1244_s29] sm:$0xff] }
 0x39d   : > { %1403 = vmatprep.mubr.bf16.mxu0 %v2638_v0  ;;  %1444 = vmatprep.mubr.bf16.mxu1 %v2638_v0 }
 0x39f   : > { %1374 = vmatpush1.bf16.msra.mxu0 %v2882_v15  ;;  %1415 = vmatpush1.bf16.msra.mxu1 %v2895_v18  ;;  %v1246_v18 = vld [vmem:[%s1244_s29 + $0x8] sm:$0xff] }
 0x3a0   : > { %1375 = vmatprep.subr.bf16.mxu0 %v2892_v17  ;;  %1416 = vmatprep.subr.bf16.mxu1 %v2900_v19 }
 0x3a3   : > { %1376 = vmatpush1.bf16.msra.mxu0 %v2908_v21  ;;  %1417 = vmatpush1.bf16.msra.mxu1 %v2911_v22 }
 0x3a4   : > { %1377 = vmatprep.subr.bf16.mxu0 %v2916_v23  ;;  %1418 = vmatprep.subr.bf16.mxu1 %v2919_v24 }
 0x3a7   : > { %1378 = vmatpush1.bf16.msra.mxu0 %v2924_v25  ;;  %1419 = vmatpush1.bf16.msra.mxu1 %v2932_v27 }
 0x3a8   : > { %1379 = vmatprep.subr.bf16.mxu0 %v2927_v26  ;;  %1420 = vmatprep.subr.bf16.mxu1 %v2937_v28  ;;  %v1247_v28 = vld [vmem:[%s1244_s29 + $0x10] sm:$0xff] }
 0x3ab   : > { %1380 = vmatpush1.bf16.msra.mxu0 %v2945_v30  ;;  %1421 = vmatpush1.bf16.msra.mxu1 %v2950_v31 }
 0x3ac   : > { %1381 = vmatprep.subr.bf16.mxu0 %v2955_v32  ;;  %1422 = vmatprep.subr.bf16.mxu1 %v2958_v33  ;;  %v1248_v32 = vld [vmem:[%s1244_s29 + $0x18] sm:$0xff]  ;;  %s2231_s29 = sshll.u32 %s1608_s15, 5 }
 0x3ad   : > { %s1612_s22 = scalar_lea.vmem [#allocation2], %s2231_s29 }
 0x3af   : > { %1382 = vmatpush1.bf16.msra.mxu0 %v2963_v34  ;;  %1423 = vmatpush1.bf16.msra.mxu1 %v2971_v36 }
 0x3b0   : > { %1383 = vmatprep.subr.bf16.mxu0 %v2968_v35  ;;  %1424 = vmatprep.subr.bf16.mxu1 %v2976_v37 }
 0x3b3   : > { %1384 = vmatpush1.bf16.msra.mxu0 %v2986_v39  ;;  %1425 = vmatpush1.bf16.msra.mxu1 %v2989_v40 }
 0x3b4   : > { %1385 = vmatprep.subr.bf16.mxu0 %v2994_v41  ;;  %1426 = vmatprep.subr.bf16.mxu1 %v2997_v42 }
 0x3b7   : > { %1386 = vmatpush1.bf16.msra.mxu0 %v3004_v43  ;;  %1427 = vmatpush1.bf16.msra.mxu1 %v3007_v44 }
 0x3b8   : > { %1494 = vmatprep.subr.bf16.mxu0 %v3231_v11  ;;  %1535 = vmatprep.subr.bf16.mxu1 %v3235_v13 }
 0x46d   : > { %v1283_v15 = vpop.f32.mrb[28].mxu0  ;;  %v1324_v16 = vpop.f32.mrb[28].mxu1 }
 0x46e   : > { %v1331_v17 = vadd.f32 %v1283_v15, %v1245_v14  ;;  %v1285_v19 = vpop.f32.mrb[29].mxu0  ;;  %v1326_v21 = vpop.f32.mrb[29].mxu1  ;;  %v1333_v31 = vadd.f32 %v1324_v16, %v1247_v28  ;;  %v3318_v14 = vld [vmem:[%s2851_s23 + $0x80] ss:$16 sps:$4 sm:$0xff]   ;;  %v3322_v15 = vld [vmem:[%s2851_s23 + $0x88] ss:$16 sps:$4 sm:$0xff]  }
 0x46f   : > { %v1332_v22 = vadd.f32 %v1285_v19, %v1246_v18  ;;  %v1287_v23 = vpop.f32.mrb[30].mxu0  ;;  %v1328_v24 = vpop.f32.mrb[30].mxu1  ;;  %v1334_v33 = vadd.f32 %v1326_v21, %v1248_v32  ;;  %v3326_v16 = vld [vmem:[%s2851_s23 + $0xa4] ss:$16 sps:$4 sm:$0xff]  }
 0x470   : > { %v1335_v25 = vmul.f32 0.5, %v1331_v17  ;;  %v1288_v26 = vpop.f32.mrb[31].mxu0  ;;  %v1329_v27 = vpop.f32.mrb[31].mxu1  ;;  %v3330_v17 = vld [vmem:[%s2851_s23 + $0xac] ss:$16 sps:$4 sm:$0xff]  }
 0x471   : > { %v1336_v30 = vmul.f32 0.5, %v1332_v22  ;;  %v1338_v5 = vmul.f32 0.5, %v1334_v33  ;;  %v1369_v22 = vld [vmem:[%s1366_s7 + $0x10] sm:$0xff] }
 0x472   : > { %2404 = vtanh.f32 %v1335_v25  ;;  %v1370_v25 = vld [vmem:[%s1366_s7 + $0x18] sm:$0xff] }
 0x473   : > { %2406 = vtanh.f32 %v1336_v30 }
 0x474   : > { %2408 = vtanh.f32 %v1333_v31 }
 0x475   : > { %2410 = vtanh.f32 %v1338_v5 }
 0x47c   : > { %v2405_v29 = vpop.eup %2404 }
 0x47d   : > { %v2407_v38 = vpop.eup %2406  ;;  %v1343_v45 = vmul.f32 0.5, %v2405_v29 }
 0x47e   : > { %v1344_v46 = vmul.f32 0.5, %v2407_v38  ;;  %v2409_v10 = vpop.eup %2408 }
 0x47f   : > { %v1347_v47 = vadd.f32 0.5, %v1343_v45  ;;  %v2411_v51 = vpop.eup %2410 }
 0x480   : > { %v1348_v48 = vadd.f32 0.5, %v1344_v46  ;;  %v1346_v52 = vmul.f32 0.5, %v2411_v51 }
 0x481   : > { %v1352_v12 = vmul.f32 %v2409_v10, %v1347_v47 }
 0x482   : > { %v1351_v49 = vmul.f32 %v1348_v48, %v3192_v7  ;;  %v1350_v57 = vadd.f32 0.5, %v1346_v52  ;;  %v3290_v7 = vld [vmem:[%s2851_s23 + $0x48] ss:$16 sps:$4 sm:$0xff]  }
 0x483   : > { %v3385_v52 = vld [vmem:[%s2851_s23 + $0xa8] ss:$16 sps:$4 sm:$0xff]  }
 0x484   : > { %v3245_v50 = vadd.f32 %v1352_v12, %v1351_v49 }
 0x486   : > { %2412 = vtanh.f32 %v3245_v50 }
 0x490   : > { %v2413_v58 = vpop.eup %2412 }
 0x491   : > { %v1355_v59 = vmul.f32 %v2413_v58, %v1350_v57  ;;  %v3389_v57 = vld [vmem:[%s2851_s23 + $0xc4] ss:$16 sps:$4 sm:$0xff]   ;;  %v3393_v58 = vld [vmem:[%s2851_s23 + $0xcc] ss:$16 sps:$4 sm:$0xff]  }
 0x493   : > { %v1356_v60 = vpack.c.bf16 %v1355_v59, %v1355_v59  ;;  %v3397_v59 = vld [vmem:[%s2851_s23 + $0xc0] ss:$16 sps:$4 sm:$0xff]  }
 0x495   : > { %1359 = vst [vmem:[%s1358_s12] sm:$0xf] %v1356_v60  ;;  %1404 = vmatmul.mubr.bf16.vlgmr.msra.gmra.mrb[32].mxu0 %v1356_v60  ;;  %1445 = vmatmul.mubr.bf16.vlgmr.msra.gmra.mrb[32].mxu1 %v1356_v60  ;;  %v3401_v60 = vld [vmem:[%s2851_s23 + $0xc8] ss:$16 sps:$4 sm:$0xff]   ;;  %s2203_s12 = sshll.u32 %s1608_s15, 2 }
 0x496   : > { %1495 = vmatpush1.bf16.msra.mxu0 %v3252_v61  ;;  %1536 = vmatpush1.bf16.msra.mxu1 %v3256_v62  ;;  %s1726_s21 = scalar_lea.vmem %s3101_s2, %s2203_s12 [#allocation10] }
 0x497   : > { %1496 = vmatprep.subr.bf16.mxu0 %v3260_v63  ;;  %1537 = vmatprep.subr.bf16.mxu1 %v3264_v2 }
 0x498   : > { %1526 = vmatprep.mubr.bf16.mxu0 %v2638_v0  ;;  %1567 = vmatprep.mubr.bf16.mxu1 %v2638_v0 }
 0x49a   : > { %1497 = vmatpush1.bf16.msra.mxu0 %v3270_v3  ;;  %1538 = vmatpush1.bf16.msra.mxu1 %v3274_v4 }
 0x49b   : > { %1498 = vmatprep.subr.bf16.mxu0 %v3278_v53  ;;  %1539 = vmatprep.subr.bf16.mxu1 %v3282_v54 }
 0x49e   : > { %1499 = vmatpush1.bf16.msra.mxu0 %v3286_v6  ;;  %1540 = vmatpush1.bf16.msra.mxu1 %v3290_v7 }
 0x49f   : > { %1500 = vmatprep.subr.bf16.mxu0 %v3294_v8  ;;  %1541 = vmatprep.subr.bf16.mxu1 %v3298_v9 }
 0x4a2   : > { %1501 = vmatpush1.bf16.msra.mxu0 %v3302_v55  ;;  %1542 = vmatpush1.bf16.msra.mxu1 %v3306_v1 }
 0x4a3   : > { %1502 = vmatprep.subr.bf16.mxu0 %v3310_v20  ;;  %1543 = vmatprep.subr.bf16.mxu1 %v3314_v56 }
 0x4a6   : > { %1503 = vmatpush1.bf16.msra.mxu0 %v3318_v14  ;;  %1544 = vmatpush1.bf16.msra.mxu1 %v3322_v15 }
 0x4a7   : > { %1504 = vmatprep.subr.bf16.mxu0 %v3326_v16  ;;  %1545 = vmatprep.subr.bf16.mxu1 %v3330_v17 }
 0x4aa   : > { %1505 = vmatpush1.bf16.msra.mxu0 %v2963_v34  ;;  %1546 = vmatpush1.bf16.msra.mxu1 %v2971_v36  ;;  %v1367_v34 = vld [vmem:[%s1366_s7] sm:$0xff] }
 0x4ab   : > { %1506 = vmatprep.subr.bf16.mxu0 %v2968_v35  ;;  %1547 = vmatprep.subr.bf16.mxu1 %v2976_v37 }
 0x4ae   : > { %1507 = vmatpush1.bf16.msra.mxu0 %v2986_v39  ;;  %1548 = vmatpush1.bf16.msra.mxu1 %v2989_v40  ;;  %v1368_v39 = vld [vmem:[%s1366_s7 + $0x8] sm:$0xff]  ;;  %s2234_s7 = sshll.u32 %s1731_s8, 5 }
 0x4af   : > { %1508 = vmatprep.subr.bf16.mxu0 %v2994_v41  ;;  %1549 = vmatprep.subr.bf16.mxu1 %v2997_v42  ;;  %s1735_s28 = scalar_lea.vmem [#allocation2], %s2234_s7 }
 0x4b2   : > { %1509 = vmatpush1.bf16.msra.mxu0 %v3004_v43  ;;  %1550 = vmatpush1.bf16.msra.mxu1 %v3007_v44 }
 0x4b3   : > { %1617 = vmatprep.subr.bf16.mxu0 %v3231_v11  ;;  %1658 = vmatprep.subr.bf16.mxu1 %v3235_v13 }
 0x568   : > { %v1405_v35 = vpop.f32.mrb[32].mxu0  ;;  %v1446_v36 = vpop.f32.mrb[32].mxu1 }
 0x569   : > { %v1453_v37 = vadd.f32 %v1405_v35, %v1367_v34  ;;  %v1407_v40 = vpop.f32.mrb[33].mxu0  ;;  %v1448_v41 = vpop.f32.mrb[33].mxu1  ;;  %v1455_v24 = vadd.f32 %v1446_v36, %v1369_v22  ;;  %v3405_v34 = vld [vmem:[%s2851_s23 + $0xe4] ss:$16 sps:$4 sm:$0xff]   ;;  %v3409_v35 = vld [vmem:[%s2851_s23 + $0xec] ss:$16 sps:$4 sm:$0xff]  }
 0x56a   : > { %v1454_v42 = vadd.f32 %v1407_v40, %v1368_v39  ;;  %v1409_v43 = vpop.f32.mrb[34].mxu0  ;;  %v1450_v44 = vpop.f32.mrb[34].mxu1  ;;  %v1456_v26 = vadd.f32 %v1448_v41, %v1370_v25  ;;  %v3413_v36 = vld [vmem:[%s2851_s23 + $0xe0] ss:$16 sps:$4 sm:$0xff]  }
 0x56b   : > { %v1457_v18 = vmul.f32 0.5, %v1453_v37  ;;  %v1410_v19 = vpop.f32.mrb[35].mxu0  ;;  %v1451_v21 = vpop.f32.mrb[35].mxu1  ;;  %v3417_v37 = vld [vmem:[%s2851_s23 + $0xe8] ss:$16 sps:$4 sm:$0xff]   ;;  %v1490_v39 = vld [vmem:[%s1489_s5] sm:$0xff] }
 0x56c   : > { %v1458_v23 = vmul.f32 0.5, %v1454_v42  ;;  %v1460_v27 = vmul.f32 0.5, %v1456_v26  ;;  %v1491_v43 = vld [vmem:[%s1489_s5 + $0x8] sm:$0xff] }
 0x56d   : > { %2414 = vtanh.f32 %v1457_v18 }
 0x56e   : > { %2416 = vtanh.f32 %v1458_v23 }
 0x56f   : > { %2418 = vtanh.f32 %v1455_v24  ;;  %v1492_v24 = vld [vmem:[%s1489_s5 + $0x10] sm:$0xff] }
 0x570   : > { %2420 = vtanh.f32 %v1460_v27  ;;  %v1493_v27 = vld [vmem:[%s1489_s5 + $0x18] sm:$0xff]  ;;  %s1868_s5 = scalar_lea.vmem (%p3544_p11), %s3522_s4, %s2209_s11 }
 0x577   : > { %v2415_v28 = vpop.eup %2414 }
 0x578   : > { %v2417_v30 = vpop.eup %2416  ;;  %v1465_v31 = vmul.f32 0.5, %v2415_v28 }
 0x579   : > { %v1466_v32 = vmul.f32 0.5, %v2417_v30  ;;  %v2419_v5 = vpop.eup %2418 }
 0x57a   : > { %v1469_v33 = vadd.f32 0.5, %v1465_v31  ;;  %v2421_v47 = vpop.eup %2420 }
 0x57b   : > { %v1470_v29 = vadd.f32 0.5, %v1466_v32  ;;  %v1468_v10 = vmul.f32 0.5, %v2421_v47 }
 0x57c   : > { %v1474_v38 = vmul.f32 %v2419_v5, %v1469_v33 }
 0x57d   : > { %v1473_v45 = vmul.f32 %v1470_v29, %v3245_v50  ;;  %v1472_v48 = vadd.f32 0.5, %v1468_v10  ;;  %v3381_v50 = vld [vmem:[%s2851_s23 + $0xa0] ss:$16 sps:$4 sm:$0xff]   ;;  %s2199_s23 = sshll.u32 %s1485_s1, 2 }
 0x57e   : > { %s1603_s30 = scalar_lea.vmem %s3101_s2, %s2199_s23 [#allocation10] }
 0x57f   : > { %v3352_v46 = vadd.f32 %v1474_v38, %v1473_v45 }
 0x581   : > { %2422 = vtanh.f32 %v3352_v46 }
 0x58b   : > { %v2423_v12 = vpop.eup %2422 }
 0x58c   : > { %v1477_v49 = vmul.f32 %v2423_v12, %v1472_v48 }
 0x58e   : > { %v1478_v51 = vpack.c.bf16 %v1477_v49, %v1477_v49 }
 0x590   : > { %1481 = vst [vmem:[%s1480_s10] sm:$0xf] %v1478_v51  ;;  %1527 = vmatmul.mubr.bf16.vlgmr.msra.gmra.mrb[36].mxu0 %v1478_v51  ;;  %1568 = vmatmul.mubr.bf16.vlgmr.msra.gmra.mrb[36].mxu1 %v1478_v51  ;;  %s2207_s10 = sshll.u32 %s1731_s8, 2 }
 0x591   : > { %1618 = vmatpush1.bf16.msra.mxu0 %v3252_v61  ;;  %1659 = vmatpush1.bf16.msra.mxu1 %v3256_v62  ;;  %s1849_s9 = scalar_lea.vmem %s3101_s2, %s2207_s10 [#allocation10] }
 0x592   : > { %1619 = vmatprep.subr.bf16.mxu0 %v3260_v63  ;;  %1660 = vmatprep.subr.bf16.mxu1 %v3264_v2 }
 0x593   : > { %1649 = vmatprep.mubr.bf16.mxu0 %v2638_v0  ;;  %1690 = vmatprep.mubr.bf16.mxu1 %v2638_v0 }
 0x595   : > { %1620 = vmatpush1.bf16.msra.mxu0 %v3270_v3  ;;  %1661 = vmatpush1.bf16.msra.mxu1 %v3274_v4 }
 0x596   : > { %1621 = vmatprep.subr.bf16.mxu0 %v3278_v53  ;;  %1662 = vmatprep.subr.bf16.mxu1 %v3282_v54 }
 0x599   : > { %1622 = vmatpush1.bf16.msra.mxu0 %v3286_v6  ;;  %1663 = vmatpush1.bf16.msra.mxu1 %v3290_v7 }
 0x59a   : > { %1623 = vmatprep.subr.bf16.mxu0 %v3294_v8  ;;  %1664 = vmatprep.subr.bf16.mxu1 %v3298_v9 }
 0x59d   : > { %1624 = vmatpush1.bf16.msra.mxu0 %v3302_v55  ;;  %1665 = vmatpush1.bf16.msra.mxu1 %v3306_v1 }
 0x59e   : > { %1625 = vmatprep.subr.bf16.mxu0 %v3310_v20  ;;  %1666 = vmatprep.subr.bf16.mxu1 %v3314_v56 }
 0x5a1   : > { %1626 = vmatpush1.bf16.msra.mxu0 %v3318_v14  ;;  %1667 = vmatpush1.bf16.msra.mxu1 %v3322_v15 }
 0x5a2   : > { %1627 = vmatprep.subr.bf16.mxu0 %v3326_v16  ;;  %1668 = vmatprep.subr.bf16.mxu1 %v3330_v17 }
 0x5a5   : > { %1628 = vmatpush1.bf16.msra.mxu0 %v3381_v50  ;;  %1669 = vmatpush1.bf16.msra.mxu1 %v3385_v52 }
 0x5a6   : > { %1629 = vmatprep.subr.bf16.mxu0 %v3389_v57  ;;  %1670 = vmatprep.subr.bf16.mxu1 %v3393_v58 }
 0x5a9   : > { %1630 = vmatpush1.bf16.msra.mxu0 %v3397_v59  ;;  %1671 = vmatpush1.bf16.msra.mxu1 %v3401_v60 }
 0x5aa   : > { %1631 = vmatprep.subr.bf16.mxu0 %v3405_v34  ;;  %1672 = vmatprep.subr.bf16.mxu1 %v3409_v35 }
 0x5ad   : > { %1632 = vmatpush1.bf16.msra.mxu0 %v3413_v36  ;;  %1673 = vmatpush1.bf16.msra.mxu1 %v3417_v37 }
 0x5ae   : > { %1740 = vmatprep.subr.bf16.mxu0 %v3231_v11  ;;  %1781 = vmatprep.subr.bf16.mxu1 %v3235_v13 }
 0x663   : > { %v1528_v40 = vpop.f32.mrb[36].mxu0  ;;  %v1569_v41 = vpop.f32.mrb[36].mxu1 }
 0x664   : > { %v1576_v42 = vadd.f32 %v1528_v40, %v1490_v39  ;;  %v1530_v44 = vpop.f32.mrb[37].mxu0  ;;  %v1571_v18 = vpop.f32.mrb[37].mxu1  ;;  %v1578_v26 = vadd.f32 %v1569_v41, %v1492_v24 }
 0x665   : > { %v1577_v19 = vadd.f32 %v1530_v44, %v1491_v43  ;;  %v1532_v11 = vpop.f32.mrb[38].mxu0  ;;  %v1573_v21 = vpop.f32.mrb[38].mxu1  ;;  %v1579_v28 = vadd.f32 %v1571_v18, %v1493_v27  ;;  %v1736_v18 = vld [vmem:[%s1735_s28] sm:$0xff] }
 0x666   : > { %v1580_v13 = vmul.f32 0.5, %v1576_v42  ;;  %v1533_v22 = vpop.f32.mrb[39].mxu0  ;;  %v1574_v23 = vpop.f32.mrb[39].mxu1 }
 0x667   : > { %v1581_v25 = vmul.f32 0.5, %v1577_v19  ;;  %v1583_v30 = vmul.f32 0.5, %v1579_v28 }
 0x668   : > { %2424 = vtanh.f32 %v1580_v13  ;;  %v1737_v13 = vld [vmem:[%s1735_s28 + $0x8] sm:$0xff] }
 0x669   : > { %2426 = vtanh.f32 %v1581_v25 }
 0x66a   : > { %2428 = vtanh.f32 %v1578_v26 }
 0x66b   : > { %2430 = vtanh.f32 %v1583_v30 }
 0x672   : > { %v2425_v31 = vpop.eup %2424 }
 0x673   : > { %v2427_v32 = vpop.eup %2426  ;;  %v1588_v33 = vmul.f32 0.5, %v2425_v31  ;;  %v1738_v31 = vld [vmem:[%s1735_s28 + $0x10] sm:$0xff] }
 0x674   : > { %v1589_v5 = vmul.f32 0.5, %v2427_v32  ;;  %v2429_v38 = vpop.eup %2428 }
 0x675   : > { %v1592_v29 = vadd.f32 0.5, %v1588_v33  ;;  %v2431_v12 = vpop.eup %2430 }
 0x676   : > { %v1593_v45 = vadd.f32 0.5, %v1589_v5  ;;  %v1591_v49 = vmul.f32 0.5, %v2431_v12  ;;  %v1739_v5 = vld [vmem:[%s1735_s28 + $0x18] sm:$0xff] }
 0x677   : > { %v1597_v47 = vmul.f32 %v2429_v38, %v1592_v29 }
 0x678   : > { %v1596_v10 = vmul.f32 %v1593_v45, %v3352_v46  ;;  %v1595_v51 = vadd.f32 0.5, %v1591_v49 }
 0x67a   : > { %v3429_v48 = vadd.f32 %v1597_v47, %v1596_v10 }
 0x67c   : > { %2432 = vtanh.f32 %v3429_v48 }
 0x686   : > { %v2433_v39 = vpop.eup %2432 }
 0x687   : > { %v1600_v40 = vmul.f32 %v2433_v39, %v1595_v51 }
 0x689   : > { %v1601_v41 = vpack.c.bf16 %v1600_v40, %v1600_v40 }
 0x68b   : > { %1604 = vst [vmem:[%s1603_s30] sm:$0xf] %v1601_v41  ;;  %1650 = vmatmul.mubr.bf16.vlgmr.msra.gmra.mrb[40].mxu0 %v1601_v41  ;;  %1691 = vmatmul.mubr.bf16.vlgmr.msra.gmra.mrb[40].mxu1 %v1601_v41 }
 0x68c   : > { %1741 = vmatpush1.bf16.msra.mxu0 %v3252_v61  ;;  %1782 = vmatpush1.bf16.msra.mxu1 %v3256_v62 }
 0x68d   : > { %1742 = vmatprep.subr.bf16.mxu0 %v3260_v63  ;;  %1783 = vmatprep.subr.bf16.mxu1 %v3264_v2  ;;  %v1614_v2 = vld [vmem:[%s1612_s22 + $0x8] sm:$0xff] }
 0x68e   : > { %1772 = vmatprep.mubr.bf16.mxu0 %v2638_v0  ;;  %1813 = vmatprep.mubr.bf16.mxu1 %v2638_v0  ;;  %v1613_v0 = vld [vmem:[%s1612_s22] sm:$0xff] }
 0x690   : > { %1743 = vmatpush1.bf16.msra.mxu0 %v3270_v3  ;;  %1784 = vmatpush1.bf16.msra.mxu1 %v3274_v4 }
 0x691   : > { %1744 = vmatprep.subr.bf16.mxu0 %v3278_v53  ;;  %1785 = vmatprep.subr.bf16.mxu1 %v3282_v54 }
 0x694   : > { %1745 = vmatpush1.bf16.msra.mxu0 %v3286_v6  ;;  %1786 = vmatpush1.bf16.msra.mxu1 %v3290_v7 }
 0x695   : > { %1746 = vmatprep.subr.bf16.mxu0 %v3294_v8  ;;  %1787 = vmatprep.subr.bf16.mxu1 %v3298_v9 }
 0x698   : > { %1747 = vmatpush1.bf16.msra.mxu0 %v3302_v55  ;;  %1788 = vmatpush1.bf16.msra.mxu1 %v3306_v1  ;;  %v1615_v55 = vld [vmem:[%s1612_s22 + $0x10] sm:$0xff] }
 0x699   : > { %1748 = vmatprep.subr.bf16.mxu0 %v3310_v20  ;;  %1789 = vmatprep.subr.bf16.mxu1 %v3314_v56  ;;  %v1616_v56 = vld [vmem:[%s1612_s22 + $0x18] sm:$0xff] }
 0x69c   : > { %1749 = vmatpush1.bf16.msra.mxu0 %v3318_v14  ;;  %1790 = vmatpush1.bf16.msra.mxu1 %v3322_v15 }
 0x69d   : > { %1750 = vmatprep.subr.bf16.mxu0 %v3326_v16  ;;  %1791 = vmatprep.subr.bf16.mxu1 %v3330_v17 }
 0x6a0   : > { %1751 = vmatpush1.bf16.msra.mxu0 %v3381_v50  ;;  %1792 = vmatpush1.bf16.msra.mxu1 %v3385_v52 }
 0x6a1   : > { %1752 = vmatprep.subr.bf16.mxu0 %v3389_v57  ;;  %1793 = vmatprep.subr.bf16.mxu1 %v3393_v58 }
 0x6a4   : > { %1753 = vmatpush1.bf16.msra.mxu0 %v3397_v59  ;;  %1794 = vmatpush1.bf16.msra.mxu1 %v3401_v60 }
 0x6a5   : > { %1754 = vmatprep.subr.bf16.mxu0 %v3405_v34  ;;  %1795 = vmatprep.subr.bf16.mxu1 %v3409_v35 }
 0x6a8   : > { %1755 = vmatpush1.bf16.msra.mxu0 %v3413_v36  ;;  %1796 = vmatpush1.bf16.msra.mxu1 %v3417_v37 }
 0x75e   : > { %v1651_v61 = vpop.f32.mrb[40].mxu0  ;;  %v1692_v62 = vpop.f32.mrb[40].mxu1 }
 0x75f   : > { %v1699_v63 = vadd.f32 %v1651_v61, %v1613_v0  ;;  %v1653_v3 = vpop.f32.mrb[41].mxu0  ;;  %v1694_v4 = vpop.f32.mrb[41].mxu1  ;;  %v1701_v20 = vadd.f32 %v1692_v62, %v1615_v55 }
 0x760   : > { %v1700_v53 = vadd.f32 %v1653_v3, %v1614_v2  ;;  %v1655_v54 = vpop.f32.mrb[42].mxu0  ;;  %v1696_v6 = vpop.f32.mrb[42].mxu1  ;;  %v1702_v14 = vadd.f32 %v1694_v4, %v1616_v56 }
 0x761   : > { %v1703_v7 = vmul.f32 0.5, %v1699_v63  ;;  %v1656_v8 = vpop.f32.mrb[43].mxu0  ;;  %v1697_v9 = vpop.f32.mrb[43].mxu1 }
 0x762   : > { %v1704_v1 = vmul.f32 0.5, %v1700_v53  ;;  %v1706_v15 = vmul.f32 0.5, %v1702_v14 }
 0x763   : > { %2434 = vtanh.f32 %v1703_v7 }
 0x764   : > { %2436 = vtanh.f32 %v1704_v1 }
 0x765   : > { %2438 = vtanh.f32 %v1701_v20 }
 0x766   : > { %2440 = vtanh.f32 %v1706_v15 }
 0x76d   : > { %v2435_v16 = vpop.eup %2434 }
 0x76e   : > { %v2437_v17 = vpop.eup %2436  ;;  %v1711_v46 = vmul.f32 0.5, %v2435_v16 }
 0x76f   : > { %v1712_v50 = vmul.f32 0.5, %v2437_v17  ;;  %v2439_v57 = vpop.eup %2438 }
 0x770   : > { %v1715_v52 = vadd.f32 0.5, %v1711_v46  ;;  %v2441_v35 = vpop.eup %2440 }
 0x771   : > { %v1716_v58 = vadd.f32 0.5, %v1712_v50  ;;  %v1714_v36 = vmul.f32 0.5, %v2441_v35 }
 0x772   : > { %v1720_v59 = vmul.f32 %v2439_v57, %v1715_v52 }
 0x773   : > { %v1719_v60 = vmul.f32 %v1716_v58, %v3429_v48  ;;  %v1718_v37 = vadd.f32 0.5, %v1714_v36 }
 0x775   : > { %v1721_v34 = vadd.f32 %v1720_v59, %v1719_v60 }
 0x777   : > { %2442 = vtanh.f32 %v1721_v34 }
 0x781   : > { %v2443_v42 = vpop.eup %2442 }
 0x782   : > { %v1723_v43 = vmul.f32 %v2443_v42, %v1718_v37 }
 0x784   : > { %v1724_v44 = vpack.c.bf16 %v1723_v43, %v1723_v43 }
 0x786   : > { %1727 = vst [vmem:[%s1726_s21] sm:$0xf] %v1724_v44  ;;  %1773 = vmatmul.mubr.bf16.vlgmr.msra.gmra.mrb[44].mxu0 %v1724_v44  ;;  %1814 = vmatmul.mubr.bf16.vlgmr.msra.gmra.mrb[44].mxu1 %v1724_v44 }
 0x859   : > { %v1774_v19 = vpop.f32.mrb[44].mxu0  ;;  %v1815_v11 = vpop.f32.mrb[44].mxu1 }
 0x85a   : > { %v1822_v21 = vadd.f32 %v1774_v19, %v1736_v18  ;;  %v1776_v22 = vpop.f32.mrb[45].mxu0  ;;  %v1817_v23 = vpop.f32.mrb[45].mxu1  ;;  %v1824_v33 = vadd.f32 %v1815_v11, %v1738_v31 }
 0x85b   : > { %v1823_v24 = vadd.f32 %v1776_v22, %v1737_v13  ;;  %v1778_v25 = vpop.f32.mrb[46].mxu0  ;;  %v1819_v26 = vpop.f32.mrb[46].mxu1  ;;  %v1825_v29 = vadd.f32 %v1817_v23, %v1739_v5 }
 0x85c   : > { %v1826_v27 = vmul.f32 0.5, %v1822_v21  ;;  %v1779_v28 = vpop.f32.mrb[47].mxu0  ;;  %v1820_v30 = vpop.f32.mrb[47].mxu1 }
 0x85d   : > { %v1827_v32 = vmul.f32 0.5, %v1823_v24  ;;  %v1829_v38 = vmul.f32 0.5, %v1825_v29 }
 0x85e   : > { %2444 = vtanh.f32 %v1826_v27 }
 0x85f   : > { %2446 = vtanh.f32 %v1827_v32 }
 0x860   : > { %2448 = vtanh.f32 %v1824_v33 }
 0x861   : > { %2450 = vtanh.f32 %v1829_v38 }
 0x868   : > { %v2445_v45 = vpop.eup %2444 }
 0x869   : > { %v2447_v47 = vpop.eup %2446  ;;  %v1834_v10 = vmul.f32 0.5, %v2445_v45 }
 0x86a   : > { %v1835_v48 = vmul.f32 0.5, %v2447_v47  ;;  %v2449_v49 = vpop.eup %2448 }
 0x86b   : > { %v1838_v12 = vadd.f32 0.5, %v1834_v10  ;;  %v2451_v0 = vpop.eup %2450 }
 0x86c   : > { %v1839_v51 = vadd.f32 0.5, %v1835_v48  ;;  %v1837_v61 = vmul.f32 0.5, %v2451_v0 }
 0x86d   : > { %v1843_v39 = vmul.f32 %v2449_v49, %v1838_v12 }
 0x86e   : > { %v1842_v40 = vmul.f32 %v1839_v51, %v1721_v34  ;;  %v1841_v62 = vadd.f32 0.5, %v1837_v61 }
 0x870   : > { %v1844_v41 = vadd.f32 %v1843_v39, %v1842_v40 }
 0x872   : > { %2452 = vtanh.f32 %v1844_v41 }
 0x87b   : > { %1859 = sbr.rel (!%p3544_p11) target bundleno = 2190 (0x88e), region = 56 }
 0x87c   : > { %v2453_v63 = vpop.eup %2452 }
 0x87d   : > { %v1846_v2 = vmul.f32 %v2453_v63, %v1841_v62 }
 0x87f   : > { %v1847_v3 = vpack.c.bf16 %v1846_v2, %v1846_v2 }
 0x881   : > { %1850 = vst [vmem:[%s1849_s9] sm:$0xf] %v1847_v3 }
 0x888   : > { %v1884_v4 = vld [vmem:[%s3101_s2] sm:$0xf]  ;;  %v1886_v53 = vld [vmem:[%s3101_s2 + $0x4] sm:$0xf]  ;;  %v1888_v54 = vld [vmem:[%s3101_s2 + $0x8] sm:$0xf] }
 0x889   : > { %v1890_v6 = vld [vmem:[%s3101_s2 + $0xc] sm:$0xf]  ;;  %v1892_v7 = vld [vmem:[%s3101_s2 + $0x10] sm:$0xf]  ;;  %1885 = vst [vmem:[%s1868_s5] sm:$0xf] %v1884_v4 }
 0x88a   : > { %1887 = vst [vmem:[%s1868_s5 + $0x8] sm:$0xf] %v1886_v53  ;;  %1889 = vst [vmem:[%s1868_s5 + $0x10] sm:$0xf] %v1888_v54  ;;  %v1894_v8 = vld [vmem:[%s3101_s2 + $0x14] sm:$0xf] }
 0x88b   : > { %1891 = vst [vmem:[%s1868_s5 + $0x18] sm:$0xf] %v1890_v6  ;;  %1893 = vst [vmem:[%s1868_s5 + $0x20] sm:$0xf] %v1892_v7  ;;  %v1896_v9 = vld [vmem:[%s3101_s2 + $0x18] sm:$0xf] }
 0x88c   : > { %v1898_v55 = vld [vmem:[%s3101_s2 + $0x1c] sm:$0xf]  ;;  %1895 = vst [vmem:[%s1868_s5 + $0x28] sm:$0xf] %v1894_v8  ;;  %1897 = vst [vmem:[%s1868_s5 + $0x30] sm:$0xf] %v1896_v9 }
 0x88d   : > { %1899 = vst [vmem:[%s1868_s5 + $0x38] sm:$0xf] %v1898_v55 }
 0x88e PF: > { %s20_s20 = sadd.s32 1, %s2630_s20   ;;  %s3545_s27 = sld [smem:[#allocation13_spill]] }
 0x88f   : > { %p17_p4 = scmp.ge.s32.totalorder %s20_s20, 4   ;;  %s3546_s15 = smov %s2614_s16 }
 0x890   : > { %s3547_s16 = smov %s2618_s17  ;;  %s3548_s17 = smov %s2713_s26 }
 0x891   : > { %s3549_s18 = smov %s2626_s19  ;;  %19 = sbr.rel (!%p17_p4) target bundleno = 9 (0x9), region = 168 }
 0x894   : > { %s3550_s19 = smov %s3545_s27 }
 0x898   :  { %1948 = vsyncpa [#allocation6], 1 }
 0x899   :  { %1950 = vsyncpa [#allocation6 + $0x1], 1 }
 0x89a   :  { %1951 = vsyncpa [#allocation8], 1 }
 0x89b   :  { %1953 = vsyncpa [#allocation8 + $0x1], 1 }

// kernel: lstm_forward.3
= control target key start
LH: loop header
LB: loop body
LE: loop exit
PB: predicated region body
PF: predicated region fallthrough
CT: control target
= control target key end

     0   :  { %9 = vsyncpa [#allocation6], 0  ;;  %s3863_s0 = inlined_call_operand.vmem [shape: bf16[64,256], index: 0, kind: input, shape index: {}]   ;;  %s3864_s1 = inlined_call_operand.hbm [shape: bf16[256,1024], index: 1, kind: input, shape index: {}]   ;;  %s3865_s2 = inlined_call_operand.vmem [shape: bf16[2,128,512], index: 2, kind: input, shape index: {}]   ;;  %s3866_s3 = inlined_call_operand.vmem [shape: f32[2,1,512], index: 3, kind: input, shape index: {}]   ;;  %s3867_s4 = inlined_call_operand.vmem [shape: bf16[64,256], index: 4, kind: output, shape index: {}]  }
   0x1   :  { %11 = vsyncpa [#allocation6 + $0x1], 0  ;;  %s3016_s15 = smov 0   ;;  %s3018_s16 = smov 0  }
   0x2   :  { %s3020_s17 = smov 0   ;;  %s3022_s18 = smov 0  }
   0x3   :  { %s3024_s19 = smov 0   ;;  %s3026_s20 = smov 0  }
   0x4 LB: > { %s2393_s21 = sadd.s32 4294967295, %s2983_s20   ;;  %s29_s22 = sadd.s32 1, %s2979_s19  ;;  %s2983_s20 = sphi %s3026_s20, %s17_s20   ;;  %s2979_s19 = sphi %s3024_s19, %s3878_s19   ;;  %s2975_s18 = sphi %s3022_s18, %s3877_s18   ;;  %s2971_s17 = sphi %s3020_s17, %s3876_s17   ;;  %s2967_s16 = sphi %s3018_s16, %s3875_s16   ;;  %s2963_s15 = sphi %s3016_s15, %s3874_s15  }
   0x5   : > { %p31_p0 = scmp.ge.s32.totalorder %s29_s22, 2  ;;  %s70_s23 = sadd.s32 1, %s2971_s17 }
   0x6   : > { %p77_p1 = scmp.ne.s32.totalorder %s2971_s17, %s2967_s16  ;;  %p78_p2 = scmp.eq.s32.totalorder %s2983_s20, 0 }
   0x7   : > { %s3880_s22 = smov (%p31_p0, %s29_s22), 0  ;;  %p83_p4 = scmp.ne.s32.totalorder %s2967_s16, %s2963_s15 }
   0x8   : > { %p3052_p3 = por %p78_p2, %p77_p1  ;;  %s67_s25 = ssub.s32 %s2979_s19, %s3880_s22 }
   0x9   : > { %p84_p5 = scmp.eq.s32.totalorder %s2393_s21, 0  ;;  %p68_p6 = scmp.eq.s32.totalorder %s67_s25, 0 }
   0xa   : > { %p169_p7 = scmp.eq.s32.totalorder %s2393_s21, 1  ;;  %p2581_p10 = scmp.lt.s32.totalorder %s2983_s20, 2 }
   0xb   : > { %p3059_p8 = por %p84_p5, %p83_p4  ;;  %s213_s29 = sand.u32 1, %s2971_s17  }
   0xc   : > { %s3064_s27 = scalar_select %p68_p6, %s2971_s17, %s70_s23  }
   0xd   : > { %p3066_p9 = por %p169_p7, %p77_p1  ;;  %s2548_s30 = sshll.u32 %s2979_s19, 8 }
   0xe   : > { %s2398_s5 = sshll.u32 %s213_s29, 9  ;;  %s3076_s8 = scalar_lea.hbm %s3864_s1, %s2548_s30 }
   0xf   : > { %s3870_s28 = scalar_select %p3066_p9, 1, 0 }
  0x10   : > { %s217_s9 = scalar_lea.vmem [#allocation5], %s2398_s5  ;;  %p3080_p11 = pnand %p2581_p10, %p3052_p3 }
  0x11   : > { %s224_s10 = sshll.u32 %s217_s9, 4  ;;  %s3087_s12 = scalar_lea.sflag [#allocation6], %s213_s29  ;;  %s3084_s10 = int_to_ptr.vmem [resolvable:$true] %s224_s10 }
  0x12   : > { %s2903_s13 = scalar_lea.hbm %s3076_s8, 8192  ;;  %p2905_p0 = pneg %p3080_p11 }
  0x13   : > { %p2904_p13 = scmp.ne.s32.totalorder %s3076_s8, %s2903_s13  ;;  %s2908_s21 = scalar_lea.hbm %s3864_s1, 16384 }
  0x14   : > { %p2909_p3 = scmp.lt.u32.totalorder %s3076_s8, %s3864_s1  ;;  %p2910_p4 = scmp.lt.u32.totalorder %s2908_s21, %s2903_s13 }
  0x15   : > { %p2906_p1 = pnand %p2905_p0, %p2904_p13  ;;  %p2912_p6 = scmp.lt.u32.totalorder %s2903_s13, %s3076_s8 }
  0x16   : > { %p2911_p5 = por %p2910_p4, %p2909_p3 }
  0x17   : > { %p2907_p2 = pneg %p2906_p1 }
  0x18   : > { %p2913_p7 = por %p2912_p6, %p2911_p5 }
  0x1a   : > { %p2914_p10 = pnand %p2913_p7, %p2907_p2 }
  0x1c   : > { %2917 = shalt.err (!%p2914_p10)
}
  0x1d   : > { %s2918_s25 = scalar_lea.vmem %s3084_s10, 8192  ;;  %s2985_s29 = smov [#allocation5]  }
  0x1e   : > { %p2919_p13 = scmp.ne.s32.totalorder %s3084_s10, %s2918_s25  ;;  %s2923_s30 = sshll.u32 %s2985_s29, 4  ;;  %s2924_s30 = int_to_ptr.vmem [resolvable:$false] %s2923_s30 }
  0x1f   : > { %s2925_s5 = scalar_lea.vmem %s2924_s30, 16384  ;;  %p2926_p9 = scmp.lt.s32.totalorder %s3084_s10, %s2924_s30 }
  0x20   : > { %p2921_p1 = pnand %p2919_p13, %p2905_p0  ;;  %p2927_p3 = scmp.lt.s32.totalorder %s2925_s5, %s2918_s25 }
  0x22   : > { %p2922_p12 = pneg %p2921_p1  ;;  %p2928_p4 = por %p2927_p3, %p2926_p9 }
  0x24   : > { %p2929_p5 = pnand %p2928_p4, %p2922_p12 }
  0x26   : > { %2932 = shalt.err (!%p2929_p5)
}
  0x27   : > { %s2986_s6 = smov 512   ;;  %s2987_s7 = smov 256  }
  0x28   : > { %s2988_s9 = smov 16   ;;  %p247_p0 = scmp.lt.s32.totalorder %s2983_s20, 3 }
  0x29   : > { %2580 = dma.hbm_to_vmem [thread:$0]  (!%p3080_p11), %s3076_s8, 8192, %s3084_s10, %s3087_s12, %s2986_s6, %s2987_s7, %s2988_s9  }
  0x2a   : > { %p3872_p2 = scmp.ge.s32.totalorder %s2983_s20, 1 }
  0x2c   : > { %p248_p6 = pnand %p3872_p2, %p247_p0 }
  0x2d   : > { %s3119_s13 = sand.u32 (!%p248_p6), 1, %s2967_s16  }
  0x2e   : > { %251 = sbr.rel (%p248_p6) target bundleno = 2177 (0x881), region = 36  ;;  %s2402_s14 = sshll.u32 (!%p248_p6), %s3119_s13, 9 }
  0x2f   : > { %s254_s15 = scalar_lea.sflag (!%p248_p6), [#allocation6], %s3119_s13  ;;  %s3123_s21 = scalar_lea.vmem (!%p248_p6), [#allocation5], %s2402_s14 }
  0x35   : > { %2958 = dma.done.wait (%p3059_p8), %s254_s15, 8192  }
  0x36   : > { %2960 = vsyncadd (%p3059_p8), %s254_s15, 4294959104  ;;  %v2635_v0 = vld [vmem:[%s3123_s21 + $0x4] ss:$16 sps:$4 sm:$0xff]   ;;  %v2637_v1 = vld [vmem:[%s3123_s21 + $0xc] ss:$16 sps:$4 sm:$0xff]   ;;  %p316_p8 = scmp.lt.s32.totalorder %s2975_s18, 1 }
  0x37   : > { %785 = vmatprep.subr.bf16.mxu0 %v2635_v0  ;;  %v2639_v2 = vld [vmem:[%s3123_s21] ss:$16 sps:$4 sm:$0xff]   ;;  %v2640_v3 = vld [vmem:[%s3123_s21 + $0x8] ss:$16 sps:$4 sm:$0xff]   ;;  %858 = vmatprep.subr.bf16.mxu1 %v2637_v1  ;;  %v2641_v4 = vld [vmem:[%s3123_s21 + $0x24] ss:$16 sps:$4 sm:$0xff]  }
  0x38   : > { %786 = vmatpush1.bf16.msra.mxu0 %v2639_v2  ;;  %859 = vmatpush1.bf16.msra.mxu1 %v2640_v3  ;;  %v2643_v5 = vld [vmem:[%s3123_s21 + $0x2c] ss:$16 sps:$4 sm:$0xff]   ;;  %v2645_v6 = vld [vmem:[%s3123_s21 + $0x20] ss:$16 sps:$4 sm:$0xff]   ;;  %v2646_v7 = vld [vmem:[%s3123_s21 + $0x28] ss:$16 sps:$4 sm:$0xff]  }
  0x39   : > { %787 = vmatprep.subr.bf16.mxu0 %v2641_v4  ;;  %860 = vmatprep.subr.bf16.mxu1 %v2643_v5  ;;  %v2647_v8 = vld [vmem:[%s3123_s21 + $0x44] ss:$16 sps:$4 sm:$0xff]   ;;  %v2649_v9 = vld [vmem:[%s3123_s21 + $0x4c] ss:$16 sps:$4 sm:$0xff]   ;;  %v2651_v10 = vld [vmem:[%s3123_s21 + $0x40] ss:$16 sps:$4 sm:$0xff]  }
  0x3a   : > { %v2652_v11 = vld [vmem:[%s3123_s21 + $0x48] ss:$16 sps:$4 sm:$0xff]   ;;  %v2653_v12 = vld [vmem:[%s3123_s21 + $0x64] ss:$16 sps:$4 sm:$0xff]   ;;  %v2655_v13 = vld [vmem:[%s3123_s21 + $0x6c] ss:$16 sps:$4 sm:$0xff]  }
  0x3b   : > { %v2657_v14 = vld [vmem:[%s3123_s21 + $0x60] ss:$16 sps:$4 sm:$0xff]   ;;  %v2658_v15 = vld [vmem:[%s3123_s21 + $0x68] ss:$16 sps:$4 sm:$0xff]   ;;  %v2659_v16 = vld [vmem:[%s3123_s21 + $0x84] ss:$16 sps:$4 sm:$0xff]  }
  0x3c   : > { %788 = vmatpush1.bf16.msra.mxu0 %v2645_v6  ;;  %861 = vmatpush1.bf16.msra.mxu1 %v2646_v7  ;;  %v2661_v17 = vld [vmem:[%s3123_s21 + $0x8c] ss:$16 sps:$4 sm:$0xff]   ;;  %v2663_v18 = vld [vmem:[%s3123_s21 + $0x80] ss:$16 sps:$4 sm:$0xff]   ;;  %v2664_v19 = vld [vmem:[%s3123_s21 + $0x88] ss:$16 sps:$4 sm:$0xff]  }
  0x3d   : > { %789 = vmatprep.subr.bf16.mxu0 %v2647_v8  ;;  %862 = vmatprep.subr.bf16.mxu1 %v2649_v9  ;;  %v2665_v20 = vld [vmem:[%s3123_s21 + $0xa4] ss:$16 sps:$4 sm:$0xff]   ;;  %v2667_v21 = vld [vmem:[%s3123_s21 + $0xac] ss:$16 sps:$4 sm:$0xff]   ;;  %v2669_v22 = vld [vmem:[%s3123_s21 + $0xa0] ss:$16 sps:$4 sm:$0xff]  }
  0x3e   : > { %v2670_v23 = vld [vmem:[%s3123_s21 + $0xa8] ss:$16 sps:$4 sm:$0xff]   ;;  %v2671_v24 = vld [vmem:[%s3123_s21 + $0xc4] ss:$16 sps:$4 sm:$0xff]   ;;  %v2673_v25 = vld [vmem:[%s3123_s21 + $0xcc] ss:$16 sps:$4 sm:$0xff]  }
  0x3f   : > { %v2675_v26 = vld [vmem:[%s3123_s21 + $0xc0] ss:$16 sps:$4 sm:$0xff]   ;;  %v2676_v27 = vld [vmem:[%s3123_s21 + $0xc8] ss:$16 sps:$4 sm:$0xff]   ;;  %v2677_v28 = vld [vmem:[%s3123_s21 + $0xe4] ss:$16 sps:$4 sm:$0xff]  }
  0x40   : > { %790 = vmatpush1.bf16.msra.mxu0 %v2651_v10  ;;  %863 = vmatpush1.bf16.msra.mxu1 %v2652_v11  ;;  %v2679_v29 = vld [vmem:[%s3123_s21 + $0xec] ss:$16 sps:$4 sm:$0xff]   ;;  %v2681_v30 = vld [vmem:[%s3123_s21 + $0xe0] ss:$16 sps:$4 sm:$0xff]   ;;  %v2682_v31 = vld [vmem:[%s3123_s21 + $0xe8] ss:$16 sps:$4 sm:$0xff]  }
  0x41   : > { %791 = vmatprep.subr.bf16.mxu0 %v2653_v12  ;;  %864 = vmatprep.subr.bf16.mxu1 %v2655_v13  ;;  %v2683_v32 = vld [vmem:[%s3123_s21 + $0x104] ss:$16 sps:$4 sm:$0xff]   ;;  %v2685_v33 = vld [vmem:[%s3123_s21 + $0x10c] ss:$16 sps:$4 sm:$0xff]   ;;  %v2687_v34 = vld [vmem:[%s3123_s21 + $0x100] ss:$16 sps:$4 sm:$0xff]  }
  0x42   : > { %v2688_v35 = vld [vmem:[%s3123_s21 + $0x108] ss:$16 sps:$4 sm:$0xff]   ;;  %v2689_v36 = vld [vmem:[%s3123_s21 + $0x124] ss:$16 sps:$4 sm:$0xff]   ;;  %v2691_v37 = vld [vmem:[%s3123_s21 + $0x12c] ss:$16 sps:$4 sm:$0xff]  }
  0x43   : > { %v2693_v38 = vld [vmem:[%s3123_s21 + $0x120] ss:$16 sps:$4 sm:$0xff]   ;;  %v2694_v39 = vld [vmem:[%s3123_s21 + $0x128] ss:$16 sps:$4 sm:$0xff]   ;;  %v2695_v40 = vld [vmem:[%s3123_s21 + $0x144] ss:$16 sps:$4 sm:$0xff]  }
  0x44   : > { %792 = vmatpush1.bf16.msra.mxu0 %v2657_v14  ;;  %865 = vmatpush1.bf16.msra.mxu1 %v2658_v15  ;;  %s3172_s26 = scalar_select %p316_p8, %s2975_s18, 1  ;;  %v2697_v41 = vld [vmem:[%s3123_s21 + $0x14c] ss:$16 sps:$4 sm:$0xff]   ;;  %v2699_v42 = vld [vmem:[%s3123_s21 + $0x140] ss:$16 sps:$4 sm:$0xff]  }
  0x45   : > { %793 = vmatprep.subr.bf16.mxu0 %v2659_v16  ;;  %866 = vmatprep.subr.bf16.mxu1 %v2661_v17  ;;  %v2700_v43 = vld [vmem:[%s3123_s21 + $0x148] ss:$16 sps:$4 sm:$0xff]   ;;  %v2701_v44 = vld [vmem:[%s3123_s21 + $0x164] ss:$16 sps:$4 sm:$0xff]   ;;  %v2703_v45 = vld [vmem:[%s3123_s21 + $0x16c] ss:$16 sps:$4 sm:$0xff]  }
  0x46   : > { %s2549_s8 = sshll.u32 %s3172_s26, 8  ;;  %v2705_v46 = vld [vmem:[%s3123_s21 + $0x160] ss:$16 sps:$4 sm:$0xff]   ;;  %v2706_v47 = vld [vmem:[%s3123_s21 + $0x168] ss:$16 sps:$4 sm:$0xff]   ;;  %s2406_s23 = sshll.u32 %s3172_s26, 2 }
  0x47   : > { %v2733_v48 = vld [vmem:[%s3863_s0 + $0x4] ss:$8 sps:$4 sm:$0xff]   ;;  %s3188_s24 = scalar_lea.vmem %s3865_s2, %s2549_s8  ;;  %v2711_v51 = vld [vmem:[%s3123_s21 + $0x180] ss:$16 sps:$4 sm:$0xff]   ;;  %v2712_v52 = vld [vmem:[%s3123_s21 + $0x188] ss:$16 sps:$4 sm:$0xff]   ;;  %s324_s30 = scalar_lea.vmem %s3866_s3, %s2406_s23 }
  0x48   : > { %794 = vmatpush1.bf16.msra.mxu0 %v2663_v18  ;;  %867 = vmatpush1.bf16.msra.mxu1 %v2664_v19  ;;  %v2707_v49 = vld [vmem:[%s3123_s21 + $0x184] ss:$16 sps:$4 sm:$0xff]   ;;  %v2709_v50 = vld [vmem:[%s3123_s21 + $0x18c] ss:$16 sps:$4 sm:$0xff]   ;;  %v2717_v55 = vld [vmem:[%s3123_s21 + $0x1a0] ss:$16 sps:$4 sm:$0xff]  }
  0x49   : > { %795 = vmatprep.subr.bf16.mxu0 %v2665_v20  ;;  %868 = vmatprep.subr.bf16.mxu1 %v2667_v21  ;;  %v2713_v53 = vld [vmem:[%s3123_s21 + $0x1a4] ss:$16 sps:$4 sm:$0xff]   ;;  %v2715_v54 = vld [vmem:[%s3123_s21 + $0x1ac] ss:$16 sps:$4 sm:$0xff]   ;;  %v2718_v56 = vld [vmem:[%s3123_s21 + $0x1a8] ss:$16 sps:$4 sm:$0xff]  }
  0x4a   : > { %817 = vmatprep.mubr.bf16.mxu0 %v2733_v48  ;;  %890 = vmatprep.mubr.bf16.mxu1 %v2733_v48  ;;  %v2719_v57 = vld [vmem:[%s3123_s21 + $0x1c4] ss:$16 sps:$4 sm:$0xff]   ;;  %v2721_v58 = vld [vmem:[%s3123_s21 + $0x1cc] ss:$16 sps:$4 sm:$0xff]   ;;  %v2723_v59 = vld [vmem:[%s3123_s21 + $0x1c0] ss:$16 sps:$4 sm:$0xff]  }
  0x4b   : > { %v2724_v60 = vld [vmem:[%s3123_s21 + $0x1c8] ss:$16 sps:$4 sm:$0xff]   ;;  %v2725_v61 = vld [vmem:[%s3123_s21 + $0x1e4] ss:$16 sps:$4 sm:$0xff]   ;;  %v2727_v62 = vld [vmem:[%s3123_s21 + $0x1ec] ss:$16 sps:$4 sm:$0xff]  }
  0x4c   : > { %796 = vmatpush1.bf16.msra.mxu0 %v2669_v22  ;;  %869 = vmatpush1.bf16.msra.mxu1 %v2670_v23  ;;  %v2729_v63 = vld [vmem:[%s3123_s21 + $0x1e0] ss:$16 sps:$4 sm:$0xff]   ;;  %v2730_v0 = vld [vmem:[%s3123_s21 + $0x1e8] ss:$16 sps:$4 sm:$0xff]   ;;  %v3207_v1 = vld [vmem:[%s3188_s24 + $0x4] ss:$16 sps:$4 sm:$0xff]  }
  0x4d   : > { %797 = vmatprep.subr.bf16.mxu0 %v2671_v24  ;;  %870 = vmatprep.subr.bf16.mxu1 %v2673_v25  ;;  %v3210_v2 = vld [vmem:[%s3188_s24 + $0xc] ss:$16 sps:$4 sm:$0xff]   ;;  %v2731_v3 = vld [vmem:[%s3863_s0] ss:$8 sps:$4 sm:$0xff]   ;;  %v3219_v5 = vld [vmem:[%s3188_s24 + $0x24] ss:$16 sps:$4 sm:$0xff]  }
  0x4e   : > { %v3216_v4 = vld [vmem:[%s3188_s24] ss:$16 sps:$4 sm:$0xff]   ;;  %v3222_v6 = vld [vmem:[%s3188_s24 + $0x8] ss:$16 sps:$4 sm:$0xff]   ;;  %v2743_v7 = vld [vmem:[%s3863_s0 + $0x14] ss:$8 sps:$4 sm:$0xff]  }
  0x4f   : > { %v3230_v8 = vld [vmem:[%s3188_s24 + $0x2c] ss:$16 sps:$4 sm:$0xff]   ;;  %v3233_v9 = vld [vmem:[%s3188_s24 + $0x20] ss:$16 sps:$4 sm:$0xff]   ;;  %v3238_v10 = vld [vmem:[%s3188_s24 + $0x28] ss:$16 sps:$4 sm:$0xff]  }
  0x50   : > { %798 = vmatpush1.bf16.msra.mxu0 %v2675_v26  ;;  %871 = vmatpush1.bf16.msra.mxu1 %v2676_v27  ;;  %v3242_v11 = vld [vmem:[%s3188_s24 + $0x44] ss:$16 sps:$4 sm:$0xff]   ;;  %v3245_v12 = vld [vmem:[%s3188_s24 + $0x4c] ss:$16 sps:$4 sm:$0xff]   ;;  %v2745_v13 = vld [vmem:[%s3863_s0 + $0x10] ss:$8 sps:$4 sm:$0xff]  }
  0x51   : > { %799 = vmatprep.subr.bf16.mxu0 %v2677_v28  ;;  %872 = vmatprep.subr.bf16.mxu1 %v2679_v29  ;;  %v3254_v14 = vld [vmem:[%s3188_s24 + $0x40] ss:$16 sps:$4 sm:$0xff]   ;;  %v3257_v15 = vld [vmem:[%s3188_s24 + $0x48] ss:$16 sps:$4 sm:$0xff]   ;;  %v3262_v16 = vld [vmem:[%s3188_s24 + $0x64] ss:$16 sps:$4 sm:$0xff]  }
  0x52   : > { %v2758_v17 = vld [vmem:[%s3863_s0 + $0x24] ss:$8 sps:$4 sm:$0xff]   ;;  %v3273_v19 = vld [vmem:[%s3188_s24 + $0x60] ss:$16 sps:$4 sm:$0xff]   ;;  %v3276_v20 = vld [vmem:[%s3188_s24 + $0x68] ss:$16 sps:$4 sm:$0xff]  }
  0x53   : > { %v3268_v18 = vld [vmem:[%s3188_s24 + $0x6c] ss:$16 sps:$4 sm:$0xff]   ;;  %v3280_v21 = vld [vmem:[%s3188_s24 + $0x84] ss:$16 sps:$4 sm:$0xff]   ;;  %v2760_v23 = vld [vmem:[%s3863_s0 + $0x20] ss:$8 sps:$4 sm:$0xff]  }
  0x54   : > { %800 = vmatpush1.bf16.msra.mxu0 %v2681_v30  ;;  %873 = vmatpush1.bf16.msra.mxu1 %v2682_v31  ;;  %v3283_v22 = vld [vmem:[%s3188_s24 + $0x8c] ss:$16 sps:$4 sm:$0xff]   ;;  %v3292_v24 = vld [vmem:[%s3188_s24 + $0x80] ss:$16 sps:$4 sm:$0xff]   ;;  %v3295_v25 = vld [vmem:[%s3188_s24 + $0x88] ss:$16 sps:$4 sm:$0xff]  }
  0x55   : > { %801 = vmatprep.subr.bf16.mxu0 %v2683_v32  ;;  %874 = vmatprep.subr.bf16.mxu1 %v2685_v33  ;;  %v3300_v26 = vld [vmem:[%s3188_s24 + $0xa4] ss:$16 sps:$4 sm:$0xff]   ;;  %v3306_v28 = vld [vmem:[%s3188_s24 + $0xac] ss:$16 sps:$4 sm:$0xff]   ;;  %v3311_v29 = vld [vmem:[%s3188_s24 + $0xa0] ss:$16 sps:$4 sm:$0xff]  }
  0x56   : > { %v2773_v27 = vld [vmem:[%s3863_s0 + $0x34] ss:$8 sps:$4 sm:$0xff]   ;;  %v3314_v30 = vld [vmem:[%s3188_s24 + $0xa8] ss:$16 sps:$4 sm:$0xff]   ;;  %s1009_s26 = smul.u32 56, %s2975_s18  ;;  %s2403_s9 = sshll.u32 %s3119_s13, 5 }
  0x57   : > { %v3318_v31 = vld [vmem:[%s3188_s24 + $0xc4] ss:$16 sps:$4 sm:$0xff]   ;;  %v3321_v32 = vld [vmem:[%s3188_s24 + $0xcc] ss:$16 sps:$4 sm:$0xff]   ;;  %v2775_v33 = vld [vmem:[%s3863_s0 + $0x30] ss:$8 sps:$4 sm:$0xff]  }
  0x58   : > { %802 = vmatpush1.bf16.msra.mxu0 %v2687_v34  ;;  %875 = vmatpush1.bf16.msra.mxu1 %v2688_v35  ;;  %v3330_v34 = vld [vmem:[%s3188_s24 + $0xc0] ss:$16 sps:$4 sm:$0xff]   ;;  %v3333_v35 = vld [vmem:[%s3188_s24 + $0xc8] ss:$16 sps:$4 sm:$0xff]   ;;  %s3438_s5 = sshra.s32 %s1009_s26, 3  ;;  %s3446_s15 = scalar_lea.vmem [#allocation7], %s2403_s9 }
  0x59   : > { %803 = vmatprep.subr.bf16.mxu0 %v2689_v36  ;;  %876 = vmatprep.subr.bf16.mxu1 %v2691_v37  ;;  %v3338_v36 = vld [vmem:[%s3188_s24 + $0xe4] ss:$16 sps:$4 sm:$0xff]   ;;  %v3341_v37 = vld [vmem:[%s3188_s24 + $0xec] ss:$16 sps:$4 sm:$0xff]   ;;  %s2550_s6 = sshll.u32 %s3438_s5, 5  ;;  %s2515_s14 = sshll.u32 %s3438_s5, 2 }
  0x5a   : > { %s1014_s7 = scalar_lea.vmem [#allocation2], %s2550_s6  ;;  %s1298_s21 = scalar_lea.vmem %s3446_s15, %s2515_s14 [#allocation7] }
  0x5b   : > { %s2570_s13 = smul.u32 40, %s2975_s18  ;;  %s2479_s14 = sshll.u32 %s2975_s18, 3 }
  0x5c   : > { %804 = vmatpush1.bf16.msra.mxu0 %v2693_v38  ;;  %877 = vmatpush1.bf16.msra.mxu1 %v2694_v39  ;;  %v3346_v38 = vld [vmem:[%s3188_s24 + $0xe0] ss:$16 sps:$4 sm:$0xff]   ;;  %v3349_v39 = vld [vmem:[%s3188_s24 + $0xe8] ss:$16 sps:$4 sm:$0xff]   ;;  %s2571_s29 = smul.u32 24, %s2975_s18  ;;  %p3873_p9 = scmp.ne.s32.totalorder %s3870_s28, 0 }
  0x5d   : > { %805 = vmatprep.subr.bf16.mxu0 %v2695_v40  ;;  %878 = vmatprep.subr.bf16.mxu1 %v2697_v41  ;;  %v2989_v40 = vmov 0   ;;  %v2990_v41 = vmov 0.0|0.0   ;;  %s3484_s8 = sadd.s32 8, %s2570_s13 }
  0x5e   : > { %s1303_s10 = sshra.s32 %s3484_s8, 3 }
  0x5f   : > { %s2553_s11 = sshll.u32 %s1303_s10, 5  ;;  %s2519_s23 = sshll.u32 %s1303_s10, 2 }
  0x60   : > { %806 = vmatpush1.bf16.msra.mxu0 %v2699_v42  ;;  %879 = vmatpush1.bf16.msra.mxu1 %v2700_v43  ;;  %v405_v42 = vlaneseq  ;;  %s1307_s12 = scalar_lea.vmem [#allocation2], %s2553_s11  ;;  %s1421_s25 = scalar_lea.vmem %s3446_s15, %s2519_s23 [#allocation7] }
  0x61   : > { %807 = vmatprep.subr.bf16.mxu0 %v2701_v44  ;;  %880 = vmatprep.subr.bf16.mxu1 %v2703_v45  ;;  %s1668_s23 = ssub.s32 4, %s2975_s18 }
  0x62   : > { %v406_v43 = vshrl.u32 %v405_v42, 7 }
  0x64   : > { %808 = vmatpush1.bf16.msra.mxu0 %v2705_v46  ;;  %881 = vmatpush1.bf16.msra.mxu1 %v2706_v47  ;;  %v407_v44 = vsub.s32 0, %v406_v43  ;;  %v415_v45 = vsub.s32 2, %v406_v43  ;;  %v403_v46 = vld [vmem:[%s324_s30] sm:$0xf]  ;;  %v411_v47 = vsub.s32 1, %v406_v43  ;;  %v419_v48 = vsub.s32 3, %v406_v43 }
  0x65   : > { %809 = vmatprep.subr.bf16.mxu0 %v2707_v49  ;;  %882 = vmatprep.subr.bf16.mxu1 %v2709_v50  ;;  %s3531_s30 = sadd.s32 16, %s2571_s29 }
  0x66   : > { %v3397_v49 = vrot.slane %v403_v46, %v407_v44  ;;  %v3399_v50 = vrot.slane %v403_v46, %v415_v45  ;;  %s1426_s26 = sshra.s32 %s3531_s30, 3 }
  0x67   : > { %s2556_s5 = sshll.u32 %s1426_s26, 5 }
  0x68   : > { %810 = vmatpush1.bf16.msra.mxu0 %v2711_v51  ;;  %883 = vmatpush1.bf16.msra.mxu1 %v2712_v52  ;;  %v3401_v51 = vrot.slane %v403_v46, %v411_v47  ;;  %v3403_v52 = vrot.slane %v403_v46, %v419_v48  ;;  %s1430_s6 = scalar_lea.vmem [#allocation2], %s2556_s5 }
  0x69   : > { %811 = vmatprep.subr.bf16.mxu0 %v2713_v53  ;;  %884 = vmatprep.subr.bf16.mxu1 %v2715_v54 }
  0x6c   : > { %812 = vmatpush1.bf16.msra.mxu0 %v2717_v55  ;;  %885 = vmatpush1.bf16.msra.mxu1 %v2718_v56 }
  0x6d   : > { %813 = vmatprep.subr.bf16.mxu0 %v2719_v57  ;;  %886 = vmatprep.subr.bf16.mxu1 %v2721_v58 }
  0x70   : > { %814 = vmatpush1.bf16.msra.mxu0 %v2723_v59  ;;  %887 = vmatpush1.bf16.msra.mxu1 %v2724_v60 }
  0x71   : > { %815 = vmatprep.subr.bf16.mxu0 %v2725_v61  ;;  %888 = vmatprep.subr.bf16.mxu1 %v2727_v62 }
  0x74   : > { %816 = vmatpush1.bf16.msra.mxu0 %v2729_v63  ;;  %889 = vmatpush1.bf16.msra.mxu1 %v2730_v0 }
  0x75   : > { %1180 = vmatprep.subr.bf16.mxu0 %v3207_v1  ;;  %1221 = vmatprep.subr.bf16.mxu1 %v3210_v2 }
  0x77   : > { %818 = vmatmul.mubr.bf16.vlgmr.msra.gmra.mrb[0].mxu0 %v2731_v3  ;;  %891 = vmatmul.mubr.bf16.vlgmr.msra.gmra.mrb[0].mxu1 %v2731_v3 }
  0x78   : > { %1181 = vmatpush1.bf16.msra.mxu0 %v3216_v4  ;;  %1222 = vmatpush1.bf16.msra.mxu1 %v3222_v6 }
  0x79   : > { %1182 = vmatprep.subr.bf16.mxu0 %v3219_v5  ;;  %827 = vmatprep.mubr.bf16.mxu0 %v2743_v7 }
  0x7a   : > { %900 = vmatprep.mubr.bf16.mxu1 %v2743_v7  ;;  %1223 = vmatprep.subr.bf16.mxu1 %v3230_v8 }
  0x7c   : > { %1183 = vmatpush1.bf16.msra.mxu0 %v3233_v9  ;;  %1224 = vmatpush1.bf16.msra.mxu1 %v3238_v10 }
  0x7d   : > { %1184 = vmatprep.subr.bf16.mxu0 %v3242_v11  ;;  %1225 = vmatprep.subr.bf16.mxu1 %v3245_v12 }
  0x7f   : > { %828 = vmatmul.mubr.bf16.gmra.mrb[4].mxu0 %v2745_v13  ;;  %901 = vmatmul.mubr.bf16.gmra.mrb[4].mxu1 %v2745_v13 }
  0x80   : > { %1185 = vmatpush1.bf16.msra.mxu0 %v3254_v14  ;;  %1226 = vmatpush1.bf16.msra.mxu1 %v3257_v15 }
  0x81   : > { %1186 = vmatprep.subr.bf16.mxu0 %v3262_v16  ;;  %837 = vmatprep.mubr.bf16.mxu0 %v2758_v17 }
  0x82   : > { %910 = vmatprep.mubr.bf16.mxu1 %v2758_v17  ;;  %1227 = vmatprep.subr.bf16.mxu1 %v3268_v18 }
  0x84   : > { %1187 = vmatpush1.bf16.msra.mxu0 %v3273_v19  ;;  %1228 = vmatpush1.bf16.msra.mxu1 %v3276_v20 }
  0x85   : > { %1188 = vmatprep.subr.bf16.mxu0 %v3280_v21  ;;  %1229 = vmatprep.subr.bf16.mxu1 %v3283_v22 }
  0x87   : > { %838 = vmatmul.mubr.bf16.gmra.mrb[8].mxu0 %v2760_v23  ;;  %911 = vmatmul.mubr.bf16.gmra.mrb[8].mxu1 %v2760_v23 }
  0x88   : > { %1189 = vmatpush1.bf16.msra.mxu0 %v3292_v24  ;;  %1230 = vmatpush1.bf16.msra.mxu1 %v3295_v25 }
  0x89   : > { %1190 = vmatprep.subr.bf16.mxu0 %v3300_v26  ;;  %847 = vmatprep.mubr.bf16.mxu0 %v2773_v27 }
  0x8a   : > { %920 = vmatprep.mubr.bf16.mxu1 %v2773_v27  ;;  %1231 = vmatprep.subr.bf16.mxu1 %v3306_v28 }
  0x8c   : > { %1191 = vmatpush1.bf16.msra.mxu0 %v3311_v29  ;;  %1232 = vmatpush1.bf16.msra.mxu1 %v3314_v30 }
  0x8d   : > { %1192 = vmatprep.subr.bf16.mxu0 %v3318_v31  ;;  %1233 = vmatprep.subr.bf16.mxu1 %v3321_v32 }
  0x8f   : > { %848 = vmatmul.mubr.bf16.gmra.mrb[12].mxu0 %v2775_v33  ;;  %921 = vmatmul.mubr.bf16.gmra.mrb[12].mxu1 %v2775_v33 }
  0x90   : > { %1193 = vmatpush1.bf16.msra.mxu0 %v3330_v34  ;;  %1234 = vmatpush1.bf16.msra.mxu1 %v3333_v35 }
  0x91   : > { %1194 = vmatprep.subr.bf16.mxu0 %v3338_v36  ;;  %1212 = vmatprep.mubr.bf16.mxu0 %v2989_v40 }
  0x92   : > { %1235 = vmatprep.subr.bf16.mxu1 %v3341_v37  ;;  %1253 = vmatprep.mubr.bf16.mxu1 %v2989_v40 }
  0x94   : > { %1195 = vmatpush1.bf16.msra.mxu0 %v3346_v38  ;;  %1236 = vmatpush1.bf16.msra.mxu1 %v3349_v39 }
  0x95   : > { %1312 = vmatprep.subr.bf16.mxu0 %v3207_v1  ;;  %1353 = vmatprep.subr.bf16.mxu1 %v3210_v2 }
  0x97   : > { %1213 = vmatmul.mubr.bf16.vlgmr.msra.gmra.mrb[16].mxu0 %v2990_v41  ;;  %1254 = vmatmul.mubr.bf16.vlgmr.msra.gmra.mrb[16].mxu1 %v2990_v41 }
  0x98   : > { %1313 = vmatpush1.bf16.msra.mxu0 %v3216_v4  ;;  %1354 = vmatpush1.bf16.msra.mxu1 %v3222_v6 }
  0x99   : > { %1314 = vmatprep.subr.bf16.mxu0 %v3219_v5  ;;  %1355 = vmatprep.subr.bf16.mxu1 %v3230_v8 }
  0x9a   : > { %1344 = vmatprep.mubr.bf16.mxu0 %v2989_v40  ;;  %1385 = vmatprep.mubr.bf16.mxu1 %v2989_v40 }
  0x9c   : > { %1315 = vmatpush1.bf16.msra.mxu0 %v3233_v9  ;;  %1356 = vmatpush1.bf16.msra.mxu1 %v3238_v10 }
  0x9d   : > { %1316 = vmatprep.subr.bf16.mxu0 %v3242_v11  ;;  %1357 = vmatprep.subr.bf16.mxu1 %v3245_v12 }
  0xa0   : > { %1317 = vmatpush1.bf16.msra.mxu0 %v3254_v14  ;;  %1358 = vmatpush1.bf16.msra.mxu1 %v3257_v15 }
  0xa1   : > { %1318 = vmatprep.subr.bf16.mxu0 %v3262_v16  ;;  %1359 = vmatprep.subr.bf16.mxu1 %v3268_v18 }
  0xa4   : > { %1319 = vmatpush1.bf16.msra.mxu0 %v3273_v19  ;;  %1360 = vmatpush1.bf16.msra.mxu1 %v3276_v20 }
  0xa5   : > { %1320 = vmatprep.subr.bf16.mxu0 %v3280_v21  ;;  %1361 = vmatprep.subr.bf16.mxu1 %v3283_v22 }
  0xa8   : > { %1321 = vmatpush1.bf16.msra.mxu0 %v3292_v24  ;;  %1362 = vmatpush1.bf16.msra.mxu1 %v3295_v25 }
  0xa9   : > { %1322 = vmatprep.subr.bf16.mxu0 %v3300_v26  ;;  %1363 = vmatprep.subr.bf16.mxu1 %v3306_v28 }
  0xac   : > { %1323 = vmatpush1.bf16.msra.mxu0 %v3311_v29  ;;  %1364 = vmatpush1.bf16.msra.mxu1 %v3314_v30 }
  0xad   : > { %1324 = vmatprep.subr.bf16.mxu0 %v3318_v31  ;;  %1365 = vmatprep.subr.bf16.mxu1 %v3321_v32 }
  0xb0   : > { %1325 = vmatpush1.bf16.msra.mxu0 %v3330_v34  ;;  %1366 = vmatpush1.bf16.msra.mxu1 %v3333_v35 }
  0xb1   : > { %1326 = vmatprep.subr.bf16.mxu0 %v3338_v36  ;;  %1367 = vmatprep.subr.bf16.mxu1 %v3341_v37 }
  0xb4   : > { %1327 = vmatpush1.bf16.msra.mxu0 %v3346_v38  ;;  %1368 = vmatpush1.bf16.msra.mxu1 %v3349_v39 }
  0xb5   : > { %1435 = vmatprep.subr.bf16.mxu0 %v3207_v1  ;;  %1476 = vmatprep.subr.bf16.mxu1 %v3210_v2 }
 0x14a   : > { %v819_v53 = vpop.f32.mrb[0].mxu0  ;;  %v892_v54 = vpop.f32.mrb[0].mxu1 }
 0x14b   : > { %v820_v55 = vadd.f32 %v819_v53, %v3397_v49  ;;  %v893_v56 = vadd.f32 %v892_v54, %v3399_v50  ;;  %v821_v57 = vpop.f32.mrb[1].mxu0  ;;  %v894_v58 = vpop.f32.mrb[1].mxu1 }
 0x14c   : > { %v822_v59 = vadd.f32 %v821_v57, %v3401_v51  ;;  %v895_v60 = vadd.f32 %v894_v58, %v3403_v52  ;;  %v823_v61 = vpop.f32.mrb[2].mxu0  ;;  %v896_v62 = vpop.f32.mrb[2].mxu1 }
 0x14d   : > { %931 = vst [vmem:[#allocation2] sm:$0xff] %v820_v55  ;;  %933 = vst [vmem:[#allocation2 + $0x10] sm:$0xff] %v893_v56  ;;  %v824_v63 = vadd.f32 %v823_v61, %v3397_v49  ;;  %v897_v0 = vadd.f32 %v896_v62, %v3399_v50  ;;  %v825_v3 = vpop.f32.mrb[3].mxu0  ;;  %v898_v7 = vpop.f32.mrb[3].mxu1 }
 0x14e   : > { %932 = vst [vmem:[#allocation2 + $0x8] sm:$0xff] %v822_v59  ;;  %934 = vst [vmem:[#allocation2 + $0x18] sm:$0xff] %v895_v60  ;;  %v826_v13 = vadd.f32 %v825_v3, %v3401_v51  ;;  %v899_v17 = vadd.f32 %v898_v7, %v3403_v52 }
 0x14f   : > { %935 = vst [vmem:[#allocation2 + $0x20] sm:$0xff] %v824_v63  ;;  %937 = vst [vmem:[#allocation2 + $0x30] sm:$0xff] %v897_v0 }
 0x150   : > { %936 = vst [vmem:[#allocation2 + $0x28] sm:$0xff] %v826_v13  ;;  %938 = vst [vmem:[#allocation2 + $0x38] sm:$0xff] %v899_v17 }
 0x152   : > { %v829_v23 = vpop.f32.mrb[4].mxu0  ;;  %v902_v27 = vpop.f32.mrb[4].mxu1 }
 0x153   : > { %v830_v33 = vadd.f32 %v829_v23, %v3397_v49  ;;  %v903_v41 = vadd.f32 %v902_v27, %v3399_v50  ;;  %v831_v42 = vpop.f32.mrb[5].mxu0  ;;  %v904_v43 = vpop.f32.mrb[5].mxu1 }
 0x154   : > { %v832_v44 = vadd.f32 %v831_v42, %v3401_v51  ;;  %v905_v45 = vadd.f32 %v904_v43, %v3403_v52  ;;  %v833_v46 = vpop.f32.mrb[6].mxu0  ;;  %v906_v47 = vpop.f32.mrb[6].mxu1 }
 0x155   : > { %939 = vst [vmem:[#allocation2 + $0x40] sm:$0xff] %v830_v33  ;;  %941 = vst [vmem:[#allocation2 + $0x50] sm:$0xff] %v903_v41  ;;  %v834_v48 = vadd.f32 %v833_v46, %v3397_v49  ;;  %v907_v53 = vadd.f32 %v906_v47, %v3399_v50  ;;  %v835_v54 = vpop.f32.mrb[7].mxu0  ;;  %v908_v55 = vpop.f32.mrb[7].mxu1 }
 0x156   : > { %940 = vst [vmem:[#allocation2 + $0x48] sm:$0xff] %v832_v44  ;;  %942 = vst [vmem:[#allocation2 + $0x58] sm:$0xff] %v905_v45  ;;  %v836_v56 = vadd.f32 %v835_v54, %v3401_v51  ;;  %v909_v57 = vadd.f32 %v908_v55, %v3403_v52 }
 0x157   : > { %943 = vst [vmem:[#allocation2 + $0x60] sm:$0xff] %v834_v48  ;;  %945 = vst [vmem:[#allocation2 + $0x70] sm:$0xff] %v907_v53 }
 0x158   : > { %944 = vst [vmem:[#allocation2 + $0x68] sm:$0xff] %v836_v56  ;;  %946 = vst [vmem:[#allocation2 + $0x78] sm:$0xff] %v909_v57 }
 0x15a   : > { %v839_v58 = vpop.f32.mrb[8].mxu0  ;;  %v912_v59 = vpop.f32.mrb[8].mxu1 }
 0x15b   : > { %v840_v60 = vadd.f32 %v839_v58, %v3397_v49  ;;  %v913_v61 = vadd.f32 %v912_v59, %v3399_v50  ;;  %v841_v62 = vpop.f32.mrb[9].mxu0  ;;  %v914_v63 = vpop.f32.mrb[9].mxu1 }
 0x15c   : > { %v842_v0 = vadd.f32 %v841_v62, %v3401_v51  ;;  %v915_v3 = vadd.f32 %v914_v63, %v3403_v52  ;;  %v843_v7 = vpop.f32.mrb[10].mxu0  ;;  %v916_v13 = vpop.f32.mrb[10].mxu1 }
 0x15d   : > { %947 = vst [vmem:[#allocation2 + $0x80] sm:$0xff] %v840_v60  ;;  %949 = vst [vmem:[#allocation2 + $0x90] sm:$0xff] %v913_v61  ;;  %v844_v17 = vadd.f32 %v843_v7, %v3397_v49  ;;  %v917_v23 = vadd.f32 %v916_v13, %v3399_v50  ;;  %v845_v27 = vpop.f32.mrb[11].mxu0  ;;  %v918_v33 = vpop.f32.mrb[11].mxu1 }
 0x15e   : > { %948 = vst [vmem:[#allocation2 + $0x88] sm:$0xff] %v842_v0  ;;  %950 = vst [vmem:[#allocation2 + $0x98] sm:$0xff] %v915_v3  ;;  %v846_v41 = vadd.f32 %v845_v27, %v3401_v51  ;;  %v919_v42 = vadd.f32 %v918_v33, %v3403_v52 }
 0x15f   : > { %951 = vst [vmem:[#allocation2 + $0xa0] sm:$0xff] %v844_v17  ;;  %953 = vst [vmem:[#allocation2 + $0xb0] sm:$0xff] %v917_v23 }
 0x160   : > { %952 = vst [vmem:[#allocation2 + $0xa8] sm:$0xff] %v846_v41  ;;  %954 = vst [vmem:[#allocation2 + $0xb8] sm:$0xff] %v919_v42 }
 0x162   : > { %v849_v43 = vpop.f32.mrb[12].mxu0  ;;  %v922_v44 = vpop.f32.mrb[12].mxu1 }
 0x163   : > { %v850_v45 = vadd.f32 %v849_v43, %v3397_v49  ;;  %v923_v46 = vadd.f32 %v922_v44, %v3399_v50  ;;  %v851_v47 = vpop.f32.mrb[13].mxu0  ;;  %v924_v48 = vpop.f32.mrb[13].mxu1 }
 0x164   : > { %v852_v53 = vadd.f32 %v851_v47, %v3401_v51  ;;  %v925_v54 = vadd.f32 %v924_v48, %v3403_v52  ;;  %v853_v55 = vpop.f32.mrb[14].mxu0  ;;  %v926_v56 = vpop.f32.mrb[14].mxu1 }
 0x165   : > { %955 = vst [vmem:[#allocation2 + $0xc0] sm:$0xff] %v850_v45  ;;  %957 = vst [vmem:[#allocation2 + $0xd0] sm:$0xff] %v923_v46  ;;  %v854_v57 = vadd.f32 %v853_v55, %v3397_v49  ;;  %v927_v58 = vadd.f32 %v926_v56, %v3399_v50  ;;  %v855_v59 = vpop.f32.mrb[15].mxu0  ;;  %v928_v60 = vpop.f32.mrb[15].mxu1 }
 0x166   : > { %956 = vst [vmem:[#allocation2 + $0xc8] sm:$0xff] %v852_v53  ;;  %958 = vst [vmem:[#allocation2 + $0xd8] sm:$0xff] %v925_v54  ;;  %v856_v61 = vadd.f32 %v855_v59, %v3401_v51  ;;  %v929_v62 = vadd.f32 %v928_v60, %v3403_v52 }
 0x167   : > { %959 = vst [vmem:[#allocation2 + $0xe0] sm:$0xff] %v854_v57  ;;  %961 = vst [vmem:[#allocation2 + $0xf0] sm:$0xff] %v927_v58 }
 0x168   : > { %960 = vst [vmem:[#allocation2 + $0xe8] sm:$0xff] %v856_v61  ;;  %962 = vst [vmem:[#allocation2 + $0xf8] sm:$0xff] %v929_v62 }
 0x16a   : > { %v1214_v63 = vpop.f32.mrb[16].mxu0  ;;  %v1255_v49 = vpop.f32.mrb[16].mxu1 }
 0x16b   : > { %v1216_v0 = vpop.f32.mrb[17].mxu0  ;;  %v1257_v50 = vpop.f32.mrb[17].mxu1 }
 0x16c   : > { %v1218_v3 = vpop.f32.mrb[18].mxu0  ;;  %v1259_v7 = vpop.f32.mrb[18].mxu1 }
 0x16d   : > { %v1219_v13 = vpop.f32.mrb[19].mxu0  ;;  %v1260_v17 = vpop.f32.mrb[19].mxu1 }
 0x16f   : > { %v1015_v51 = vld [vmem:[%s1014_s7] sm:$0xff]  ;;  %v1016_v23 = vld [vmem:[%s1014_s7 + $0x8] sm:$0xff]  ;;  %v1017_v33 = vld [vmem:[%s1014_s7 + $0x10] sm:$0xff] }
 0x170   : > { %v1262_v52 = vadd.f32 %v1214_v63, %v1015_v51  ;;  %v1263_v27 = vadd.f32 %v1216_v0, %v1016_v23  ;;  %v1264_v43 = vadd.f32 %v1255_v49, %v1017_v33  ;;  %v1018_v44 = vld [vmem:[%s1014_s7 + $0x18] sm:$0xff]  ;;  %v1308_v3 = vld [vmem:[%s1307_s12] sm:$0xff]  ;;  %v1309_v51 = vld [vmem:[%s1307_s12 + $0x8] sm:$0xff]  ;;  %s2523_s7 = sshll.u32 %s1426_s26, 2 }
 0x171   : > { %v1265_v45 = vadd.f32 %v1257_v50, %v1018_v44  ;;  %s1544_s9 = scalar_lea.vmem %s3446_s15, %s2523_s7 [#allocation7]  ;;  %s2572_s7 = smul.u32 4294967272, %s2975_s18 }
 0x172   : > { %v1272_v41 = vmul.f32 0.5, %v1262_v52  ;;  %v1273_v42 = vmul.f32 0.5, %v1263_v27 }
 0x173   : > { %v1275_v46 = vmul.f32 0.5, %v1265_v45  ;;  %v1310_v45 = vld [vmem:[%s1307_s12 + $0x10] sm:$0xff] }
 0x174   : > { %2791 = vtanh.f32 %v1272_v41 }
 0x175   : > { %2793 = vtanh.f32 %v1273_v42 }
 0x176   : > { %2795 = vtanh.f32 %v1264_v43 }
 0x177   : > { %2797 = vtanh.f32 %v1275_v46 }
 0x17e   : > { %v2792_v47 = vpop.eup %2791 }
 0x17f   : > { %v2794_v48 = vpop.eup %2793  ;;  %v1280_v53 = vmul.f32 0.5, %v2792_v47 }
 0x180   : > { %v1281_v54 = vmul.f32 0.5, %v2794_v48  ;;  %v2796_v56 = vpop.eup %2795  ;;  %v1311_v48 = vld [vmem:[%s1307_s12 + $0x18] sm:$0xff] }
 0x181   : > { %v1287_v55 = vadd.f32 0.5, %v1280_v53  ;;  %v2798_v61 = vpop.eup %2797 }
 0x182   : > { %v1288_v57 = vadd.f32 0.5, %v1281_v54  ;;  %v1283_v62 = vmul.f32 0.5, %v2798_v61 }
 0x183   : > { %v1292_v58 = vmul.f32 %v2796_v56, %v1287_v55 }
 0x184   : > { %v1291_v59 = vmul.f32 0.0, %v1288_v57  ;;  %v1290_v63 = vadd.f32 0.5, %v1283_v62 }
 0x186   : > { %v3441_v60 = vadd.f32 %v1292_v58, %v1291_v59 }
 0x188   : > { %2799 = vtanh.f32 %v3441_v60 }
 0x192   : > { %v2800_v49 = vpop.eup %2799 }
 0x193   : > { %v1295_v0 = vmul.f32 %v2800_v49, %v1290_v63 }
 0x195   : > { %v1296_v50 = vpack.c.bf16 %v1295_v0, %v1295_v0 }
 0x197   : > { %1299 = vst [vmem:[%s1298_s21] sm:$0xf] %v1296_v50  ;;  %1345 = vmatmul.mubr.bf16.vlgmr.msra.gmra.mrb[20].mxu0 %v1296_v50  ;;  %1386 = vmatmul.mubr.bf16.vlgmr.msra.gmra.mrb[20].mxu1 %v1296_v50  ;;  %s3578_s21 = sadd.s32 24, %s2479_s14 }
 0x198   : > { %1436 = vmatpush1.bf16.msra.mxu0 %v3216_v4  ;;  %1477 = vmatpush1.bf16.msra.mxu1 %v3222_v6  ;;  %s1548_s13 = sshra.s32 %s3578_s21, 3 }
 0x199   : > { %1437 = vmatprep.subr.bf16.mxu0 %v3219_v5  ;;  %1478 = vmatprep.subr.bf16.mxu1 %v3230_v8  ;;  %s2559_s8 = sshll.u32 %s1548_s13, 5  ;;  %s2527_s11 = sshll.u32 %s1548_s13, 2 }
 0x19a   : > { %1467 = vmatprep.mubr.bf16.mxu0 %v2989_v40  ;;  %1508 = vmatprep.mubr.bf16.mxu1 %v2989_v40  ;;  %s1552_s10 = scalar_lea.vmem [#allocation2], %s2559_s8  ;;  %s1666_s12 = scalar_lea.vmem %s3446_s15, %s2527_s11 [#allocation7] }
 0x19c   : > { %1438 = vmatpush1.bf16.msra.mxu0 %v3233_v9  ;;  %1479 = vmatpush1.bf16.msra.mxu1 %v3238_v10 }
 0x19d   : > { %1439 = vmatprep.subr.bf16.mxu0 %v3242_v11  ;;  %1480 = vmatprep.subr.bf16.mxu1 %v3245_v12 }
 0x1a0   : > { %1440 = vmatpush1.bf16.msra.mxu0 %v3254_v14  ;;  %1481 = vmatpush1.bf16.msra.mxu1 %v3257_v15 }
 0x1a1   : > { %1441 = vmatprep.subr.bf16.mxu0 %v3262_v16  ;;  %1482 = vmatprep.subr.bf16.mxu1 %v3268_v18 }
 0x1a4   : > { %1442 = vmatpush1.bf16.msra.mxu0 %v3273_v19  ;;  %1483 = vmatpush1.bf16.msra.mxu1 %v3276_v20 }
 0x1a5   : > { %1443 = vmatprep.subr.bf16.mxu0 %v3280_v21  ;;  %1484 = vmatprep.subr.bf16.mxu1 %v3283_v22 }
 0x1a8   : > { %1444 = vmatpush1.bf16.msra.mxu0 %v3292_v24  ;;  %1485 = vmatpush1.bf16.msra.mxu1 %v3295_v25 }
 0x1a9   : > { %1445 = vmatprep.subr.bf16.mxu0 %v3300_v26  ;;  %1486 = vmatprep.subr.bf16.mxu1 %v3306_v28 }
 0x1ac   : > { %1446 = vmatpush1.bf16.msra.mxu0 %v3311_v29  ;;  %1487 = vmatpush1.bf16.msra.mxu1 %v3314_v30 }
 0x1ad   : > { %1447 = vmatprep.subr.bf16.mxu0 %v3318_v31  ;;  %1488 = vmatprep.subr.bf16.mxu1 %v3321_v32 }
 0x1b0   : > { %1448 = vmatpush1.bf16.msra.mxu0 %v3330_v34  ;;  %1489 = vmatpush1.bf16.msra.mxu1 %v3333_v35 }
 0x1b1   : > { %1449 = vmatprep.subr.bf16.mxu0 %v3338_v36  ;;  %1490 = vmatprep.subr.bf16.mxu1 %v3341_v37 }
 0x1b4   : > { %1450 = vmatpush1.bf16.msra.mxu0 %v3346_v38  ;;  %1491 = vmatpush1.bf16.msra.mxu1 %v3349_v39 }
 0x1b5   : > { %1557 = vmatprep.subr.bf16.mxu0 %v3207_v1  ;;  %1598 = vmatprep.subr.bf16.mxu1 %v3210_v2 }
 0x26a   : > { %v1346_v7 = vpop.f32.mrb[20].mxu0  ;;  %v1387_v13 = vpop.f32.mrb[20].mxu1 }
 0x26b   : > { %v1394_v17 = vadd.f32 %v1346_v7, %v1308_v3  ;;  %v1348_v23 = vpop.f32.mrb[21].mxu0  ;;  %v1389_v52 = vpop.f32.mrb[21].mxu1  ;;  %v1396_v47 = vadd.f32 %v1387_v13, %v1310_v45 }
 0x26c   : > { %v1395_v27 = vadd.f32 %v1348_v23, %v1309_v51  ;;  %v1350_v33 = vpop.f32.mrb[22].mxu0  ;;  %v1391_v41 = vpop.f32.mrb[22].mxu1  ;;  %v1397_v53 = vadd.f32 %v1389_v52, %v1311_v48 }
 0x26d   : > { %v1398_v42 = vmul.f32 0.5, %v1394_v17  ;;  %v1351_v43 = vpop.f32.mrb[23].mxu0  ;;  %v1392_v44 = vpop.f32.mrb[23].mxu1  ;;  %v1432_v33 = vld [vmem:[%s1430_s6 + $0x8] sm:$0xff] }
 0x26e   : > { %v1399_v46 = vmul.f32 0.5, %v1395_v27  ;;  %v1401_v54 = vmul.f32 0.5, %v1397_v53  ;;  %v1433_v53 = vld [vmem:[%s1430_s6 + $0x10] sm:$0xff] }
 0x26f   : > { %2801 = vtanh.f32 %v1398_v42 }
 0x270   : > { %2803 = vtanh.f32 %v1399_v46 }
 0x271   : > { %2805 = vtanh.f32 %v1396_v47 }
 0x272   : > { %2807 = vtanh.f32 %v1401_v54 }
 0x279   : > { %v2802_v55 = vpop.eup %2801 }
 0x27a   : > { %v2804_v56 = vpop.eup %2803  ;;  %v1406_v57 = vmul.f32 0.5, %v2802_v55 }
 0x27b   : > { %v1407_v58 = vmul.f32 0.5, %v2804_v56  ;;  %v2806_v61 = vpop.eup %2805  ;;  %v1434_v56 = vld [vmem:[%s1430_s6 + $0x18] sm:$0xff] }
 0x27c   : > { %v1410_v59 = vadd.f32 0.5, %v1406_v57  ;;  %v2808_v50 = vpop.eup %2807 }
 0x27d   : > { %v1411_v62 = vadd.f32 0.5, %v1407_v58  ;;  %v1409_v3 = vmul.f32 0.5, %v2808_v50 }
 0x27e   : > { %v1415_v63 = vmul.f32 %v2806_v61, %v1410_v59 }
 0x27f   : > { %v1414_v49 = vmul.f32 %v1411_v62, %v3441_v60  ;;  %v1413_v7 = vadd.f32 0.5, %v1409_v3  ;;  %v1431_v60 = vld [vmem:[%s1430_s6] sm:$0xff] }
 0x281   : > { %v3490_v0 = vadd.f32 %v1415_v63, %v1414_v49 }
 0x283   : > { %2809 = vtanh.f32 %v3490_v0 }
 0x28d   : > { %v2810_v13 = vpop.eup %2809 }
 0x28e   : > { %v1418_v17 = vmul.f32 %v2810_v13, %v1413_v7 }
 0x290   : > { %v1419_v51 = vpack.c.bf16 %v1418_v17, %v1418_v17 }
 0x292   : > { %1422 = vst [vmem:[%s1421_s25] sm:$0xf] %v1419_v51  ;;  %1468 = vmatmul.mubr.bf16.vlgmr.msra.gmra.mrb[24].mxu0 %v1419_v51  ;;  %1509 = vmatmul.mubr.bf16.vlgmr.msra.gmra.mrb[24].mxu1 %v1419_v51  ;;  %s3679_s25 = sshll.u32 %s1668_s23, 3 }
 0x293   : > { %1558 = vmatpush1.bf16.msra.mxu0 %v3216_v4  ;;  %1599 = vmatpush1.bf16.msra.mxu1 %v3222_v6  ;;  %s1670_s29 = sshra.s32 %s3679_s25, 3 }
 0x294   : > { %1559 = vmatprep.subr.bf16.mxu0 %v3219_v5  ;;  %1600 = vmatprep.subr.bf16.mxu1 %v3230_v8  ;;  %s2560_s30 = sshll.u32 %s1670_s29, 5  ;;  %s2531_s5 = sshll.u32 %s1670_s29, 2 }
 0x295   : > { %1589 = vmatprep.mubr.bf16.mxu0 %v2989_v40  ;;  %1630 = vmatprep.mubr.bf16.mxu1 %v2989_v40  ;;  %s1674_s26 = scalar_lea.vmem [#allocation2], %s2560_s30  ;;  %s1788_s6 = scalar_lea.vmem %s3446_s15, %s2531_s5 [#allocation7] }
 0x297   : > { %1560 = vmatpush1.bf16.msra.mxu0 %v3233_v9  ;;  %1601 = vmatpush1.bf16.msra.mxu1 %v3238_v10 }
 0x298   : > { %1561 = vmatprep.subr.bf16.mxu0 %v3242_v11  ;;  %1602 = vmatprep.subr.bf16.mxu1 %v3245_v12 }
 0x29b   : > { %1562 = vmatpush1.bf16.msra.mxu0 %v3254_v14  ;;  %1603 = vmatpush1.bf16.msra.mxu1 %v3257_v15 }
 0x29c   : > { %1563 = vmatprep.subr.bf16.mxu0 %v3262_v16  ;;  %1604 = vmatprep.subr.bf16.mxu1 %v3268_v18 }
 0x29f   : > { %1564 = vmatpush1.bf16.msra.mxu0 %v3273_v19  ;;  %1605 = vmatpush1.bf16.msra.mxu1 %v3276_v20 }
 0x2a0   : > { %1565 = vmatprep.subr.bf16.mxu0 %v3280_v21  ;;  %1606 = vmatprep.subr.bf16.mxu1 %v3283_v22 }
 0x2a3   : > { %1566 = vmatpush1.bf16.msra.mxu0 %v3292_v24  ;;  %1607 = vmatpush1.bf16.msra.mxu1 %v3295_v25 }
 0x2a4   : > { %1567 = vmatprep.subr.bf16.mxu0 %v3300_v26  ;;  %1608 = vmatprep.subr.bf16.mxu1 %v3306_v28 }
 0x2a7   : > { %1568 = vmatpush1.bf16.msra.mxu0 %v3311_v29  ;;  %1609 = vmatpush1.bf16.msra.mxu1 %v3314_v30 }
 0x2a8   : > { %1569 = vmatprep.subr.bf16.mxu0 %v3318_v31  ;;  %1610 = vmatprep.subr.bf16.mxu1 %v3321_v32 }
 0x2ab   : > { %1570 = vmatpush1.bf16.msra.mxu0 %v3330_v34  ;;  %1611 = vmatpush1.bf16.msra.mxu1 %v3333_v35 }
 0x2ac   : > { %1571 = vmatprep.subr.bf16.mxu0 %v3338_v36  ;;  %1612 = vmatprep.subr.bf16.mxu1 %v3341_v37 }
 0x2af   : > { %1572 = vmatpush1.bf16.msra.mxu0 %v3346_v38  ;;  %1613 = vmatpush1.bf16.msra.mxu1 %v3349_v39 }
 0x2b0   : > { %1679 = vmatprep.subr.bf16.mxu0 %v3207_v1  ;;  %1720 = vmatprep.subr.bf16.mxu1 %v3210_v2 }
 0x365   : > { %v1469_v23 = vpop.f32.mrb[24].mxu0  ;;  %v1510_v52 = vpop.f32.mrb[24].mxu1 }
 0x366   : > { %v1517_v27 = vadd.f32 %v1469_v23, %v1431_v60  ;;  %v1471_v41 = vpop.f32.mrb[25].mxu0  ;;  %v1512_v42 = vpop.f32.mrb[25].mxu1  ;;  %v1519_v55 = vadd.f32 %v1510_v52, %v1433_v53 }
 0x367   : > { %v1518_v43 = vadd.f32 %v1471_v41, %v1432_v33  ;;  %v1473_v44 = vpop.f32.mrb[26].mxu0  ;;  %v1514_v45 = vpop.f32.mrb[26].mxu1  ;;  %v1520_v57 = vadd.f32 %v1512_v42, %v1434_v56 }
 0x368   : > { %v1521_v46 = vmul.f32 0.5, %v1517_v27  ;;  %v1474_v47 = vpop.f32.mrb[27].mxu0  ;;  %v1515_v48 = vpop.f32.mrb[27].mxu1 }
 0x369   : > { %v1522_v54 = vmul.f32 0.5, %v1518_v43  ;;  %v1524_v58 = vmul.f32 0.5, %v1520_v57 }
 0x36a   : > { %2811 = vtanh.f32 %v1521_v46 }
 0x36b   : > { %2813 = vtanh.f32 %v1522_v54 }
 0x36c   : > { %2815 = vtanh.f32 %v1519_v55 }
 0x36d   : > { %2817 = vtanh.f32 %v1524_v58 }
 0x374   : > { %v2812_v59 = vpop.eup %2811 }
 0x375   : > { %v2814_v61 = vpop.eup %2813  ;;  %v1529_v62 = vmul.f32 0.5, %v2812_v59 }
 0x376   : > { %v1530_v63 = vmul.f32 0.5, %v2814_v61  ;;  %v2816_v50 = vpop.eup %2815 }
 0x377   : > { %v1533_v49 = vadd.f32 0.5, %v1529_v62  ;;  %v2818_v51 = vpop.eup %2817  ;;  %v3591_v62 = vld [vmem:[%s3188_s24] ss:$16 sps:$4 sm:$0xff]  }
 0x378   : > { %v1534_v3 = vadd.f32 0.5, %v1530_v63  ;;  %v1532_v60 = vmul.f32 0.5, %v2818_v51  ;;  %v3595_v63 = vld [vmem:[%s3188_s24 + $0x8] ss:$16 sps:$4 sm:$0xff]   ;;  %v3625_v51 = vld [vmem:[%s3188_s24 + $0x40] ss:$16 sps:$4 sm:$0xff]  }
 0x379   : > { %v1538_v7 = vmul.f32 %v2816_v50, %v1533_v49  ;;  %v3599_v49 = vld [vmem:[%s3188_s24 + $0x24] ss:$16 sps:$4 sm:$0xff]   ;;  %v3603_v50 = vld [vmem:[%s3188_s24 + $0x2c] ss:$16 sps:$4 sm:$0xff]  }
 0x37a   : > { %v1537_v13 = vmul.f32 %v1534_v3, %v3490_v0  ;;  %v1536_v23 = vadd.f32 0.5, %v1532_v60  ;;  %v3609_v3 = vld [vmem:[%s3188_s24 + $0x20] ss:$16 sps:$4 sm:$0xff]   ;;  %v3629_v60 = vld [vmem:[%s3188_s24 + $0x48] ss:$16 sps:$4 sm:$0xff]  }
 0x37c   : > { %v3537_v17 = vadd.f32 %v1538_v7, %v1537_v13  ;;  %v3613_v7 = vld [vmem:[%s3188_s24 + $0x28] ss:$16 sps:$4 sm:$0xff]   ;;  %v3617_v13 = vld [vmem:[%s3188_s24 + $0x44] ss:$16 sps:$4 sm:$0xff]  }
 0x37e   : > { %2819 = vtanh.f32 %v3537_v17 }
 0x388   : > { %v2820_v52 = vpop.eup %2819 }
 0x389   : > { %v1541_v27 = vmul.f32 %v2820_v52, %v1536_v23  ;;  %v3633_v23 = vld [vmem:[%s3188_s24 + $0x64] ss:$16 sps:$4 sm:$0xff]   ;;  %v3637_v52 = vld [vmem:[%s3188_s24 + $0x6c] ss:$16 sps:$4 sm:$0xff]  }
 0x38b   : > { %v1542_v33 = vpack.c.bf16 %v1541_v27, %v1541_v27  ;;  %v3641_v27 = vld [vmem:[%s3188_s24 + $0x60] ss:$16 sps:$4 sm:$0xff]  }
 0x38d   : > { %1545 = vst [vmem:[%s1544_s9] sm:$0xf] %v1542_v33  ;;  %1590 = vmatmul.mubr.bf16.vlgmr.msra.gmra.mrb[28].mxu0 %v1542_v33  ;;  %1631 = vmatmul.mubr.bf16.vlgmr.msra.gmra.mrb[28].mxu1 %v1542_v33  ;;  %v3645_v33 = vld [vmem:[%s3188_s24 + $0x68] ss:$16 sps:$4 sm:$0xff]   ;;  %s3768_s9 = sadd.s32 40, %s2572_s7 }
 0x38e   : > { %1680 = vmatpush1.bf16.msra.mxu0 %v3216_v4  ;;  %1721 = vmatpush1.bf16.msra.mxu1 %v3222_v6  ;;  %v1553_v4 = vld [vmem:[%s1552_s10] sm:$0xff]  ;;  %s1793_s14 = sshra.s32 %s3768_s9, 3 }
 0x38f   : > { %1681 = vmatprep.subr.bf16.mxu0 %v3219_v5  ;;  %1722 = vmatprep.subr.bf16.mxu1 %v3230_v8  ;;  %s2563_s21 = sshll.u32 %s1793_s14, 5 }
 0x390   : > { %1711 = vmatprep.mubr.bf16.mxu0 %v2989_v40  ;;  %1752 = vmatprep.mubr.bf16.mxu1 %v2989_v40  ;;  %s1797_s13 = scalar_lea.vmem [#allocation2], %s2563_s21 }
 0x392   : > { %1682 = vmatpush1.bf16.msra.mxu0 %v3233_v9  ;;  %1723 = vmatpush1.bf16.msra.mxu1 %v3238_v10  ;;  %v1554_v9 = vld [vmem:[%s1552_s10 + $0x8] sm:$0xff] }
 0x393   : > { %1683 = vmatprep.subr.bf16.mxu0 %v3242_v11  ;;  %1724 = vmatprep.subr.bf16.mxu1 %v3245_v12 }
 0x396   : > { %1684 = vmatpush1.bf16.msra.mxu0 %v3254_v14  ;;  %1725 = vmatpush1.bf16.msra.mxu1 %v3257_v15 }
 0x397   : > { %1685 = vmatprep.subr.bf16.mxu0 %v3262_v16  ;;  %1726 = vmatprep.subr.bf16.mxu1 %v3268_v18  ;;  %v1555_v18 = vld [vmem:[%s1552_s10 + $0x10] sm:$0xff] }
 0x39a   : > { %1686 = vmatpush1.bf16.msra.mxu0 %v3273_v19  ;;  %1727 = vmatpush1.bf16.msra.mxu1 %v3276_v20 }
 0x39b   : > { %1687 = vmatprep.subr.bf16.mxu0 %v3280_v21  ;;  %1728 = vmatprep.subr.bf16.mxu1 %v3283_v22  ;;  %v1556_v21 = vld [vmem:[%s1552_s10 + $0x18] sm:$0xff]  ;;  %s2573_s10 = smul.u32 4294967256, %s2975_s18 }
 0x39d   : > { %s3813_s11 = sadd.s32 48, %s2573_s10 }
 0x39e   : > { %1688 = vmatpush1.bf16.msra.mxu0 %v3292_v24  ;;  %1729 = vmatpush1.bf16.msra.mxu1 %v3295_v25 }
 0x39f   : > { %1689 = vmatprep.subr.bf16.mxu0 %v3300_v26  ;;  %1730 = vmatprep.subr.bf16.mxu1 %v3306_v28 }
 0x3a2   : > { %1690 = vmatpush1.bf16.msra.mxu0 %v3311_v29  ;;  %1731 = vmatpush1.bf16.msra.mxu1 %v3314_v30 }
 0x3a3   : > { %1691 = vmatprep.subr.bf16.mxu0 %v3318_v31  ;;  %1732 = vmatprep.subr.bf16.mxu1 %v3321_v32 }
 0x3a6   : > { %1692 = vmatpush1.bf16.msra.mxu0 %v3330_v34  ;;  %1733 = vmatpush1.bf16.msra.mxu1 %v3333_v35 }
 0x3a7   : > { %1693 = vmatprep.subr.bf16.mxu0 %v3338_v36  ;;  %1734 = vmatprep.subr.bf16.mxu1 %v3341_v37 }
 0x3aa   : > { %1694 = vmatpush1.bf16.msra.mxu0 %v3346_v38  ;;  %1735 = vmatpush1.bf16.msra.mxu1 %v3349_v39 }
 0x3ab   : > { %1802 = vmatprep.subr.bf16.mxu0 %v3207_v1  ;;  %1843 = vmatprep.subr.bf16.mxu1 %v3210_v2 }
 0x460   : > { %v1591_v5 = vpop.f32.mrb[28].mxu0  ;;  %v1632_v6 = vpop.f32.mrb[28].mxu1 }
 0x461   : > { %v1639_v8 = vadd.f32 %v1591_v5, %v1553_v4  ;;  %v1593_v10 = vpop.f32.mrb[29].mxu0  ;;  %v1634_v11 = vpop.f32.mrb[29].mxu1  ;;  %v1641_v20 = vadd.f32 %v1632_v6, %v1555_v18  ;;  %v3649_v4 = vld [vmem:[%s3188_s24 + $0x84] ss:$16 sps:$4 sm:$0xff]   ;;  %v3653_v5 = vld [vmem:[%s3188_s24 + $0x8c] ss:$16 sps:$4 sm:$0xff]  }
 0x462   : > { %v1640_v12 = vadd.f32 %v1593_v10, %v1554_v9  ;;  %v1595_v1 = vpop.f32.mrb[30].mxu0  ;;  %v1636_v14 = vpop.f32.mrb[30].mxu1  ;;  %v1642_v22 = vadd.f32 %v1634_v11, %v1556_v21  ;;  %v1678_v11 = vld [vmem:[%s1674_s26 + $0x18] sm:$0xff] }
 0x463   : > { %v1643_v2 = vmul.f32 0.5, %v1639_v8  ;;  %v1596_v15 = vpop.f32.mrb[31].mxu0  ;;  %v1637_v16 = vpop.f32.mrb[31].mxu1  ;;  %v1677_v8 = vld [vmem:[%s1674_s26 + $0x10] sm:$0xff] }
 0x464   : > { %v1644_v19 = vmul.f32 0.5, %v1640_v12  ;;  %v1646_v0 = vmul.f32 0.5, %v1642_v22 }
 0x465   : > { %2821 = vtanh.f32 %v1643_v2 }
 0x466   : > { %2823 = vtanh.f32 %v1644_v19 }
 0x467   : > { %2825 = vtanh.f32 %v1641_v20 }
 0x468   : > { %2827 = vtanh.f32 %v1646_v0 }
 0x46f   : > { %v2822_v41 = vpop.eup %2821 }
 0x470   : > { %v2824_v42 = vpop.eup %2823  ;;  %v1651_v43 = vmul.f32 0.5, %v2822_v41 }
 0x471   : > { %v1652_v44 = vmul.f32 0.5, %v2824_v42  ;;  %v2826_v46 = vpop.eup %2825 }
 0x472   : > { %v1655_v45 = vadd.f32 0.5, %v1651_v43  ;;  %v2828_v55 = vpop.eup %2827 }
 0x473   : > { %v1656_v47 = vadd.f32 0.5, %v1652_v44  ;;  %v1654_v56 = vmul.f32 0.5, %v2828_v55  ;;  %v3726_v55 = vld [vmem:[%s3188_s24 + $0xa0] ss:$16 sps:$4 sm:$0xff]  }
 0x474   : > { %v1660_v48 = vmul.f32 %v2826_v46, %v1655_v45 }
 0x475   : > { %v1659_v53 = vmul.f32 %v1656_v47, %v3537_v17  ;;  %v1658_v57 = vadd.f32 0.5, %v1654_v56  ;;  %v3621_v17 = vld [vmem:[%s3188_s24 + $0x4c] ss:$16 sps:$4 sm:$0xff]   ;;  %v3710_v47 = vld [vmem:[%s3188_s24 + $0x80] ss:$16 sps:$4 sm:$0xff]  }
 0x476   : > { %v3730_v56 = vld [vmem:[%s3188_s24 + $0xa8] ss:$16 sps:$4 sm:$0xff]  }
 0x477   : > { %v3584_v54 = vadd.f32 %v1660_v48, %v1659_v53  ;;  %v3714_v48 = vld [vmem:[%s3188_s24 + $0x88] ss:$16 sps:$4 sm:$0xff]   ;;  %v3718_v53 = vld [vmem:[%s3188_s24 + $0xa4] ss:$16 sps:$4 sm:$0xff]  }
 0x479   : > { %2829 = vtanh.f32 %v3584_v54 }
 0x483   : > { %v2830_v58 = vpop.eup %2829 }
 0x484   : > { %v1663_v59 = vmul.f32 %v2830_v58, %v1658_v57  ;;  %v3734_v57 = vld [vmem:[%s3188_s24 + $0xc4] ss:$16 sps:$4 sm:$0xff]   ;;  %v3738_v58 = vld [vmem:[%s3188_s24 + $0xcc] ss:$16 sps:$4 sm:$0xff]  }
 0x486   : > { %v1664_v61 = vpack.c.bf16 %v1663_v59, %v1663_v59  ;;  %v3742_v59 = vld [vmem:[%s3188_s24 + $0xc0] ss:$16 sps:$4 sm:$0xff]  }
 0x488   : > { %1667 = vst [vmem:[%s1666_s12] sm:$0xf] %v1664_v61  ;;  %1712 = vmatmul.mubr.bf16.vlgmr.msra.gmra.mrb[32].mxu0 %v1664_v61  ;;  %1753 = vmatmul.mubr.bf16.vlgmr.msra.gmra.mrb[32].mxu1 %v1664_v61  ;;  %v3746_v61 = vld [vmem:[%s3188_s24 + $0xc8] ss:$16 sps:$4 sm:$0xff]   ;;  %s1916_s12 = sshra.s32 %s3813_s11, 3 }
 0x489   : > { %1803 = vmatpush1.bf16.msra.mxu0 %v3591_v62  ;;  %1844 = vmatpush1.bf16.msra.mxu1 %v3595_v63  ;;  %s2566_s23 = sshll.u32 %s1916_s12, 5  ;;  %s2539_s29 = sshll.u32 %s1916_s12, 2 }
 0x48a   : > { %1804 = vmatprep.subr.bf16.mxu0 %v3599_v49  ;;  %1845 = vmatprep.subr.bf16.mxu1 %v3603_v50  ;;  %s1920_s25 = scalar_lea.vmem [#allocation2], %s2566_s23  ;;  %s2034_s30 = scalar_lea.vmem %s3446_s15, %s2539_s29 [#allocation7] }
 0x48b   : > { %1834 = vmatprep.mubr.bf16.mxu0 %v2989_v40  ;;  %1875 = vmatprep.mubr.bf16.mxu1 %v2989_v40 }
 0x48d   : > { %1805 = vmatpush1.bf16.msra.mxu0 %v3609_v3  ;;  %1846 = vmatpush1.bf16.msra.mxu1 %v3613_v7 }
 0x48e   : > { %1806 = vmatprep.subr.bf16.mxu0 %v3617_v13  ;;  %1847 = vmatprep.subr.bf16.mxu1 %v3621_v17 }
 0x491   : > { %1807 = vmatpush1.bf16.msra.mxu0 %v3625_v51  ;;  %1848 = vmatpush1.bf16.msra.mxu1 %v3629_v60 }
 0x492   : > { %1808 = vmatprep.subr.bf16.mxu0 %v3633_v23  ;;  %1849 = vmatprep.subr.bf16.mxu1 %v3637_v52 }
 0x495   : > { %1809 = vmatpush1.bf16.msra.mxu0 %v3641_v27  ;;  %1850 = vmatpush1.bf16.msra.mxu1 %v3645_v33 }
 0x496   : > { %1810 = vmatprep.subr.bf16.mxu0 %v3649_v4  ;;  %1851 = vmatprep.subr.bf16.mxu1 %v3653_v5 }
 0x499   : > { %1811 = vmatpush1.bf16.msra.mxu0 %v3292_v24  ;;  %1852 = vmatpush1.bf16.msra.mxu1 %v3295_v25  ;;  %v3671_v24 = vld [vmem:[%s3188_s24 + $0x4] ss:$16 sps:$4 sm:$0xff]   ;;  %v3675_v25 = vld [vmem:[%s3188_s24 + $0xc] ss:$16 sps:$4 sm:$0xff]  }
 0x49a   : > { %1812 = vmatprep.subr.bf16.mxu0 %v3300_v26  ;;  %1853 = vmatprep.subr.bf16.mxu1 %v3306_v28  ;;  %v1675_v26 = vld [vmem:[%s1674_s26] sm:$0xff] }
 0x49d   : > { %1813 = vmatpush1.bf16.msra.mxu0 %v3311_v29  ;;  %1854 = vmatpush1.bf16.msra.mxu1 %v3314_v30 }
 0x49e   : > { %1814 = vmatprep.subr.bf16.mxu0 %v3318_v31  ;;  %1855 = vmatprep.subr.bf16.mxu1 %v3321_v32  ;;  %v1676_v31 = vld [vmem:[%s1674_s26 + $0x8] sm:$0xff]  ;;  %s2574_s26 = smul.u32 4294967240, %s2975_s18 }
 0x4a0   : > { %s3823_s5 = sadd.s32 56, %s2574_s26 }
 0x4a1   : > { %1815 = vmatpush1.bf16.msra.mxu0 %v3330_v34  ;;  %1856 = vmatpush1.bf16.msra.mxu1 %v3333_v35 }
 0x4a2   : > { %1816 = vmatprep.subr.bf16.mxu0 %v3338_v36  ;;  %1857 = vmatprep.subr.bf16.mxu1 %v3341_v37 }
 0x4a5   : > { %1817 = vmatpush1.bf16.msra.mxu0 %v3346_v38  ;;  %1858 = vmatpush1.bf16.msra.mxu1 %v3349_v39 }
 0x4a6   : > { %1925 = vmatprep.subr.bf16.mxu0 %v3671_v24  ;;  %1966 = vmatprep.subr.bf16.mxu1 %v3675_v25 }
 0x55b   : > { %v1713_v28 = vpop.f32.mrb[32].mxu0  ;;  %v1754_v29 = vpop.f32.mrb[32].mxu1 }
 0x55c   : > { %v1761_v30 = vadd.f32 %v1713_v28, %v1675_v26  ;;  %v1715_v32 = vpop.f32.mrb[33].mxu0  ;;  %v1756_v34 = vpop.f32.mrb[33].mxu1  ;;  %v1763_v10 = vadd.f32 %v1754_v29, %v1677_v8  ;;  %v3750_v26 = vld [vmem:[%s3188_s24 + $0xe4] ss:$16 sps:$4 sm:$0xff]   ;;  %v3754_v28 = vld [vmem:[%s3188_s24 + $0xec] ss:$16 sps:$4 sm:$0xff]  }
 0x55d   : > { %v1762_v35 = vadd.f32 %v1715_v32, %v1676_v31  ;;  %v1717_v36 = vpop.f32.mrb[34].mxu0  ;;  %v1758_v37 = vpop.f32.mrb[34].mxu1  ;;  %v1764_v12 = vadd.f32 %v1756_v34, %v1678_v11  ;;  %v3758_v29 = vld [vmem:[%s3188_s24 + $0xe0] ss:$16 sps:$4 sm:$0xff]  }
 0x55e   : > { %v1765_v38 = vmul.f32 0.5, %v1761_v30  ;;  %v1718_v39 = vpop.f32.mrb[35].mxu0  ;;  %v1759_v6 = vpop.f32.mrb[35].mxu1  ;;  %v3762_v30 = vld [vmem:[%s3188_s24 + $0xe8] ss:$16 sps:$4 sm:$0xff]   ;;  %v1798_v31 = vld [vmem:[%s1797_s13] sm:$0xff] }
 0x55f   : > { %v1766_v9 = vmul.f32 0.5, %v1762_v35  ;;  %v1768_v1 = vmul.f32 0.5, %v1764_v12  ;;  %v1799_v36 = vld [vmem:[%s1797_s13 + $0x8] sm:$0xff] }
 0x560   : > { %2831 = vtanh.f32 %v1765_v38 }
 0x561   : > { %2833 = vtanh.f32 %v1766_v9 }
 0x562   : > { %2835 = vtanh.f32 %v1763_v10  ;;  %v1800_v10 = vld [vmem:[%s1797_s13 + $0x10] sm:$0xff] }
 0x563   : > { %2837 = vtanh.f32 %v1768_v1  ;;  %v1801_v1 = vld [vmem:[%s1797_s13 + $0x18] sm:$0xff]  ;;  %s2545_s13 = sshll.u32 (%p3873_p9), %s2975_s18, 2 }
 0x564   : > { %s2176_s10 = scalar_lea.vmem (%p3873_p9), %s3867_s4, %s2545_s13 }
 0x56a   : > { %v2832_v14 = vpop.eup %2831 }
 0x56b   : > { %v2834_v2 = vpop.eup %2833  ;;  %v1773_v15 = vmul.f32 0.5, %v2832_v14 }
 0x56c   : > { %v1774_v16 = vmul.f32 0.5, %v2834_v2  ;;  %v2836_v19 = vpop.eup %2835 }
 0x56d   : > { %v1777_v18 = vadd.f32 0.5, %v1773_v15  ;;  %v2838_v41 = vpop.eup %2837 }
 0x56e   : > { %v1778_v20 = vadd.f32 0.5, %v1774_v16  ;;  %v1776_v42 = vmul.f32 0.5, %v2838_v41 }
 0x56f   : > { %v1782_v21 = vmul.f32 %v2836_v19, %v1777_v18 }
 0x570   : > { %v1781_v22 = vmul.f32 %v1778_v20, %v3584_v54  ;;  %v1780_v43 = vadd.f32 0.5, %v1776_v42  ;;  %v3722_v54 = vld [vmem:[%s3188_s24 + $0xac] ss:$16 sps:$4 sm:$0xff]   ;;  %s2535_s24 = sshll.u32 %s1793_s14, 2 }
 0x571   : > { %s1911_s8 = scalar_lea.vmem %s3446_s15, %s2535_s24 [#allocation7] }
 0x572   : > { %v3685_v0 = vadd.f32 %v1782_v21, %v1781_v22 }
 0x574   : > { %2839 = vtanh.f32 %v3685_v0 }
 0x57e   : > { %v2840_v44 = vpop.eup %2839 }
 0x57f   : > { %v1785_v45 = vmul.f32 %v2840_v44, %v1780_v43 }
 0x581   : > { %v1786_v46 = vpack.c.bf16 %v1785_v45, %v1785_v45 }
 0x583   : > { %1789 = vst [vmem:[%s1788_s6] sm:$0xf] %v1786_v46  ;;  %1835 = vmatmul.mubr.bf16.vlgmr.msra.gmra.mrb[36].mxu0 %v1786_v46  ;;  %1876 = vmatmul.mubr.bf16.vlgmr.msra.gmra.mrb[36].mxu1 %v1786_v46  ;;  %s2039_s6 = sshra.s32 %s3823_s5, 3 }
 0x584   : > { %1926 = vmatpush1.bf16.msra.mxu0 %v3591_v62  ;;  %1967 = vmatpush1.bf16.msra.mxu1 %v3595_v63  ;;  %s2569_s7 = sshll.u32 %s2039_s6, 5  ;;  %s2543_s14 = sshll.u32 %s2039_s6, 2 }
 0x585   : > { %1927 = vmatprep.subr.bf16.mxu0 %v3599_v49  ;;  %1968 = vmatprep.subr.bf16.mxu1 %v3603_v50  ;;  %s2043_s9 = scalar_lea.vmem [#allocation2], %s2569_s7  ;;  %s2157_s21 = scalar_lea.vmem %s3446_s15, %s2543_s14 [#allocation7] }
 0x586   : > { %1957 = vmatprep.mubr.bf16.mxu0 %v2989_v40  ;;  %1998 = vmatprep.mubr.bf16.mxu1 %v2989_v40 }
 0x588   : > { %1928 = vmatpush1.bf16.msra.mxu0 %v3609_v3  ;;  %1969 = vmatpush1.bf16.msra.mxu1 %v3613_v7 }
 0x589   : > { %1929 = vmatprep.subr.bf16.mxu0 %v3617_v13  ;;  %1970 = vmatprep.subr.bf16.mxu1 %v3621_v17 }
 0x58c   : > { %1930 = vmatpush1.bf16.msra.mxu0 %v3625_v51  ;;  %1971 = vmatpush1.bf16.msra.mxu1 %v3629_v60 }
 0x58d   : > { %1931 = vmatprep.subr.bf16.mxu0 %v3633_v23  ;;  %1972 = vmatprep.subr.bf16.mxu1 %v3637_v52 }
 0x590   : > { %1932 = vmatpush1.bf16.msra.mxu0 %v3641_v27  ;;  %1973 = vmatpush1.bf16.msra.mxu1 %v3645_v33 }
 0x591   : > { %1933 = vmatprep.subr.bf16.mxu0 %v3649_v4  ;;  %1974 = vmatprep.subr.bf16.mxu1 %v3653_v5 }
 0x594   : > { %1934 = vmatpush1.bf16.msra.mxu0 %v3710_v47  ;;  %1975 = vmatpush1.bf16.msra.mxu1 %v3714_v48 }
 0x595   : > { %1935 = vmatprep.subr.bf16.mxu0 %v3718_v53  ;;  %1976 = vmatprep.subr.bf16.mxu1 %v3722_v54 }
 0x598   : > { %1936 = vmatpush1.bf16.msra.mxu0 %v3726_v55  ;;  %1977 = vmatpush1.bf16.msra.mxu1 %v3730_v56 }
 0x599   : > { %1937 = vmatprep.subr.bf16.mxu0 %v3734_v57  ;;  %1978 = vmatprep.subr.bf16.mxu1 %v3738_v58 }
 0x59c   : > { %1938 = vmatpush1.bf16.msra.mxu0 %v3742_v59  ;;  %1979 = vmatpush1.bf16.msra.mxu1 %v3746_v61 }
 0x59d   : > { %1939 = vmatprep.subr.bf16.mxu0 %v3750_v26  ;;  %1980 = vmatprep.subr.bf16.mxu1 %v3754_v28 }
 0x5a0   : > { %1940 = vmatpush1.bf16.msra.mxu0 %v3758_v29  ;;  %1981 = vmatpush1.bf16.msra.mxu1 %v3762_v30 }
 0x5a1   : > { %2048 = vmatprep.subr.bf16.mxu0 %v3671_v24  ;;  %2089 = vmatprep.subr.bf16.mxu1 %v3675_v25 }
 0x656   : > { %v1836_v32 = vpop.f32.mrb[36].mxu0  ;;  %v1877_v34 = vpop.f32.mrb[36].mxu1 }
 0x657   : > { %v1884_v35 = vadd.f32 %v1836_v32, %v1798_v31  ;;  %v1838_v37 = vpop.f32.mrb[37].mxu0  ;;  %v1879_v38 = vpop.f32.mrb[37].mxu1  ;;  %v1886_v12 = vadd.f32 %v1877_v34, %v1800_v10 }
 0x658   : > { %v1885_v39 = vadd.f32 %v1838_v37, %v1799_v36  ;;  %v1840_v24 = vpop.f32.mrb[38].mxu0  ;;  %v1881_v6 = vpop.f32.mrb[38].mxu1  ;;  %v1887_v14 = vadd.f32 %v1879_v38, %v1801_v1  ;;  %v2044_v38 = vld [vmem:[%s2043_s9] sm:$0xff] }
 0x659   : > { %v1888_v25 = vmul.f32 0.5, %v1884_v35  ;;  %v1841_v8 = vpop.f32.mrb[39].mxu0  ;;  %v1882_v9 = vpop.f32.mrb[39].mxu1 }
 0x65a   : > { %v1889_v11 = vmul.f32 0.5, %v1885_v39  ;;  %v1891_v2 = vmul.f32 0.5, %v1887_v14 }
 0x65b   : > { %2841 = vtanh.f32 %v1888_v25  ;;  %v2045_v25 = vld [vmem:[%s2043_s9 + $0x8] sm:$0xff] }
 0x65c   : > { %2843 = vtanh.f32 %v1889_v11 }
 0x65d   : > { %2845 = vtanh.f32 %v1886_v12 }
 0x65e   : > { %2847 = vtanh.f32 %v1891_v2 }
 0x665   : > { %v2842_v15 = vpop.eup %2841 }
 0x666   : > { %v2844_v16 = vpop.eup %2843  ;;  %v1896_v18 = vmul.f32 0.5, %v2842_v15  ;;  %v2046_v15 = vld [vmem:[%s2043_s9 + $0x10] sm:$0xff] }
 0x667   : > { %v1897_v19 = vmul.f32 0.5, %v2844_v16  ;;  %v2846_v21 = vpop.eup %2845 }
 0x668   : > { %v1900_v20 = vadd.f32 0.5, %v1896_v18  ;;  %v2848_v44 = vpop.eup %2847 }
 0x669   : > { %v1901_v22 = vadd.f32 0.5, %v1897_v19  ;;  %v1899_v45 = vmul.f32 0.5, %v2848_v44  ;;  %v2047_v19 = vld [vmem:[%s2043_s9 + $0x18] sm:$0xff] }
 0x66a   : > { %v1905_v41 = vmul.f32 %v2846_v21, %v1900_v20 }
 0x66b   : > { %v1904_v42 = vmul.f32 %v1901_v22, %v3685_v0  ;;  %v1903_v46 = vadd.f32 0.5, %v1899_v45 }
 0x66d   : > { %v3774_v43 = vadd.f32 %v1905_v41, %v1904_v42 }
 0x66f   : > { %2849 = vtanh.f32 %v3774_v43 }
 0x679   : > { %v2850_v31 = vpop.eup %2849 }
 0x67a   : > { %v1908_v32 = vmul.f32 %v2850_v31, %v1903_v46 }
 0x67c   : > { %v1909_v34 = vpack.c.bf16 %v1908_v32, %v1908_v32 }
 0x67e   : > { %1912 = vst [vmem:[%s1911_s8] sm:$0xf] %v1909_v34  ;;  %1958 = vmatmul.mubr.bf16.vlgmr.msra.gmra.mrb[40].mxu0 %v1909_v34  ;;  %1999 = vmatmul.mubr.bf16.vlgmr.msra.gmra.mrb[40].mxu1 %v1909_v34 }
 0x67f   : > { %2049 = vmatpush1.bf16.msra.mxu0 %v3591_v62  ;;  %2090 = vmatpush1.bf16.msra.mxu1 %v3595_v63 }
 0x680   : > { %2050 = vmatprep.subr.bf16.mxu0 %v3599_v49  ;;  %2091 = vmatprep.subr.bf16.mxu1 %v3603_v50  ;;  %v1922_v50 = vld [vmem:[%s1920_s25 + $0x8] sm:$0xff] }
 0x681   : > { %2080 = vmatprep.mubr.bf16.mxu0 %v2989_v40  ;;  %2121 = vmatprep.mubr.bf16.mxu1 %v2989_v40  ;;  %v1921_v40 = vld [vmem:[%s1920_s25] sm:$0xff] }
 0x683   : > { %2051 = vmatpush1.bf16.msra.mxu0 %v3609_v3  ;;  %2092 = vmatpush1.bf16.msra.mxu1 %v3613_v7 }
 0x684   : > { %2052 = vmatprep.subr.bf16.mxu0 %v3617_v13  ;;  %2093 = vmatprep.subr.bf16.mxu1 %v3621_v17 }
 0x687   : > { %2053 = vmatpush1.bf16.msra.mxu0 %v3625_v51  ;;  %2094 = vmatpush1.bf16.msra.mxu1 %v3629_v60 }
 0x688   : > { %2054 = vmatprep.subr.bf16.mxu0 %v3633_v23  ;;  %2095 = vmatprep.subr.bf16.mxu1 %v3637_v52 }
 0x68b   : > { %2055 = vmatpush1.bf16.msra.mxu0 %v3641_v27  ;;  %2096 = vmatpush1.bf16.msra.mxu1 %v3645_v33  ;;  %v1923_v27 = vld [vmem:[%s1920_s25 + $0x10] sm:$0xff] }
 0x68c   : > { %2056 = vmatprep.subr.bf16.mxu0 %v3649_v4  ;;  %2097 = vmatprep.subr.bf16.mxu1 %v3653_v5  ;;  %v1924_v5 = vld [vmem:[%s1920_s25 + $0x18] sm:$0xff] }
 0x68f   : > { %2057 = vmatpush1.bf16.msra.mxu0 %v3710_v47  ;;  %2098 = vmatpush1.bf16.msra.mxu1 %v3714_v48 }
 0x690   : > { %2058 = vmatprep.subr.bf16.mxu0 %v3718_v53  ;;  %2099 = vmatprep.subr.bf16.mxu1 %v3722_v54 }
 0x693   : > { %2059 = vmatpush1.bf16.msra.mxu0 %v3726_v55  ;;  %2100 = vmatpush1.bf16.msra.mxu1 %v3730_v56 }
 0x694   : > { %2060 = vmatprep.subr.bf16.mxu0 %v3734_v57  ;;  %2101 = vmatprep.subr.bf16.mxu1 %v3738_v58 }
 0x697   : > { %2061 = vmatpush1.bf16.msra.mxu0 %v3742_v59  ;;  %2102 = vmatpush1.bf16.msra.mxu1 %v3746_v61 }
 0x698   : > { %2062 = vmatprep.subr.bf16.mxu0 %v3750_v26  ;;  %2103 = vmatprep.subr.bf16.mxu1 %v3754_v28 }
 0x69b   : > { %2063 = vmatpush1.bf16.msra.mxu0 %v3758_v29  ;;  %2104 = vmatpush1.bf16.msra.mxu1 %v3762_v30 }
 0x751   : > { %v1959_v62 = vpop.f32.mrb[40].mxu0  ;;  %v2000_v63 = vpop.f32.mrb[40].mxu1 }
 0x752   : > { %v2007_v49 = vadd.f32 %v1959_v62, %v1921_v40  ;;  %v1961_v3 = vpop.f32.mrb[41].mxu0  ;;  %v2002_v7 = vpop.f32.mrb[41].mxu1  ;;  %v2009_v4 = vadd.f32 %v2000_v63, %v1923_v27 }
 0x753   : > { %v2008_v13 = vadd.f32 %v1961_v3, %v1922_v50  ;;  %v1963_v17 = vpop.f32.mrb[42].mxu0  ;;  %v2004_v51 = vpop.f32.mrb[42].mxu1  ;;  %v2010_v0 = vadd.f32 %v2002_v7, %v1924_v5 }
 0x754   : > { %v2011_v60 = vmul.f32 0.5, %v2007_v49  ;;  %v1964_v23 = vpop.f32.mrb[43].mxu0  ;;  %v2005_v52 = vpop.f32.mrb[43].mxu1 }
 0x755   : > { %v2012_v33 = vmul.f32 0.5, %v2008_v13  ;;  %v2014_v47 = vmul.f32 0.5, %v2010_v0 }
 0x756   : > { %2851 = vtanh.f32 %v2011_v60 }
 0x757   : > { %2853 = vtanh.f32 %v2012_v33 }
 0x758   : > { %2855 = vtanh.f32 %v2009_v4 }
 0x759   : > { %2857 = vtanh.f32 %v2014_v47 }
 0x760   : > { %v2852_v48 = vpop.eup %2851 }
 0x761   : > { %v2854_v53 = vpop.eup %2853  ;;  %v2019_v54 = vmul.f32 0.5, %v2852_v48 }
 0x762   : > { %v2020_v55 = vmul.f32 0.5, %v2854_v53  ;;  %v2856_v57 = vpop.eup %2855 }
 0x763   : > { %v2023_v56 = vadd.f32 0.5, %v2019_v54  ;;  %v2858_v28 = vpop.eup %2857 }
 0x764   : > { %v2024_v58 = vadd.f32 0.5, %v2020_v55  ;;  %v2022_v29 = vmul.f32 0.5, %v2858_v28 }
 0x765   : > { %v2028_v59 = vmul.f32 %v2856_v57, %v2023_v56 }
 0x766   : > { %v2027_v61 = vmul.f32 %v2024_v58, %v3774_v43  ;;  %v2026_v30 = vadd.f32 0.5, %v2022_v29 }
 0x768   : > { %v2029_v26 = vadd.f32 %v2028_v59, %v2027_v61 }
 0x76a   : > { %2859 = vtanh.f32 %v2029_v26 }
 0x774   : > { %v2860_v35 = vpop.eup %2859 }
 0x775   : > { %v2031_v36 = vmul.f32 %v2860_v35, %v2026_v30 }
 0x777   : > { %v2032_v37 = vpack.c.bf16 %v2031_v36, %v2031_v36 }
 0x779   : > { %2035 = vst [vmem:[%s2034_s30] sm:$0xf] %v2032_v37  ;;  %2081 = vmatmul.mubr.bf16.vlgmr.msra.gmra.mrb[44].mxu0 %v2032_v37  ;;  %2122 = vmatmul.mubr.bf16.vlgmr.msra.gmra.mrb[44].mxu1 %v2032_v37 }
 0x84c   : > { %v2082_v39 = vpop.f32.mrb[44].mxu0  ;;  %v2123_v24 = vpop.f32.mrb[44].mxu1 }
 0x84d   : > { %v2130_v6 = vadd.f32 %v2082_v39, %v2044_v38  ;;  %v2084_v8 = vpop.f32.mrb[45].mxu0  ;;  %v2125_v9 = vpop.f32.mrb[45].mxu1  ;;  %v2132_v18 = vadd.f32 %v2123_v24, %v2046_v15 }
 0x84e   : > { %v2131_v10 = vadd.f32 %v2084_v8, %v2045_v25  ;;  %v2086_v11 = vpop.f32.mrb[46].mxu0  ;;  %v2127_v12 = vpop.f32.mrb[46].mxu1  ;;  %v2133_v20 = vadd.f32 %v2125_v9, %v2047_v19 }
 0x84f   : > { %v2134_v1 = vmul.f32 0.5, %v2130_v6  ;;  %v2087_v14 = vpop.f32.mrb[47].mxu0  ;;  %v2128_v2 = vpop.f32.mrb[47].mxu1 }
 0x850   : > { %v2135_v16 = vmul.f32 0.5, %v2131_v10  ;;  %v2137_v21 = vmul.f32 0.5, %v2133_v20 }
 0x851   : > { %2861 = vtanh.f32 %v2134_v1 }
 0x852   : > { %2863 = vtanh.f32 %v2135_v16 }
 0x853   : > { %2865 = vtanh.f32 %v2132_v18 }
 0x854   : > { %2867 = vtanh.f32 %v2137_v21 }
 0x85b   : > { %v2862_v22 = vpop.eup %2861 }
 0x85c   : > { %v2864_v41 = vpop.eup %2863  ;;  %v2142_v42 = vmul.f32 0.5, %v2862_v22 }
 0x85d   : > { %v2143_v43 = vmul.f32 0.5, %v2864_v41  ;;  %v2866_v45 = vpop.eup %2865 }
 0x85e   : > { %v2146_v44 = vadd.f32 0.5, %v2142_v42  ;;  %v2868_v40 = vpop.eup %2867 }
 0x85f   : > { %v2147_v46 = vadd.f32 0.5, %v2143_v43  ;;  %v2145_v62 = vmul.f32 0.5, %v2868_v40 }
 0x860   : > { %v2151_v31 = vmul.f32 %v2866_v45, %v2146_v44 }
 0x861   : > { %v2150_v32 = vmul.f32 %v2147_v46, %v2029_v26  ;;  %v2149_v63 = vadd.f32 0.5, %v2145_v62 }
 0x863   : > { %v2152_v34 = vadd.f32 %v2151_v31, %v2150_v32 }
 0x865   : > { %2869 = vtanh.f32 %v2152_v34 }
 0x86e   : > { %2167 = sbr.rel (!%p3873_p9) target bundleno = 2177 (0x881), region = 48 }
 0x86f   : > { %v2870_v49 = vpop.eup %2869 }
 0x870   : > { %v2154_v50 = vmul.f32 %v2870_v49, %v2149_v63 }
 0x872   : > { %v2155_v3 = vpack.c.bf16 %v2154_v50, %v2154_v50 }
 0x874   : > { %2158 = vst [vmem:[%s2157_s21] sm:$0xf] %v2155_v3 }
 0x87b   : > { %v2192_v7 = vld [vmem:[%s3446_s15] sm:$0xf]  ;;  %v2194_v13 = vld [vmem:[%s3446_s15 + $0x4] sm:$0xf]  ;;  %v2196_v17 = vld [vmem:[%s3446_s15 + $0x8] sm:$0xf] }
 0x87c   : > { %v2198_v51 = vld [vmem:[%s3446_s15 + $0xc] sm:$0xf]  ;;  %v2200_v60 = vld [vmem:[%s3446_s15 + $0x10] sm:$0xf]  ;;  %2193 = vst [vmem:[%s2176_s10] sm:$0xf] %v2192_v7 }
 0x87d   : > { %2195 = vst [vmem:[%s2176_s10 + $0x8] sm:$0xf] %v2194_v13  ;;  %2197 = vst [vmem:[%s2176_s10 + $0x10] sm:$0xf] %v2196_v17  ;;  %v2202_v23 = vld [vmem:[%s3446_s15 + $0x14] sm:$0xf] }
 0x87e   : > { %2199 = vst [vmem:[%s2176_s10 + $0x18] sm:$0xf] %v2198_v51  ;;  %2201 = vst [vmem:[%s2176_s10 + $0x20] sm:$0xf] %v2200_v60  ;;  %v2204_v52 = vld [vmem:[%s3446_s15 + $0x18] sm:$0xf] }
 0x87f   : > { %v2206_v27 = vld [vmem:[%s3446_s15 + $0x1c] sm:$0xf]  ;;  %2203 = vst [vmem:[%s2176_s10 + $0x28] sm:$0xf] %v2202_v23  ;;  %2205 = vst [vmem:[%s2176_s10 + $0x30] sm:$0xf] %v2204_v52 }
 0x880   : > { %2207 = vst [vmem:[%s2176_s10 + $0x38] sm:$0xf] %v2206_v27 }
 0x881 PF: > { %s17_s20 = sadd.s32 1, %s2983_s20   ;;  %s3874_s15 = smov %s2967_s16 }
 0x882   : > { %p14_p11 = scmp.ge.s32.totalorder %s17_s20, 4   ;;  %s3875_s16 = smov %s2971_s17 }
 0x883   : > { %s3876_s17 = smov %s3064_s27  ;;  %s3877_s18 = smov %s2979_s19 }
 0x884   : > { %s3878_s19 = smov %s3880_s22  ;;  %16 = sbr.rel (!%p14_p11) target bundleno = 4 (0x4), region = 150 }
 0x88b   :  { %2256 = vsyncpa [#allocation6], 1 }
 0x88c   :  { %2258 = vsyncpa [#allocation6 + $0x1], 1 }

</bundles_post_ra>
